<compile_context>
chip_gen: v7x
topology: tpu7x:2x2x1
jax: 0.10.0
libtpu: 0.0.40
codegen_flags: <defaults>
</compile_context>

<pallas_src>
import jax
import jax.numpy as jnp
from jax.experimental import pallas as pl
from jax.experimental.pallas import tpu as pltpu


def _smooth_attn_kernel(g_ref, w1_ref, b1_ref, vblk_ref, vb_ref, ctx_ref, score_ref):
    """g_ref:   (TM, K*D) bf16 neighbour features (query == values), lane-dense.
    w1_ref:  (D, H) bf16 (W1.weight.T), resident in VMEM.
    b1_ref:  (1, H) f32 W1 bias.
    vblk_ref:(K*H, K) f32 block-diagonal V weight (column s holds V.weight in rows s*H:(s+1)*H).
    vb_ref:  (1, 1) f32 V bias scalar in SMEM.
    ctx_ref: (TM, D) f32, score_ref: (TM, K) f32."""
    TM, D = ctx_ref.shape
    H = w1_ref.shape[1]
    K = score_ref.shape[1]

    w1 = w1_ref[...]                                        # (D, H) bf16
    b1b = jnp.broadcast_to(b1_ref[...], (TM, H))            # hoisted out of the K loop
    vb = vb_ref[0, 0]                                       # scalar V bias (SMEM)

    # logits[:, s] = V(tanh(W1(g_s))) for all K slots, assembled on the MXU.
    logits = jnp.zeros((TM, K), jnp.float32)
    g_slots = []
    for s in range(K):                                      # K is small and static
        g_s = g_ref[:, s * D:(s + 1) * D]                   # (TM, D) bf16, lane-aligned
        g_slots.append(g_s)
        h = jnp.tanh(jnp.dot(g_s, w1, preferred_element_type=jnp.float32) + b1b)
        # (TM, H) @ (H, K) with only column s non-zero -> accumulates logit column s.
        logits = logits + jnp.dot(h, vblk_ref[s * H:(s + 1) * H, :],
                                  preferred_element_type=jnp.float32)

    score = jax.nn.sigmoid(logits + vb)                     # (TM, K) f32
    score_ref[...] = score                                  # single lane-dense store

    # attn = score / sum_K(score): approx reciprocal (EUP) + one Newton step.
    denom = jnp.sum(score, axis=-1, keepdims=True)          # (TM, 1), > 0 always
    inv = pl.reciprocal(denom, approx=True)
    inv = inv * (2.0 - denom * inv)                         # refine to ~f32 accuracy

    # context = sum_K attn * values  (values == g, reuse the same slices).
    ctx = jnp.zeros((TM, D), jnp.float32)
    for s in range(K):
        w_s = score[:, s:s + 1] * inv                       # (TM, 1)
        ctx = ctx + w_s * g_slots[s].astype(jnp.float32)
    ctx_ref[...] = ctx


def _choose_row_block(M, block_rows):
    """Row-block size: big (amortise ~0.35us/step), multiple of 8 sublanes, and an
    even number of grid steps when possible so both v7x TensorCores get work."""
    tm = min(block_rows, M)
    if tm >= 8:
        tm = (tm // 8) * 8
    grid_m = pl.cdiv(M, tm)
    if M >= 16:
        if grid_m < 2:
            grid_m = 2
        if grid_m % 2:
            grid_m += 1
        tm = max(8, ((pl.cdiv(M, grid_m) + 7) // 8) * 8)
        grid_m = pl.cdiv(M, tm)
    return tm, grid_m


def _attention_rows(g, w1_t, b1, vblk, v_b, block_rows=1024):
    """SelfAttention(dim=1) over flattened rows.
    g: (M, K*D) bf16 lane-dense neighbour features.
    Returns ctx: (M, D) f32, score: (M, K) f32."""
    M, KD = g.shape
    D, H = w1_t.shape
    K = KD // D

    tm, grid_m = _choose_row_block(M, block_rows)
    m_pad = grid_m * tm
    if m_pad != M:
        g = jnp.pad(g, ((0, m_pad - M), (0, 0)))            # padded rows sliced off below

    ctx, score = pl.pallas_call(
        _smooth_attn_kernel,
        grid=(grid_m,),
        in_specs=[
            pl.BlockSpec((tm, KD), lambda m: (m, 0)),        # neighbours (lane-dense, bf16)
            pl.BlockSpec((D, H), lambda m: (0, 0)),          # W1^T (resident, bf16)
            pl.BlockSpec((1, H), lambda m: (0, 0)),          # W1 bias (f32)
            pl.BlockSpec((K * H, K), lambda m: (0, 0)),      # block-diag V weight (f32)
            pl.BlockSpec(memory_space=pltpu.MemorySpace.SMEM),  # V bias scalar
        ],
        out_specs=[
            pl.BlockSpec((tm, D), lambda m: (m, 0)),         # context (lane-dense)
            pl.BlockSpec((tm, K), lambda m: (m, 0)),         # score tile (one store/step)
        ],
        out_shape=[
            jax.ShapeDtypeStruct((m_pad, D), jnp.float32),
            jax.ShapeDtypeStruct((m_pad, K), jnp.float32),
        ],
        compiler_params=pltpu.CompilerParams(
            dimension_semantics=("parallel",),
            vmem_limit_bytes=32 * 1024 * 1024,   # sized against v7x's scoped VMEM budget
        ),
    )(g, w1_t, b1, vblk, v_b)
    return ctx[:M], score[:M]


def _knn_gather(x, K):
    """knn_points(x, x, K) + knn_gather(x, idx) in plain JAX.
    Returns ((B, N, K, D) neighbour features, (B, N, K) indices)."""
    # TODO(synk): O(N^2) distance matrix + top_k + data-dependent gather have no
    # clean BlockSpec-pipelined Pallas form; left to XLA.
    sq = jnp.sum(x * x, axis=-1)                                   # (B, N)
    d2 = sq[:, :, None] + sq[:, None, :] - 2.0 * jnp.einsum("bid,bjd->bij", x, x)
    _, idx = jax.lax.top_k(-d2, K)                                 # self included
    gathered = jax.vmap(lambda pts, ind: pts[ind])(x, idx)         # (B, N, K, D)
    return gathered, idx


def smooth_attention(x, w1_t, b1, v_w, v_b, K=4, block_rows=1024):
    """SmoothAttention.forward: x (B, N, D) -> (context (B, N, D), score (B, N, K, 1))."""
    B, N, D = x.shape
    H = w1_t.shape[1]
    g, _ = _knn_gather(x, K)                                       # (B, N, K, D) f32
    # Lane-dense layout + bf16 for the dominant HBM stream (matmul operands only).
    g_flat = g.reshape(B * N, K * D).astype(jnp.bfloat16)
    w1_bf16 = w1_t.astype(jnp.bfloat16)
    # Block-diagonal V weight: column s carries V.weight over rows s*H:(s+1)*H.
    vblk = jnp.kron(jnp.eye(K, dtype=jnp.float32), v_w.reshape(H, 1))   # (K*H, K)
    ctx, score = _attention_rows(g_flat, w1_bf16, b1, vblk, v_b,
                                 block_rows=block_rows)
    return ctx.reshape(B, N, D), score.reshape(B, N, K, 1)


def _reference(x, w1_t, b1, v_w, v_b, K=4):
    # Pure-JAX f32 reference mirroring SmoothAttention.forward (attention dim=2).
    g, _ = _knn_gather(x, K)                                       # (B, N, K, D)
    h = jnp.tanh(g @ w1_t + b1)                                    # (B, N, K, H)
    score = jax.nn.sigmoid(jnp.sum(h * v_w, axis=-1, keepdims=True) + v_b)
    attn = score / jnp.sum(score, axis=2, keepdims=True)
    ctx = jnp.sum(attn * g, axis=2)                                # (B, N, D)
    return ctx, score


if __name__ == "__main__":
    # Module defaults: embed_dim=128, hidden_dim=64, K=4; small point cloud.
    B, N, D, H, K = 2, 256, 128, 64, 4

    key = jax.random.PRNGKey(0)
    kx, kw1, kb1, kvw, kvb = jax.random.split(key, 5)
    x = jax.random.normal(kx, (B, N, D), dtype=jnp.float32)
    # SelfAttention params: W1 = Linear(D, H) stored transposed, V = Linear(H, 1).
    w1_t = jax.random.normal(kw1, (D, H), dtype=jnp.float32) * 0.1   # W1.weight.T
    b1 = jax.random.normal(kb1, (1, H), dtype=jnp.float32) * 0.1     # W1.bias
    v_w = jax.random.normal(kvw, (1, H), dtype=jnp.float32) * 0.1    # V.weight (1, H)
    v_b = jax.random.normal(kvb, (1, 1), dtype=jnp.float32) * 0.1    # V.bias

    ctx, score = smooth_attention(x, w1_t, b1, v_w, v_b, K=K, block_rows=1024)
    jax.block_until_ready((ctx, score))

    ctx_ref, score_ref = _reference(x, w1_t, b1, v_w, v_b, K=K)
    assert ctx.shape == (B, N, D) and score.shape == (B, N, K, 1)
    # Tolerances account for the bf16 matmul-operand path (f32 accumulation).
    assert jnp.allclose(score, score_ref, atol=5e-3, rtol=5e-3), "score mismatch"
    assert jnp.allclose(ctx, ctx_ref, atol=2e-2, rtol=2e-2), "context mismatch"
    print("KERNEL_OK")
</pallas_src>

<mosaic_0001>
module attributes {stable_mosaic.version = 11 : i64} {
  func.func @_smooth_attn_kernel(%arg0: i32, %arg1: memref<256x512xbf16, #tpu.memory_space<vmem>>, %arg2: memref<128x64xbf16, #tpu.memory_space<vmem>>, %arg3: memref<1x64xf32, #tpu.memory_space<vmem>>, %arg4: memref<256x4xf32, #tpu.memory_space<vmem>>, %arg5: memref<1x1xf32, #tpu.memory_space<smem>>, %arg6: memref<256x128xf32, #tpu.memory_space<vmem>>, %arg7: memref<256x4xf32, #tpu.memory_space<vmem>>) attributes {dimension_semantics = [#tpu.dimension_semantics<parallel>], iteration_bounds = array<i64: 2>, scalar_prefetch = 0 : i64, scratch_operands = 0 : i64, tpu.core_type = #tpu.core_type<tc>, window_params = [{transform_indices = @transform_0, window_bounds = array<i64: 256, 512>}, {pipeline_mode = #tpu.pipeline_mode<synchronous>, transform_indices = @transform_1, window_bounds = array<i64: 128, 64>}, {pipeline_mode = #tpu.pipeline_mode<synchronous>, transform_indices = @transform_2, window_bounds = array<i64: 1, 64>}, {pipeline_mode = #tpu.pipeline_mode<synchronous>, transform_indices = @transform_3, window_bounds = array<i64: 256, 4>}, {transform_indices = @transform_4, window_bounds = array<i64: 1, 1>}, {transform_indices = @transform_5, window_bounds = array<i64: 256, 128>}, {transform_indices = @transform_6, window_bounds = array<i64: 256, 4>}]} {
    %c0 = arith.constant 0 : index
    %c0_0 = arith.constant 0 : index
    %0 = vector.load %arg2[%c0, %c0_0] : memref<128x64xbf16, #tpu.memory_space<vmem>>, vector<128x64xbf16>
    %c0_1 = arith.constant 0 : index
    %c0_2 = arith.constant 0 : index
    %1 = vector.load %arg3[%c0_1, %c0_2] : memref<1x64xf32, #tpu.memory_space<vmem>>, vector<1x64xf32>
    %2 = vector.shape_cast %1 : vector<1x64xf32> to vector<1x64xf32>
    %3 = vector.broadcast %2 : vector<1x64xf32> to vector<256x64xf32>
    %c0_3 = arith.constant 0 : index
    %c0_4 = arith.constant 0 : index
    %4 = memref.load %arg5[%c0_3, %c0_4] : memref<1x1xf32, #tpu.memory_space<smem>>
    %cst = arith.constant 0.000000e+00 : f32
    %5 = vector.broadcast %cst : f32 to vector<256x4xf32>
    %c0_5 = arith.constant 0 : index
    %c0_6 = arith.constant 0 : index
    %6 = vector.load %arg1[%c0_5, %c0_6] : memref<256x512xbf16, #tpu.memory_space<vmem>>, vector<256x128xbf16>
    %cst_7 = arith.constant dense<0.000000e+00> : vector<256x64xf32>
    %7 = tpu.matmul %6, %0, %cst_7 {dimension_numbers = #tpu.dot_dimension_numbers<[1], [0], [0], [1], [0, 0, 1, 1], [], []>} : vector<256x128xbf16>, vector<128x64xbf16>, vector<256x64xf32> -> vector<256x64xf32>
    %8 = arith.addf %7, %3 : vector<256x64xf32>
    %9 = math.tanh %8 : vector<256x64xf32>
    %c0_8 = arith.constant 0 : index
    %c0_9 = arith.constant 0 : index
    %10 = vector.load %arg4[%c0_8, %c0_9] : memref<256x4xf32, #tpu.memory_space<vmem>>, vector<64x4xf32>
    %cst_10 = arith.constant dense<0.000000e+00> : vector<256x4xf32>
    %11 = tpu.matmul %9, %10, %cst_10 {dimension_numbers = #tpu.dot_dimension_numbers<[1], [0], [0], [1], [0, 0, 1, 1], [], []>} : vector<256x64xf32>, vector<64x4xf32>, vector<256x4xf32> -> vector<256x4xf32>
    %12 = arith.addf %5, %11 : vector<256x4xf32>
    %c0_11 = arith.constant 0 : index
    %c128 = arith.constant 128 : index
    %13 = vector.load %arg1[%c0_11, %c128] : memref<256x512xbf16, #tpu.memory_space<vmem>>, vector<256x128xbf16>
    %cst_12 = arith.constant dense<0.000000e+00> : vector<256x64xf32>
    %14 = tpu.matmul %13, %0, %cst_12 {dimension_numbers = #tpu.dot_dimension_numbers<[1], [0], [0], [1], [0, 0, 1, 1], [], []>} : vector<256x128xbf16>, vector<128x64xbf16>, vector<256x64xf32> -> vector<256x64xf32>
    %15 = arith.addf %14, %3 : vector<256x64xf32>
    %16 = math.tanh %15 : vector<256x64xf32>
    %c64 = arith.constant 64 : index
    %c0_13 = arith.constant 0 : index
    %17 = vector.load %arg4[%c64, %c0_13] : memref<256x4xf32, #tpu.memory_space<vmem>>, vector<64x4xf32>
    %cst_14 = arith.constant dense<0.000000e+00> : vector<256x4xf32>
    %18 = tpu.matmul %16, %17, %cst_14 {dimension_numbers = #tpu.dot_dimension_numbers<[1], [0], [0], [1], [0, 0, 1, 1], [], []>} : vector<256x64xf32>, vector<64x4xf32>, vector<256x4xf32> -> vector<256x4xf32>
    %19 = arith.addf %12, %18 : vector<256x4xf32>
    %c0_15 = arith.constant 0 : index
    %c256 = arith.constant 256 : index
    %20 = vector.load %arg1[%c0_15, %c256] : memref<256x512xbf16, #tpu.memory_space<vmem>>, vector<256x128xbf16>
    %cst_16 = arith.constant dense<0.000000e+00> : vector<256x64xf32>
    %21 = tpu.matmul %20, %0, %cst_16 {dimension_numbers = #tpu.dot_dimension_numbers<[1], [0], [0], [1], [0, 0, 1, 1], [], []>} : vector<256x128xbf16>, vector<128x64xbf16>, vector<256x64xf32> -> vector<256x64xf32>
    %22 = arith.addf %21, %3 : vector<256x64xf32>
    %23 = math.tanh %22 : vector<256x64xf32>
    %c128_17 = arith.constant 128 : index
    %c0_18 = arith.constant 0 : index
    %24 = vector.load %arg4[%c128_17, %c0_18] : memref<256x4xf32, #tpu.memory_space<vmem>>, vector<64x4xf32>
    %cst_19 = arith.constant dense<0.000000e+00> : vector<256x4xf32>
    %25 = tpu.matmul %23, %24, %cst_19 {dimension_numbers = #tpu.dot_dimension_numbers<[1], [0], [0], [1], [0, 0, 1, 1], [], []>} : vector<256x64xf32>, vector<64x4xf32>, vector<256x4xf32> -> vector<256x4xf32>
    %26 = arith.addf %19, %25 : vector<256x4xf32>
    %c0_20 = arith.constant 0 : index
    %c384 = arith.constant 384 : index
    %27 = vector.load %arg1[%c0_20, %c384] : memref<256x512xbf16, #tpu.memory_space<vmem>>, vector<256x128xbf16>
    %cst_21 = arith.constant dense<0.000000e+00> : vector<256x64xf32>
    %28 = tpu.matmul %27, %0, %cst_21 {dimension_numbers = #tpu.dot_dimension_numbers<[1], [0], [0], [1], [0, 0, 1, 1], [], []>} : vector<256x128xbf16>, vector<128x64xbf16>, vector<256x64xf32> -> vector<256x64xf32>
    %29 = arith.addf %28, %3 : vector<256x64xf32>
    %30 = math.tanh %29 : vector<256x64xf32>
    %c192 = arith.constant 192 : index
    %c0_22 = arith.constant 0 : index
    %31 = vector.load %arg4[%c192, %c0_22] : memref<256x4xf32, #tpu.memory_space<vmem>>, vector<64x4xf32>
    %cst_23 = arith.constant dense<0.000000e+00> : vector<256x4xf32>
    %32 = tpu.matmul %30, %31, %cst_23 {dimension_numbers = #tpu.dot_dimension_numbers<[1], [0], [0], [1], [0, 0, 1, 1], [], []>} : vector<256x64xf32>, vector<64x4xf32>, vector<256x4xf32> -> vector<256x4xf32>
    %33 = arith.addf %26, %32 : vector<256x4xf32>
    %34 = vector.broadcast %4 : f32 to vector<256x4xf32>
    %35 = arith.addf %33, %34 : vector<256x4xf32>
    %36 = arith.negf %35 : vector<256x4xf32>
    %37 = math.exp %36 : vector<256x4xf32>
    %cst_24 = arith.constant 1.000000e+00 : f32
    %38 = vector.broadcast %cst_24 : f32 to vector<256x4xf32>
    %39 = arith.addf %38, %37 : vector<256x4xf32>
    %40 = arith.divf %38, %39 : vector<256x4xf32>
    %c0_25 = arith.constant 0 : index
    %c0_26 = arith.constant 0 : index
    %41 = vector.load %arg7[%c0_25, %c0_26] : memref<256x4xf32, #tpu.memory_space<vmem>>, vector<256x4xf32>
    tpu.vector_store %arg7[%c0_25, %c0_26], %40 {strides = array<i32>} : memref<256x4xf32, #tpu.memory_space<vmem>>, vector<256x4xf32>,
    %cst_27 = arith.constant dense<0.000000e+00> : vector<256xf32>
    %42 = vector.multi_reduction <add>, %40, %cst_27 [1] : vector<256x4xf32> to vector<256xf32>
    %43 = vector.shape_cast %42 : vector<256xf32> to vector<256x1xf32>
    %44 = tpu.reciprocal %43 {approx = true} : vector<256x1xf32> -> vector<256x1xf32>
    %45 = arith.mulf %43, %44 : vector<256x1xf32>
    %cst_28 = arith.constant 2.000000e+00 : f32
    %46 = vector.broadcast %cst_28 : f32 to vector<256x1xf32>
    %47 = arith.subf %46, %45 : vector<256x1xf32>
    %48 = arith.mulf %44, %47 : vector<256x1xf32>
    %cst_29 = arith.constant 0.000000e+00 : f32
    %49 = vector.broadcast %cst_29 : f32 to vector<256x128xf32>
    %50 = vector.extract_strided_slice %40 {offsets = [0, 0], sizes = [256, 1], strides = [1, 1]} : vector<256x4xf32> to vector<256x1xf32>
    %51 = arith.mulf %50, %48 : vector<256x1xf32>
    %52 = arith.extf %6 : vector<256x128xbf16> to vector<256x128xf32>
    %53 = vector.broadcast %51 : vector<256x1xf32> to vector<256x128xf32>
    %54 = arith.mulf %53, %52 : vector<256x128xf32>
    %55 = arith.addf %49, %54 : vector<256x128xf32>
    %56 = vector.extract_strided_slice %40 {offsets = [0, 1], sizes = [256, 1], strides = [1, 1]} : vector<256x4xf32> to vector<256x1xf32>
    %57 = arith.mulf %56, %48 : vector<256x1xf32>
    %58 = arith.extf %13 : vector<256x128xbf16> to vector<256x128xf32>
    %59 = vector.broadcast %57 : vector<256x1xf32> to vector<256x128xf32>
    %60 = arith.mulf %59, %58 : vector<256x128xf32>
    %61 = arith.addf %55, %60 : vector<256x128xf32>
    %62 = vector.extract_strided_slice %40 {offsets = [0, 2], sizes = [256, 1], strides = [1, 1]} : vector<256x4xf32> to vector<256x1xf32>
    %63 = arith.mulf %62, %48 : vector<256x1xf32>
    %64 = arith.extf %20 : vector<256x128xbf16> to vector<256x128xf32>
    %65 = vector.broadcast %63 : vector<256x1xf32> to vector<256x128xf32>
    %66 = arith.mulf %65, %64 : vector<256x128xf32>
    %67 = arith.addf %61, %66 : vector<256x128xf32>
    %68 = vector.extract_strided_slice %40 {offsets = [0, 3], sizes = [256, 1], strides = [1, 1]} : vector<256x4xf32> to vector<256x1xf32>
    %69 = arith.mulf %68, %48 : vector<256x1xf32>
    %70 = arith.extf %27 : vector<256x128xbf16> to vector<256x128xf32>
    %71 = vector.broadcast %69 : vector<256x1xf32> to vector<256x128xf32>
    %72 = arith.mulf %71, %70 : vector<256x128xf32>
    %73 = arith.addf %67, %72 : vector<256x128xf32>
    %c0_30 = arith.constant 0 : index
    %c0_31 = arith.constant 0 : index
    %74 = vector.load %arg6[%c0_30, %c0_31] : memref<256x128xf32, #tpu.memory_space<vmem>>, vector<256x128xf32>
    tpu.vector_store %arg6[%c0_30, %c0_31], %73 {strides = array<i32>} : memref<256x128xf32, #tpu.memory_space<vmem>>, vector<256x128xf32>,
    return
  }
  func.func @transform_0(%arg0: i32) -> (i32, i32) {
    %c0_i32 = arith.constant 0 : i32
    %c0_i32_0 = arith.constant 0 : i32
    return %arg0, %c0_i32 : i32, i32
  }
  func.func @transform_1(%arg0: i32) -> (i32, i32) {
    %c0_i32 = arith.constant 0 : i32
    %c0_i32_0 = arith.constant 0 : i32
    %c0_i32_1 = arith.constant 0 : i32
    return %c0_i32, %c0_i32_0 : i32, i32
  }
  func.func @transform_2(%arg0: i32) -> (i32, i32) {
    %c0_i32 = arith.constant 0 : i32
    %c0_i32_0 = arith.constant 0 : i32
    %c0_i32_1 = arith.constant 0 : i32
    return %c0_i32, %c0_i32_0 : i32, i32
  }
  func.func @transform_3(%arg0: i32) -> (i32, i32) {
    %c0_i32 = arith.constant 0 : i32
    %c0_i32_0 = arith.constant 0 : i32
    %c0_i32_1 = arith.constant 0 : i32
    return %c0_i32, %c0_i32_0 : i32, i32
  }
  func.func @transform_4(%arg0: i32) -> (i32, i32) {
    %c0_i32 = arith.constant 0 : i32
    %c0_i32_0 = arith.constant 0 : i32
    %c0_i32_1 = arith.constant 0 : i32
    return %c0_i32, %c0_i32_0 : i32, i32
  }
  func.func @transform_5(%arg0: i32) -> (i32, i32) {
    %c0_i32 = arith.constant 0 : i32
    %c0_i32_0 = arith.constant 0 : i32
    return %arg0, %c0_i32 : i32, i32
  }
  func.func @transform_6(%arg0: i32) -> (i32, i32) {
    %c0_i32 = arith.constant 0 : i32
    %c0_i32_0 = arith.constant 0 : i32
    return %arg0, %c0_i32 : i32, i32
  }
}

</mosaic_0001>

<bundles_post_ra>
// kernel: tpu_custom_call.1
= control target key start
LH: loop header
LB: loop body
LE: loop exit
PB: predicated region body
PF: predicated region fallthrough
CT: control target
= control target key end

     0   :  { %s8682_s0 = inlined_call_operand.hbm [shape: bf16[512,512], index: 0, kind: input, shape index: {}]   ;;  %s8683_s1 = inlined_call_operand.vmem [shape: bf16[128,64], index: 1, kind: input, shape index: {}]   ;;  %s8684_s2 = inlined_call_operand.vmem [shape: f32[1,64], index: 2, kind: input, shape index: {}]   ;;  %s8685_s3 = inlined_call_operand.vmem [shape: f32[256,4], index: 3, kind: input, shape index: {}]   ;;  %s8686_s4 = inlined_call_operand.<no memory space> [shape: f32[1,1], index: 4, kind: input, shape index: {}]   ;;  %s8687_s5 = inlined_call_operand.hbm [shape: f32[512,128], index: 5, kind: output, shape index: {0}]   ;;  %s8688_s6 = inlined_call_operand.vmem [shape: f32[512,4], index: 6, kind: output, shape index: {1}]  }
   0x1   :  { %12 = sst [smem:[#allocation2]] %s8686_s4 }
   0x2   :  { %13 = vsyncpa [#allocation4], 0 }
   0x3   :  { %15 = vsyncpa [#allocation4 + $0x1], 0 }
   0x4   :  { %16 = vsyncpa [#allocation5], 0 }
   0x5   :  { %18 = vsyncpa [#allocation5 + $0x1], 0  ;;  %s6713_s23 = smov 0   ;;  %s6715_s24 = smov 0  }
   0x6   :  { %s6717_s25 = smov 0   ;;  %s6719_s26 = smov 0  }
   0x7 LB: > { %s6734_s4 = sadd.s32 4294967295, %s6663_s26   ;;  %s4621_s27 = sadd.s32 4294967294, %s6663_s26   ;;  %s6663_s26 = sphi %s6719_s26, %s8701_s26   ;;  %s6659_s25 = sphi %s6717_s25, %s8700_s25   ;;  %s6655_s24 = sphi %s6715_s24, %s8699_s24   ;;  %s6651_s23 = sphi %s6713_s23, %s8698_s23  }
   0x8   : > { %s6738_s28 = sadd.s32 1, %s6663_s26   ;;  %s31_s29 = sadd.s32 1, %s6659_s25 }
   0x9   : > { %s28_s30 = ssub.s32 %s6663_s26, %s6738_s28  ;;  %p38_p0 = scmp.ne.s32.totalorder %s6659_s25, %s6655_s24 }
   0xa   : > { %p29_p1 = scmp.eq.s32.totalorder %s28_s30, 0  ;;  %p39_p2 = scmp.eq.s32.totalorder %s6663_s26, 0 }
   0xb   : > { %p44_p3 = scmp.ne.s32.totalorder %s6655_s24, %s6651_s23  ;;  %p45_p4 = scmp.eq.s32.totalorder %s6734_s4, 0 }
   0xc   : > { %s6750_s7 = scalar_select %p29_p1, %s6659_s25, %s31_s29  }
   0xd   : > { %p6752_p5 = por %p39_p2, %p38_p0  ;;  %p6756_p6 = por %p45_p4, %p44_p3 }
   0xe   : > { %p152_p7 = scmp.eq.s32.totalorder %s6734_s4, 1  ;;  %p158_p8 = scmp.eq.s32.totalorder %s4621_s27, 1 }
   0xf   : > { %p5750_p10 = scmp.lt.s32.totalorder %s6663_s26, 2  ;;  %s216_s12 = sand.u32 1, %s6659_s25  }
  0x10   : > { %p6763_p11 = por %p152_p7, %p38_p0  ;;  %p6767_p12 = por %p158_p8, %p44_p3 }
  0x11   : > { %s4872_s13 = sshll.u32 %s6663_s26, 13  ;;  %s4624_s14 = sshll.u32 %s216_s12, 9 }
  0x12   : > { %s8692_s10 = scalar_select %p6763_p11, 1, 0 }
  0x13   : > { %s8693_s11 = scalar_select %p6767_p12, 1, 0 }
  0x14   : > { %s6776_s17 = scalar_lea.hbm %s8682_s0, %s4872_s13  ;;  %s220_s18 = scalar_lea.vmem [#allocation3], %s4624_s14 }
  0x15   : > { %s228_s19 = sshll.u32 %s220_s18, 4  ;;  %p6780_p13 = pnand %p5750_p10, %p6752_p5  ;;  %s6784_s19 = int_to_ptr.vmem [resolvable:$true] %s228_s19 }
  0x16   : > { %s6786_s21 = scalar_lea.sflag [#allocation4], %s216_s12  ;;  %s6567_s22 = scalar_lea.hbm %s6776_s17, 8192 }
  0x17   : > { %p6568_p0 = scmp.ne.s32.totalorder %s6776_s17, %s6567_s22  ;;  %p6569_p1 = pneg %p6780_p13 }
  0x18   : > { %s6572_s30 = scalar_lea.hbm %s8682_s0, 16384  ;;  %p6573_p4 = scmp.lt.u32.totalorder %s6776_s17, %s8682_s0 }
  0x19   : > { %p6570_p2 = pnand %p6569_p1, %p6568_p0  ;;  %p6574_p5 = scmp.lt.u32.totalorder %s6572_s30, %s6567_s22 }
  0x1a   : > { %p6576_p8 = scmp.lt.u32.totalorder %s6567_s22, %s6776_s17 }
  0x1b   : > { %p6571_p3 = pneg %p6570_p2  ;;  %p6575_p7 = por %p6574_p5, %p6573_p4 }
  0x1d   : > { %p6577_p10 = por %p6576_p8, %p6575_p7 }
  0x1f   : > { %p6578_p9 = pnand %p6577_p10, %p6571_p3 }
  0x21   : > { %6581 = shalt.err (!%p6578_p9)
}
  0x22   : > { %s6582_s12 = scalar_lea.vmem %s6784_s19, 8192  ;;  %s6665_s14 = smov [#allocation3]  }
  0x23   : > { %p6583_p0 = scmp.ne.s32.totalorder %s6784_s19, %s6582_s12  ;;  %s6587_s15 = sshll.u32 %s6665_s14, 4  ;;  %s6588_s15 = int_to_ptr.vmem [resolvable:$false] %s6587_s15 }
  0x24   : > { %s6589_s16 = scalar_lea.vmem %s6588_s15, 16384  ;;  %p6590_p11 = scmp.lt.s32.totalorder %s6784_s19, %s6588_s15 }
  0x25   : > { %p6585_p2 = pnand %p6583_p0, %p6569_p1  ;;  %p6591_p4 = scmp.lt.s32.totalorder %s6589_s16, %s6582_s12 }
  0x27   : > { %p6586_p12 = pneg %p6585_p2  ;;  %p6592_p5 = por %p6591_p4, %p6590_p11 }
  0x29   : > { %p6593_p7 = pnand %p6592_p5, %p6586_p12 }
  0x2b   : > { %6596 = shalt.err (!%p6593_p7)
}
  0x2c   : > { %s6666_s18 = smov 256   ;;  %s6667_s22 = smov 16  }
  0x2d   : > { %5745 = dma.hbm_to_vmem [thread:$0]  (!%p6780_p13), %s6776_s17, 8192, %s6784_s19, %s6786_s21, %s6666_s18, %s6666_s18, %s6667_s22  }
  0x2e   : > { %p4628_p9 = scmp.ge.s32.totalorder %s6663_s26, 1  ;;  %p236_p1 = scmp.lt.s32.totalorder %s6663_s26, 3 }
  0x30   : > { %p237_p3 = pnand %p4628_p9, %p236_p1 }
  0x31   : > { %s6817_s27 = sand.u32 (!%p237_p3), 1, %s6655_s24  }
  0x32   : > { %240 = sbr.rel (%p237_p3) target bundleno = 1464 (0x5b8), region = 40  ;;  %s4629_s29 = sshll.u32 (!%p237_p3), %s6817_s27, 9 }
  0x33   : > { %s243_s30 = scalar_lea.sflag (!%p237_p3), [#allocation4], %s6817_s27  ;;  %s6821_s8 = scalar_lea.vmem (!%p237_p3), [#allocation3], %s4629_s29 }
  0x39   : > { %6642 = dma.done.wait (%p6756_p6), %s243_s30, 8192  }
  0x3a   : > { %6644 = vsyncadd (%p6756_p6), %s243_s30, 4294959104  ;;  %v6830_v0 = vld [vmem:[%s8683_s1] sm:$0xff]   ;;  %v6835_v1 = vld [vmem:[%s8683_s1 + $0x8] sm:$0xff]   ;;  %vm1019_vm0 = vcmask 523264   ;;  %s312_s17 = sld [smem:[#allocation2]]  ;;  %s4631_s19 = sshll.u32 %s6734_s4, 5 }
  0x3b   : > { %5130 = vmatprep.subr.bf16.mxu1 %v6830_v0  ;;  %v6843_v2 = vld [vmem:[%s8683_s1 + $0x10] sm:$0xff]   ;;  %v6850_v3 = vld [vmem:[%s8683_s1 + $0x18] sm:$0xff]   ;;  %v313_v4 = vld [vmem:[%s6821_s8] sm:$0xf]  ;;  %p283_p6 = scmp.lt.s32.totalorder %s4631_s19, 63  ;;  %vm3251_vm1 = vcmask 31744  }
  0x3c   : > { %5131 = vmatpush3.bf16.msra.mxu1 %v6830_v0  ;;  %v314_v5 = vld [vmem:[%s6821_s8 + $0x10] sm:$0xf]  ;;  %v6859_v7 = vld [vmem:[%s8683_s1 + $0x20] sm:$0xff]   ;;  %v6866_v8 = vld [vmem:[%s8683_s1 + $0x28] sm:$0xff]   ;;  %s4630_s12 = sshll.u32 %s6817_s27, 8  ;;  %s4873_s15 = sshll.u32 %s6734_s4, 12 }
  0x3d   : > { %5132 = vmatprep.subr.bf16.mxu1 %v6835_v1  ;;  %v4634_v6 = vcombine.low %v313_v4, %v314_v5  ;;  %v6873_v9 = vld [vmem:[%s8683_s1 + $0x30] sm:$0xff]   ;;  %v6880_v10 = vld [vmem:[%s8683_s1 + $0x38] sm:$0xff]   ;;  %v315_v11 = vld [vmem:[%s6821_s8 + $0x20] sm:$0xf]  ;;  %s8703_s19 = smov (!%p283_p6, %s4631_s19), 63  ;;  %s8170_s14 = scalar_lea.vmem [#allocation6], %s4630_s12 }
  0x3e   : > { %v316_v12 = vld [vmem:[%s6821_s8 + $0x30] sm:$0xf]  ;;  %v317_v13 = vld [vmem:[%s6821_s8 + $0x40] sm:$0xf]  ;;  %v690_v55 = vld [vmem:[%s6821_s8 + $0x4] sm:$0xf]  ;;  %s8635_s29 = scalar_lea.hbm %s8687_s5, %s4873_s15 }
  0x3f   : > { %5146 = vmatprep.mubr.bf16.mxu1 %v4634_v6  ;;  %v318_v14 = vld [vmem:[%s6821_s8 + $0x50] sm:$0xf]  ;;  %v4635_v15 = vcombine.low %v315_v11, %v316_v12  ;;  %v319_v17 = vld [vmem:[%s6821_s8 + $0x60] sm:$0xf]  ;;  %v691_v56 = vld [vmem:[%s6821_s8 + $0x14] sm:$0xf] }
  0x40   : > { %5133 = vmatpush3.bf16.msra.mxu1 %v6835_v1  ;;  %v4636_v16 = vcombine.low %v317_v13, %v318_v14  ;;  %v320_v18 = vld [vmem:[%s6821_s8 + $0x70] sm:$0xf]  ;;  %v321_v19 = vld [vmem:[%s6821_s8 + $0x80] sm:$0xf]  ;;  %v4658_v58 = vcombine.low %v690_v55, %v691_v56  ;;  %v692_v59 = vld [vmem:[%s6821_s8 + $0x24] sm:$0xf] }
  0x41   : > { %5134 = vmatprep.subr.bf16.mxu1 %v6843_v2  ;;  %v322_v20 = vld [vmem:[%s6821_s8 + $0x90] sm:$0xf]  ;;  %v4637_v21 = vcombine.low %v319_v17, %v320_v18  ;;  %v323_v23 = vld [vmem:[%s6821_s8 + $0xa0] sm:$0xf]  ;;  %v693_v60 = vld [vmem:[%s6821_s8 + $0x34] sm:$0xf] }
  0x42   : > { %v4638_v22 = vcombine.low %v321_v19, %v322_v20  ;;  %v324_v24 = vld [vmem:[%s6821_s8 + $0xb0] sm:$0xf]  ;;  %v325_v25 = vld [vmem:[%s6821_s8 + $0xc0] sm:$0xf]  ;;  %v694_v61 = vld [vmem:[%s6821_s8 + $0x44] sm:$0xf]  ;;  %v4659_v63 = vcombine.low %v692_v59, %v693_v60 }
  0x43   : > { %v326_v26 = vld [vmem:[%s6821_s8 + $0xd0] sm:$0xf]  ;;  %v4639_v27 = vcombine.low %v323_v23, %v324_v24  ;;  %v327_v29 = vld [vmem:[%s6821_s8 + $0xe0] sm:$0xf]  ;;  %v695_v62 = vld [vmem:[%s6821_s8 + $0x54] sm:$0xf] }
  0x44   : > { %5135 = vmatpush3.bf16.msra.mxu1 %v6843_v2  ;;  %v4640_v28 = vcombine.low %v325_v25, %v326_v26  ;;  %v328_v30 = vld [vmem:[%s6821_s8 + $0xf0] sm:$0xf]  ;;  %v329_v31 = vld [vmem:[%s6821_s8 + $0x100] sm:$0xf]  ;;  %v4660_v4 = vcombine.low %v694_v61, %v695_v62  ;;  %v696_v5 = vld [vmem:[%s6821_s8 + $0x64] sm:$0xf] }
  0x45   : > { %5136 = vmatprep.subr.bf16.mxu1 %v6850_v3  ;;  %v330_v32 = vld [vmem:[%s6821_s8 + $0x110] sm:$0xf]  ;;  %v4641_v33 = vcombine.low %v327_v29, %v328_v30  ;;  %v331_v35 = vld [vmem:[%s6821_s8 + $0x120] sm:$0xf]  ;;  %v697_v6 = vld [vmem:[%s6821_s8 + $0x74] sm:$0xf] }
  0x46   : > { %v4642_v34 = vcombine.low %v329_v31, %v330_v32  ;;  %v332_v36 = vld [vmem:[%s6821_s8 + $0x130] sm:$0xf]  ;;  %v333_v37 = vld [vmem:[%s6821_s8 + $0x140] sm:$0xf]  ;;  %v698_v11 = vld [vmem:[%s6821_s8 + $0x84] sm:$0xf]  ;;  %v4661_v13 = vcombine.low %v696_v5, %v697_v6 }
  0x47   : > { %v334_v38 = vld [vmem:[%s6821_s8 + $0x150] sm:$0xf]  ;;  %v4643_v39 = vcombine.low %v331_v35, %v332_v36  ;;  %v335_v41 = vld [vmem:[%s6821_s8 + $0x160] sm:$0xf]  ;;  %v699_v12 = vld [vmem:[%s6821_s8 + $0x94] sm:$0xf] }
  0x48   : > { %5137 = vmatpush3.bf16.msra.mxu1 %v6850_v3  ;;  %v4644_v40 = vcombine.low %v333_v37, %v334_v38  ;;  %v336_v42 = vld [vmem:[%s6821_s8 + $0x170] sm:$0xf]  ;;  %v337_v43 = vld [vmem:[%s6821_s8 + $0x180] sm:$0xf]  ;;  %v4662_v14 = vcombine.low %v698_v11, %v699_v12  ;;  %v702_v17 = vld [vmem:[%s6821_s8 + $0xc4] sm:$0xf] }
  0x49   : > { %5138 = vmatprep.subr.bf16.mxu1 %v6859_v7  ;;  %v338_v44 = vld [vmem:[%s6821_s8 + $0x190] sm:$0xf]  ;;  %v4645_v45 = vcombine.low %v335_v41, %v336_v42  ;;  %v339_v47 = vld [vmem:[%s6821_s8 + $0x1a0] sm:$0xf]  ;;  %v703_v18 = vld [vmem:[%s6821_s8 + $0xd4] sm:$0xf] }
  0x4a   : > { %v4646_v46 = vcombine.low %v337_v43, %v338_v44  ;;  %v340_v48 = vld [vmem:[%s6821_s8 + $0x1b0] sm:$0xf]  ;;  %v341_v49 = vld [vmem:[%s6821_s8 + $0x1c0] sm:$0xf]  ;;  %v4664_v20 = vcombine.low %v702_v17, %v703_v18  ;;  %v706_v23 = vld [vmem:[%s6821_s8 + $0x104] sm:$0xf] }
  0x4b   : > { %v342_v50 = vld [vmem:[%s6821_s8 + $0x1d0] sm:$0xf]  ;;  %v4647_v51 = vcombine.low %v339_v47, %v340_v48  ;;  %v343_v53 = vld [vmem:[%s6821_s8 + $0x1e0] sm:$0xf]  ;;  %v707_v24 = vld [vmem:[%s6821_s8 + $0x114] sm:$0xf] }
  0x4c   : > { %5139 = vmatpush3.bf16.msra.mxu1 %v6859_v7  ;;  %v4648_v52 = vcombine.low %v341_v49, %v342_v50  ;;  %v344_v54 = vld [vmem:[%s6821_s8 + $0x1f0] sm:$0xf]  ;;  %v4666_v26 = vcombine.low %v706_v23, %v707_v24  ;;  %v710_v29 = vld [vmem:[%s6821_s8 + $0x144] sm:$0xf]  ;;  %v711_v30 = vld [vmem:[%s6821_s8 + $0x154] sm:$0xf] }
  0x4d   : > { %5140 = vmatprep.subr.bf16.mxu1 %v6866_v8  ;;  %v4649_v57 = vcombine.low %v343_v53, %v344_v54  ;;  %v4668_v32 = vcombine.low %v710_v29, %v711_v30  ;;  %v714_v35 = vld [vmem:[%s6821_s8 + $0x184] sm:$0xf]  ;;  %v715_v36 = vld [vmem:[%s6821_s8 + $0x194] sm:$0xf]  ;;  %v1662_v47 = vld [vmem:[%s6821_s8 + $0x8] sm:$0xf] }
  0x4e   : > { %v4670_v38 = vcombine.low %v714_v35, %v715_v36  ;;  %v718_v41 = vld [vmem:[%s6821_s8 + $0x1c4] sm:$0xf]  ;;  %v719_v42 = vld [vmem:[%s6821_s8 + $0x1d4] sm:$0xf]  ;;  %v1663_v48 = vld [vmem:[%s6821_s8 + $0x18] sm:$0xf] }
  0x4f   : > { %v4672_v44 = vcombine.low %v718_v41, %v719_v42  ;;  %v4738_v50 = vcombine.low %v1662_v47, %v1663_v48  ;;  %v1666_v53 = vld [vmem:[%s6821_s8 + $0x48] sm:$0xf]  ;;  %v1667_v54 = vld [vmem:[%s6821_s8 + $0x58] sm:$0xf]  ;;  %v682_v35 = vld [vmem:[%s8685_s3] sm:$0xff]  ;;  %s4632_s20 = sshll.u32 %s8703_s19, 3 }
  0x50   : > { %5141 = vmatpush3.bf16.msra.mxu1 %v6866_v8  ;;  %v4740_v56 = vcombine.low %v1666_v53, %v1667_v54  ;;  %v1670_v59 = vld [vmem:[%s6821_s8 + $0x88] sm:$0xf]  ;;  %v1671_v60 = vld [vmem:[%s6821_s8 + $0x98] sm:$0xf]  ;;  %v2345_v47 = vld [vmem:[%s6821_s8 + $0x1c] sm:$0xf]  ;;  %s7740_s13 = scalar_lea.vmem %s8688_s6, %s4632_s20 }
  0x51   : > { %5142 = vmatprep.subr.bf16.mxu1 %v6873_v9  ;;  %v4742_v62 = vcombine.low %v1670_v59, %v1671_v60  ;;  %v1675_v5 = vld [vmem:[%s6821_s8 + $0xd8] sm:$0xf]  ;;  %v1682_v23 = vld [vmem:[%s6821_s8 + $0x148] sm:$0xf]  ;;  %v2349_v53 = vld [vmem:[%s6821_s8 + $0x5c] sm:$0xf] }
  0x52   : > { %v1677_v12 = vld [vmem:[%s6821_s8 + $0xf8] sm:$0xf]  ;;  %v1684_v30 = vld [vmem:[%s6821_s8 + $0x168] sm:$0xf]  ;;  %v2353_v59 = vld [vmem:[%s6821_s8 + $0x9c] sm:$0xf] }
  0x53   : > { %v1014_v18 = vld [vmem:[%s8685_s3 + $0x58] sm:$0xff]  ;;  %v683_v36 = vld [vmem:[%s8685_s3 + $0x8] sm:$0xff]  ;;  %s4519_s16 = sshll.u32 %s8170_s14, 4  ;;  %p8695_p12 = scmp.ne.s32.totalorder %s8692_s10, 0  ;;  %s8637_s16 = int_to_ptr.vmem [resolvable:$true] %s4519_s16 }
  0x54   : > { %5143 = vmatpush3.bf16.msra.mxu1 %v6873_v9  ;;  %v1683_v24 = vld [vmem:[%s6821_s8 + $0x158] sm:$0xf]  ;;  %s6597_s4 = scalar_lea.vmem %s8637_s16, 4096  ;;  %s6672_s30 = smov [#allocation6]  }
  0x55   : > { %5144 = vmatprep.subr.bf16.mxu1 %v6880_v10  ;;  %v1691_v41 = vld [vmem:[%s6821_s8 + $0x1d8] sm:$0xf]  ;;  %p6598_p11 = scmp.ne.s32.totalorder %s8637_s16, %s6597_s4 }
  0x57   : > { %p6599_p13 = pnand %p6598_p11, %p8695_p12 }
  0x58   : > { %5145 = vmatpush3.bf16.msra.mxu1 %v6880_v10 }
  0x59   : > { %5178 = vmatprep.subr.bf16.mxu1 %v6830_v0  ;;  %p6600_p8 = pneg %p6599_p13 }
  0x5b   : > { %5147 = vmatmul.mubr.bf16.vlgmr.msra.gmra.mrb[0].mxu1 %v4635_v15  ;;  %v700_v15 = vld [vmem:[%s6821_s8 + $0xa4] sm:$0xf] }
  0x5c   : > { %5179 = vmatpush3.bf16.msra.mxu1 %v6830_v0  ;;  %5150 = vmatprep.mubr.bf16.mxu1 %v4636_v16  ;;  %v701_v16 = vld [vmem:[%s6821_s8 + $0xb4] sm:$0xf] }
  0x5d   : > { %5180 = vmatprep.subr.bf16.mxu1 %v6835_v1  ;;  %v4663_v19 = vcombine.low %v700_v15, %v701_v16  ;;  %v1679_v15 = vld [vmem:[%s6821_s8 + $0x118] sm:$0xf] }
  0x60   : > { %5181 = vmatpush3.bf16.msra.mxu1 %v6835_v1 }
  0x61   : > { %5182 = vmatprep.subr.bf16.mxu1 %v6843_v2 }
  0x63   : > { %5151 = vmatmul.mubr.bf16.gmra.mrb[4].mxu1 %v4637_v21  ;;  %v704_v21 = vld [vmem:[%s6821_s8 + $0xe4] sm:$0xf] }
  0x64   : > { %5154 = vmatprep.mubr.bf16.mxu1 %v4638_v22  ;;  %5183 = vmatpush3.bf16.msra.mxu1 %v6843_v2  ;;  %v705_v22 = vld [vmem:[%s6821_s8 + $0xf4] sm:$0xf] }
  0x65   : > { %5184 = vmatprep.subr.bf16.mxu1 %v6850_v3  ;;  %v4665_v25 = vcombine.low %v704_v21, %v705_v22  ;;  %v1681_v21 = vld [vmem:[%s6821_s8 + $0x138] sm:$0xf]  ;;  %v1016_v22 = vld [vmem:[%s8685_s3 + $0x68] sm:$0xff] }
  0x68   : > { %5185 = vmatpush3.bf16.msra.mxu1 %v6850_v3 }
  0x69   : > { %5186 = vmatprep.subr.bf16.mxu1 %v6859_v7 }
  0x6b   : > { %5155 = vmatmul.mubr.bf16.gmra.mrb[8].mxu1 %v4639_v27  ;;  %v708_v27 = vld [vmem:[%s6821_s8 + $0x124] sm:$0xf] }
  0x6c   : > { %5158 = vmatprep.mubr.bf16.mxu1 %v4640_v28  ;;  %5187 = vmatpush3.bf16.msra.mxu1 %v6859_v7  ;;  %v709_v28 = vld [vmem:[%s6821_s8 + $0x134] sm:$0xf] }
  0x6d   : > { %5188 = vmatprep.subr.bf16.mxu1 %v6866_v8  ;;  %v4667_v31 = vcombine.low %v708_v27, %v709_v28  ;;  %v1017_v27 = vld [vmem:[%s8685_s3 + $0x70] sm:$0xff]  ;;  %v1018_v28 = vld [vmem:[%s8685_s3 + $0x78] sm:$0xff] }
  0x6e   : > { %v5590_v29 = vpack.c.bf16 %v1018_v28, %v1017_v27  ;;  %v2368_v27 = vld [vmem:[%s6821_s8 + $0x18c] sm:$0xf]  ;;  %v2369_v28 = vld [vmem:[%s6821_s8 + $0x19c] sm:$0xf] }
  0x70   : > { %5189 = vmatpush3.bf16.msra.mxu1 %v6866_v8 }
  0x71   : > { %5190 = vmatprep.subr.bf16.mxu1 %v6873_v9 }
  0x73   : > { %5159 = vmatmul.mubr.bf16.gmra.mrb[12].mxu1 %v4641_v33  ;;  %v712_v33 = vld [vmem:[%s6821_s8 + $0x164] sm:$0xf] }
  0x74   : > { %5162 = vmatprep.mubr.bf16.mxu1 %v4642_v34  ;;  %5191 = vmatpush3.bf16.msra.mxu1 %v6873_v9  ;;  %v713_v34 = vld [vmem:[%s6821_s8 + $0x174] sm:$0xf] }
  0x75   : > { %5192 = vmatprep.subr.bf16.mxu1 %v6880_v10  ;;  %v4669_v37 = vcombine.low %v712_v33, %v713_v34 }
  0x78   : > { %5193 = vmatpush3.bf16.msra.mxu1 %v6880_v10 }
  0x79   : > { %5354 = vmatprep.subr.bf16.mxu1 %v6830_v0 }
  0x7b   : > { %5163 = vmatmul.mubr.bf16.gmra.mrb[16].mxu1 %v4643_v39  ;;  %v716_v39 = vld [vmem:[%s6821_s8 + $0x1a4] sm:$0xf] }
  0x7c   : > { %5166 = vmatprep.mubr.bf16.mxu1 %v4644_v40  ;;  %v717_v40 = vld [vmem:[%s6821_s8 + $0x1b4] sm:$0xf] }
  0x7d   : > { %v4671_v43 = vcombine.low %v716_v39, %v717_v40  ;;  %v1689_v39 = vld [vmem:[%s6821_s8 + $0x1b8] sm:$0xf]  ;;  %v1690_v40 = vld [vmem:[%s6821_s8 + $0x1c8] sm:$0xf] }
  0x83   : > { %5167 = vmatmul.mubr.bf16.gmra.mrb[20].mxu1 %v4645_v45  ;;  %v720_v45 = vld [vmem:[%s6821_s8 + $0x1e4] sm:$0xf] }
  0x84   : > { %5170 = vmatprep.mubr.bf16.mxu1 %v4646_v46  ;;  %v721_v46 = vld [vmem:[%s6821_s8 + $0x1f4] sm:$0xf] }
  0x85   : > { %v4673_v49 = vcombine.low %v720_v45, %v721_v46  ;;  %v1693_v45 = vld [vmem:[%s6821_s8 + $0x1f8] sm:$0xf]  ;;  %v2344_v46 = vld [vmem:[%s6821_s8 + $0xc] sm:$0xf] }
  0x8b   : > { %5171 = vmatmul.mubr.bf16.gmra.mrb[24].mxu1 %v4647_v51  ;;  %v1664_v51 = vld [vmem:[%s6821_s8 + $0x28] sm:$0xf] }
  0x8c   : > { %5174 = vmatprep.mubr.bf16.mxu1 %v4648_v52  ;;  %v1665_v52 = vld [vmem:[%s6821_s8 + $0x38] sm:$0xf] }
  0x8d   : > { %v4739_v55 = vcombine.low %v1664_v51, %v1665_v52  ;;  %v2347_v51 = vld [vmem:[%s6821_s8 + $0x3c] sm:$0xf]  ;;  %v2348_v52 = vld [vmem:[%s6821_s8 + $0x4c] sm:$0xf] }
  0x93   : > { %5175 = vmatmul.mubr.bf16.gmra.mrb[28].mxu1 %v4649_v57  ;;  %v1668_v57 = vld [vmem:[%s6821_s8 + $0x68] sm:$0xf] }
  0x94   : > { %5194 = vmatprep.mubr.bf16.mxu1 %v4658_v58  ;;  %v1669_v58 = vld [vmem:[%s6821_s8 + $0x78] sm:$0xf] }
  0x95   : > { %v4741_v61 = vcombine.low %v1668_v57, %v1669_v58  ;;  %v2351_v57 = vld [vmem:[%s6821_s8 + $0x7c] sm:$0xf]  ;;  %v2352_v58 = vld [vmem:[%s6821_s8 + $0x8c] sm:$0xf] }
  0x9b   : > { %5195 = vmatmul.mubr.bf16.vlgmr.msra.gmra.mrb[32].mxu1 %v4659_v63  ;;  %v1673_v63 = vld [vmem:[%s6821_s8 + $0xb8] sm:$0xf] }
  0x9c   : > { %5198 = vmatprep.mubr.bf16.mxu1 %v4660_v4  ;;  %5355 = vmatpush3.bf16.msra.mxu1 %v6830_v0  ;;  %v1674_v4 = vld [vmem:[%s6821_s8 + $0xc8] sm:$0xf] }
  0x9d   : > { %5356 = vmatprep.subr.bf16.mxu1 %v6835_v1  ;;  %v4744_v11 = vcombine.low %v1674_v4, %v1675_v5  ;;  %v2357_v4 = vld [vmem:[%s6821_s8 + $0xdc] sm:$0xf] }
  0xa0   : > { %5357 = vmatpush3.bf16.msra.mxu1 %v6835_v1 }
  0xa1   : > { %5358 = vmatprep.subr.bf16.mxu1 %v6843_v2 }
  0xa3   : > { %5199 = vmatmul.mubr.bf16.gmra.mrb[36].mxu1 %v4661_v13  ;;  %v1012_v13 = vld [vmem:[%s8685_s3 + $0x48] sm:$0xff] }
  0xa4   : > { %5202 = vmatprep.mubr.bf16.mxu1 %v4662_v14  ;;  %5359 = vmatpush3.bf16.msra.mxu1 %v6843_v2  ;;  %v1678_v14 = vld [vmem:[%s6821_s8 + $0x108] sm:$0xf] }
  0xa5   : > { %5360 = vmatprep.subr.bf16.mxu1 %v6850_v3  ;;  %v4746_v17 = vcombine.low %v1678_v14, %v1679_v15 }
  0xa8   : > { %5361 = vmatpush3.bf16.msra.mxu1 %v6850_v3 }
  0xa9   : > { %5362 = vmatprep.subr.bf16.mxu1 %v6859_v7 }
  0xab   : > { %5203 = vmatmul.mubr.bf16.gmra.mrb[40].mxu1 %v4663_v19 }
  0xac   : > { %5206 = vmatprep.mubr.bf16.mxu1 %v4664_v20  ;;  %5363 = vmatpush3.bf16.msra.mxu1 %v6859_v7  ;;  %v1680_v20 = vld [vmem:[%s6821_s8 + $0x128] sm:$0xf] }
  0xad   : > { %5364 = vmatprep.subr.bf16.mxu1 %v6866_v8 }
  0xb0   : > { %5365 = vmatpush3.bf16.msra.mxu1 %v6866_v8 }
  0xb1   : > { %5366 = vmatprep.subr.bf16.mxu1 %v6873_v9 }
  0xb3   : > { %5207 = vmatmul.mubr.bf16.gmra.mrb[44].mxu1 %v4665_v25 }
  0xb4   : > { %5210 = vmatprep.mubr.bf16.mxu1 %v4666_v26  ;;  %5367 = vmatpush3.bf16.msra.mxu1 %v6873_v9  ;;  %v4747_v26 = vcombine.low %v1680_v20, %v1681_v21  ;;  %v2365_v20 = vld [vmem:[%s6821_s8 + $0x15c] sm:$0xf] }
  0xb5   : > { %5368 = vmatprep.subr.bf16.mxu1 %v6880_v10 }
  0xb8   : > { %5369 = vmatpush3.bf16.msra.mxu1 %v6880_v10 }
  0xb9   : > { %5466 = vmatprep.subr.bf16.mxu1 %v6830_v0 }
  0xbb   : > { %5211 = vmatmul.mubr.bf16.gmra.mrb[48].mxu1 %v4667_v31  ;;  %v1685_v31 = vld [vmem:[%s6821_s8 + $0x178] sm:$0xf] }
  0xbc   : > { %5214 = vmatprep.mubr.bf16.mxu1 %v4668_v32  ;;  %v1687_v32 = vld [vmem:[%s6821_s8 + $0x198] sm:$0xf]  ;;  %v4749_v33 = vcombine.low %v1684_v30, %v1685_v31 }
  0xc3   : > { %5215 = vmatmul.mubr.bf16.gmra.mrb[52].mxu1 %v4669_v37  ;;  %v7051_v37 = vpack.c.bf16 %v683_v36, %v682_v35  ;;  %v2371_v35 = vld [vmem:[%s6821_s8 + $0x1bc] sm:$0xf]  ;;  %v2372_v36 = vld [vmem:[%s6821_s8 + $0x1cc] sm:$0xf] }
  0xc4   : > { %5218 = vmatprep.mubr.bf16.mxu1 %v4670_v38  ;;  %v1688_v38 = vld [vmem:[%s6821_s8 + $0x1a8] sm:$0xf] }
  0xc5   : > { %v4751_v42 = vcombine.low %v1688_v38, %v1689_v39  ;;  %v2373_v38 = vld [vmem:[%s6821_s8 + $0x1dc] sm:$0xf] }
  0xcb   : > { %5219 = vmatmul.mubr.bf16.gmra.mrb[56].mxu1 %v4671_v43  ;;  %v4752_v43 = vcombine.low %v1690_v40, %v1691_v41 }
  0xcc   : > { %5222 = vmatprep.mubr.bf16.mxu1 %v4672_v44  ;;  %v1692_v44 = vld [vmem:[%s6821_s8 + $0x1e8] sm:$0xf] }
  0xcd   : > { %v4753_v48 = vcombine.low %v1692_v44, %v1693_v45  ;;  %v2374_v45 = vld [vmem:[%s6821_s8 + $0x1ec] sm:$0xf] }
  0xd3   : > { %5223 = vmatmul.mubr.bf16.gmra.mrb[60].mxu1 %v4673_v49  ;;  %v4786_v49 = vcombine.low %v2344_v46, %v2345_v47  ;;  %v2375_v46 = vld [vmem:[%s6821_s8 + $0x1fc] sm:$0xf] }
  0xd4   : > { %5370 = vmatprep.mubr.bf16.mxu1 %v4738_v50  ;;  %v2346_v50 = vld [vmem:[%s6821_s8 + $0x2c] sm:$0xf] }
  0xd5   : > { %v4787_v54 = vcombine.low %v2346_v50, %v2347_v51 }
  0xdb   : > { %5371 = vmatmul.mubr.bf16.vlgmr.msra.gmra.mrb[64].mxu1 %v4739_v55  ;;  %v4788_v55 = vcombine.low %v2348_v52, %v2349_v53 }
  0xdc   : > { %5467 = vmatpush3.bf16.msra.mxu1 %v6830_v0  ;;  %5374 = vmatprep.mubr.bf16.mxu1 %v4740_v56  ;;  %v1672_v0 = vld [vmem:[%s6821_s8 + $0xa8] sm:$0xf]  ;;  %v2350_v56 = vld [vmem:[%s6821_s8 + $0x6c] sm:$0xf] }
  0xdd   : > { %5468 = vmatprep.subr.bf16.mxu1 %v6835_v1  ;;  %v4743_v6 = vcombine.low %v1672_v0, %v1673_v63  ;;  %v4789_v60 = vcombine.low %v2350_v56, %v2351_v57  ;;  %v2355_v0 = vld [vmem:[%s6821_s8 + $0xbc] sm:$0xf]  ;;  %v2356_v63 = vld [vmem:[%s6821_s8 + $0xcc] sm:$0xf] }
  0xe0   : > { %5469 = vmatpush3.bf16.msra.mxu1 %v6835_v1  ;;  %v1676_v1 = vld [vmem:[%s6821_s8 + $0xe8] sm:$0xf] }
  0xe1   : > { %5470 = vmatprep.subr.bf16.mxu1 %v6843_v2  ;;  %v4745_v16 = vcombine.low %v1676_v1, %v1677_v12  ;;  %v2359_v1 = vld [vmem:[%s6821_s8 + $0xfc] sm:$0xf]  ;;  %v2360_v12 = vld [vmem:[%s6821_s8 + $0x10c] sm:$0xf] }
  0xe3   : > { %5375 = vmatmul.mubr.bf16.gmra.mrb[68].mxu1 %v4741_v61  ;;  %v4790_v61 = vcombine.low %v2352_v58, %v2353_v59 }
  0xe4   : > { %5378 = vmatprep.mubr.bf16.mxu1 %v4742_v62  ;;  %5471 = vmatpush3.bf16.msra.mxu1 %v6843_v2  ;;  %v1011_v2 = vld [vmem:[%s8685_s3 + $0x40] sm:$0xff]  ;;  %v2354_v62 = vld [vmem:[%s6821_s8 + $0xac] sm:$0xf] }
  0xe5   : > { %5472 = vmatprep.subr.bf16.mxu1 %v6850_v3  ;;  %v4791_v5 = vcombine.low %v2354_v62, %v2355_v0 }
  0xe8   : > { %5473 = vmatpush3.bf16.msra.mxu1 %v6850_v3  ;;  %v5578_v3 = vpack.c.bf16 %v1012_v13, %v1011_v2  ;;  %v2361_v2 = vld [vmem:[%s6821_s8 + $0x11c] sm:$0xf] }
  0xe9   : > { %5474 = vmatprep.subr.bf16.mxu1 %v6859_v7 }
  0xea   : > { %5579 = vmatprep.subr.bf16.mxu0 %v5578_v3 }
  0xeb   : > { %5379 = vmatmul.mubr.bf16.gmra.mrb[72].mxu1 %v4743_v6  ;;  %5581 = vmatpush3.bf16.msra.mxu0 %v5578_v3  ;;  %v4792_v6 = vcombine.low %v2356_v63, %v2357_v4  ;;  %v7159_v4 = vld [vmem:[%s8684_s2] ss:$0 sm:$0xff] }
  0xec   : > { %5382 = vmatprep.mubr.bf16.mxu1 %v4744_v11  ;;  %5475 = vmatpush3.bf16.msra.mxu1 %v6859_v7  ;;  %v1013_v7 = vld [vmem:[%s8685_s3 + $0x50] sm:$0xff]  ;;  %v2358_v11 = vld [vmem:[%s6821_s8 + $0xec] sm:$0xf] }
  0xed   : > { %5476 = vmatprep.subr.bf16.mxu1 %v6866_v8  ;;  %v5582_v19 = vpack.c.bf16 %v1014_v18, %v1013_v7  ;;  %v4793_v15 = vcombine.low %v2358_v11, %v2359_v1  ;;  %v2362_v7 = vld [vmem:[%s6821_s8 + $0x12c] sm:$0xf]  ;;  %v2363_v18 = vld [vmem:[%s6821_s8 + $0x13c] sm:$0xf] }
  0xef   : > { %5583 = vmatprep.subr.bf16.mxu0 %v5582_v19 }
  0xf0   : > { %5477 = vmatpush3.bf16.msra.mxu1 %v6866_v8  ;;  %v1015_v8 = vld [vmem:[%s8685_s3 + $0x60] sm:$0xff]  ;;  %5585 = vmatpush3.bf16.msra.mxu0 %v5582_v19  ;;  %v2364_v19 = vld [vmem:[%s6821_s8 + $0x14c] sm:$0xf] }
  0xf1   : > { %5478 = vmatprep.subr.bf16.mxu1 %v6873_v9  ;;  %v5586_v25 = vpack.c.bf16 %v1016_v22, %v1015_v8  ;;  %v4795_v22 = vcombine.low %v2362_v7, %v2363_v18 }
  0xf3   : > { %5383 = vmatmul.mubr.bf16.gmra.mrb[76].mxu1 %v4745_v16  ;;  %5587 = vmatprep.subr.bf16.mxu0 %v5586_v25  ;;  %v4794_v16 = vcombine.low %v2360_v12, %v2361_v2 }
  0xf4   : > { %5386 = vmatprep.mubr.bf16.mxu1 %v4746_v17  ;;  %5479 = vmatpush3.bf16.msra.mxu1 %v6873_v9  ;;  %v4748_v9 = vcombine.low %v1682_v23, %v1683_v24  ;;  %v4796_v24 = vcombine.low %v2364_v19, %v2365_v20 }
  0xf5   : > { %5480 = vmatprep.subr.bf16.mxu1 %v6880_v10  ;;  %5589 = vmatpush3.bf16.msra.mxu0 %v5586_v25 }
  0xf6   : > { %5591 = vmatprep.subr.bf16.mxu0 %v5590_v29 }
  0xf8   : > { %5481 = vmatpush3.bf16.msra.mxu1 %v6880_v10  ;;  %v1686_v10 = vld [vmem:[%s6821_s8 + $0x188] sm:$0xf] }
  0xf9   : > { %5593 = vmatpush3.bf16.msra.mxu0 %v5590_v29  ;;  %v4750_v34 = vcombine.low %v1686_v10, %v1687_v32  ;;  %v4798_v32 = vcombine.low %v2368_v27, %v2369_v28 }
  0xfa   : > { %5595 = vmatprep.subr.bf16.mxu0 %v7051_v37 }
  0xfb   : > { %5387 = vmatmul.mubr.bf16.gmra.mrb[80].mxu1 %v4747_v26  ;;  %v2366_v26 = vld [vmem:[%s6821_s8 + $0x16c] sm:$0xf] }
  0xfc   : > { %5390 = vmatprep.mubr.bf16.mxu1 %v4748_v9  ;;  %v2367_v9 = vld [vmem:[%s6821_s8 + $0x17c] sm:$0xf] }
  0xfd   : > { %v4797_v31 = vcombine.low %v2366_v26, %v2367_v9  ;;  %v684_v26 = vld [vmem:[%s8685_s3 + $0x10] sm:$0xff]  ;;  %v685_v9 = vld [vmem:[%s8685_s3 + $0x18] sm:$0xff] }
 0x103   : > { %5391 = vmatmul.mubr.bf16.gmra.mrb[84].mxu1 %v4749_v33 }
 0x104   : > { %5394 = vmatprep.mubr.bf16.mxu1 %v4750_v34  ;;  %v2370_v34 = vld [vmem:[%s6821_s8 + $0x1ac] sm:$0xf] }
 0x105   : > { %v4799_v41 = vcombine.low %v2370_v34, %v2371_v35  ;;  %v686_v35 = vld [vmem:[%s8685_s3 + $0x20] sm:$0xff] }
 0x10b   : > { %5395 = vmatmul.mubr.bf16.gmra.mrb[88].mxu1 %v4751_v42 }
 0x10c   : > { %5398 = vmatprep.mubr.bf16.mxu1 %v4752_v43  ;;  %v4800_v43 = vcombine.low %v2372_v36, %v2373_v38  ;;  %v687_v36 = vld [vmem:[%s8685_s3 + $0x28] sm:$0xff] }
 0x113   : > { %5399 = vmatmul.mubr.bf16.gmra.mrb[92].mxu1 %v4753_v48 }
 0x114   : > { %5482 = vmatprep.mubr.bf16.mxu1 %v4786_v49  ;;  %v4801_v49 = vcombine.low %v2374_v45, %v2375_v46 }
 0x11b   : > { %5483 = vmatmul.mubr.bf16.vlgmr.msra.gmra.mrb[96].mxu1 %v4787_v54 }
 0x11c   : > { %5486 = vmatprep.mubr.bf16.mxu1 %v4788_v55 }
 0x123   : > { %5487 = vmatmul.mubr.bf16.gmra.mrb[100].mxu1 %v4789_v60 }
 0x124   : > { %5490 = vmatprep.mubr.bf16.mxu1 %v4790_v61 }
 0x12b   : > { %5491 = vmatmul.mubr.bf16.gmra.mrb[104].mxu1 %v4791_v5 }
 0x12c   : > { %5494 = vmatprep.mubr.bf16.mxu1 %v4792_v6 }
 0x12e   : > { %v7078_v13 = vpop.f32.mrb[0].mxu1 }
 0x12f   : > { %v7080_v14 = vpop.f32.mrb[1].mxu1 }
 0x130   : > { %v7082_v3 = vpop.f32.mrb[2].mxu1 }
 0x131   : > { %v7084_v17 = vpop.f32.mrb[3].mxu1 }
 0x133   : > { %5495 = vmatmul.mubr.bf16.gmra.mrb[108].mxu1 %v4793_v15 }
 0x134   : > { %5498 = vmatprep.mubr.bf16.mxu1 %v4794_v16 }
 0x136   : > { %v7090_v21 = vpop.f32.mrb[4].mxu1 }
 0x137   : > { %v7092_v8 = vpop.f32.mrb[5].mxu1 }
 0x138   : > { %v7094_v23 = vpop.f32.mrb[6].mxu1 }
 0x139   : > { %v7096_v25 = vpop.f32.mrb[7].mxu1 }
 0x13b   : > { %5499 = vmatmul.mubr.bf16.gmra.mrb[112].mxu1 %v4795_v22 }
 0x13c   : > { %5502 = vmatprep.mubr.bf16.mxu1 %v4796_v24 }
 0x13e   : > { %v7102_v29 = vpop.f32.mrb[8].mxu1 }
 0x13f   : > { %v7104_v30 = vpop.f32.mrb[9].mxu1 }
 0x140   : > { %v7106_v10 = vpop.f32.mrb[10].mxu1 }
 0x141   : > { %v7108_v33 = vpop.f32.mrb[11].mxu1 }
 0x143   : > { %5503 = vmatmul.mubr.bf16.gmra.mrb[116].mxu1 %v4797_v31  ;;  %v5598_v31 = vpack.c.bf16 %v685_v9, %v684_v26 }
 0x144   : > { %5506 = vmatprep.mubr.bf16.mxu1 %v4798_v32 }
 0x146   : > { %v7114_v39 = vpop.f32.mrb[12].mxu1 }
 0x147   : > { %v7116_v40 = vpop.f32.mrb[13].mxu1 }
 0x148   : > { %v7118_v42 = vpop.f32.mrb[14].mxu1 }
 0x149   : > { %v7120_v44 = vpop.f32.mrb[15].mxu1 }
 0x14b   : > { %5507 = vmatmul.mubr.bf16.gmra.mrb[120].mxu1 %v4799_v41 }
 0x14c   : > { %5510 = vmatprep.mubr.bf16.mxu1 %v4800_v43 }
 0x14e   : > { %v7124_v47 = vpop.f32.mrb[16].mxu1 }
 0x14f   : > { %v7126_v48 = vpop.f32.mrb[17].mxu1 }
 0x150   : > { %v7128_v50 = vpop.f32.mrb[18].mxu1 }
 0x151   : > { %v7130_v51 = vpop.f32.mrb[19].mxu1 }
 0x153   : > { %5511 = vmatmul.mubr.bf16.gmra.mrb[124].mxu1 %v4801_v49 }
 0x156   : > { %v7132_v52 = vpop.f32.mrb[20].mxu1 }
 0x157   : > { %v7134_v53 = vpop.f32.mrb[21].mxu1 }
 0x158   : > { %v7136_v54 = vpop.f32.mrb[22].mxu1 }
 0x159   : > { %v7138_v55 = vpop.f32.mrb[23].mxu1 }
 0x15e   : > { %v7140_v56 = vpop.f32.mrb[24].mxu1 }
 0x15f   : > { %v7142_v57 = vpop.f32.mrb[25].mxu1 }
 0x160   : > { %v7144_v58 = vpop.f32.mrb[26].mxu1 }
 0x161   : > { %v7146_v59 = vpop.f32.mrb[27].mxu1 }
 0x166   : > { %v7148_v60 = vpop.f32.mrb[28].mxu1 }
 0x167   : > { %v7150_v61 = vpop.f32.mrb[29].mxu1 }
 0x168   : > { %v7152_v62 = vpop.f32.mrb[30].mxu1 }
 0x169   : > { %v7154_v0 = vpop.f32.mrb[31].mxu1 }
 0x16e   : > { %v5196_v63 = vpop.f32.mrb[32].mxu1 }
 0x16f   : > { %v852_v5 = vpop.f32.mrb[33].mxu1  ;;  %v861_v1 = vadd.f32 %v5196_v63, %v7159_v4  ;;  %v5602_v63 = vpack.c.bf16 %v687_v36, %v686_v35 }
 0x170   : > { %v853_v6 = vadd.f32 %v7159_v4, %v852_v5  ;;  %v5197_v11 = vpop.f32.mrb[34].mxu1 }
 0x171   : > { %v855_v12 = vpop.f32.mrb[35].mxu1  ;;  %v864_v15 = vadd.f32 %v5197_v11, %v7159_v4  ;;  %v688_v11 = vld [vmem:[%s8685_s3 + $0x30] sm:$0xff] }
 0x172   : > { %5990 = vtanh.f32 %v853_v6  ;;  %v856_v2 = vadd.f32 %v7159_v4, %v855_v12 }
 0x174   : > { %5992 = vtanh.f32 %v856_v2 }
 0x175   : > { %5994 = vtanh.f32 %v861_v1  ;;  %v689_v1 = vld [vmem:[%s8685_s3 + $0x38] sm:$0xff] }
 0x176   : > { %v5200_v16 = vpop.f32.mrb[36].mxu1  ;;  %5996 = vtanh.f32 %v864_v15  ;;  %v5606_v2 = vpack.c.bf16 %v689_v1, %v688_v11 }
 0x177   : > { %v868_v7 = vpop.f32.mrb[37].mxu1  ;;  %v877_v20 = vadd.f32 %v5200_v16, %v7159_v4 }
 0x178   : > { %v869_v18 = vadd.f32 %v7159_v4, %v868_v7  ;;  %v5201_v19 = vpop.f32.mrb[38].mxu1  ;;  %v1983_v7 = vld [vmem:[%s8685_s3 + $0x80] sm:$0xff] }
 0x179   : > { %v871_v22 = vpop.f32.mrb[39].mxu1  ;;  %v880_v28 = vadd.f32 %v5201_v19, %v7159_v4 }
 0x17a   : > { %5998 = vtanh.f32 %v869_v18  ;;  %v872_v24 = vadd.f32 %v7159_v4, %v871_v22  ;;  %v1984_v18 = vld [vmem:[%s8685_s3 + $0x88] sm:$0xff] }
 0x17c   : > { %v5991_v27 = vpop.eup %5990  ;;  %6000 = vtanh.f32 %v872_v24 }
 0x17d   : > { %6002 = vtanh.f32 %v877_v20  ;;  %5242 = vmatprep.mubr.msk.f32.mxu0 %vm1019_vm0, %v5991_v27  ;;  %v7207_v27 = vpack.c.bf16 %v1984_v18, %v1983_v7 }
 0x17e   : > { %v5993_v32 = vpop.eup %5992  ;;  %v5204_v34 = vpop.f32.mrb[40].mxu1  ;;  %6004 = vtanh.f32 %v880_v28 }
 0x17f   : > { %v5995_v38 = vpop.eup %5994  ;;  %v884_v41 = vpop.f32.mrb[41].mxu1  ;;  %5243 = vmatmul.mubr.msk.f32.vlgmr.msra.gmra.mrb[0].mxu0 %vm1019_vm0, %v5993_v32  ;;  %v893_v46 = vadd.f32 %v5204_v34, %v7159_v4 }
 0x180   : > { %v885_v43 = vadd.f32 %v7159_v4, %v884_v41  ;;  %v5205_v45 = vpop.f32.mrb[42].mxu1  ;;  %5245 = vmatprep.mubr.msk.f32.mxu0 %vm1019_vm0, %v5995_v38  ;;  %5597 = vmatpush3.bf16.msra.mxu0 %v7051_v37  ;;  %v5997_v5 = vpop.eup %5996 }
 0x181   : > { %v887_v49 = vpop.f32.mrb[43].mxu1  ;;  %5599 = vmatprep.subr.bf16.mxu0 %v5598_v31  ;;  %v896_v12 = vadd.f32 %v5205_v45, %v7159_v4 }
 0x182   : > { %6006 = vtanh.f32 %v885_v43  ;;  %v888_v6 = vadd.f32 %v7159_v4, %v887_v49 }
 0x183   : > { %5246 = vmatmul.mubr.msk.f32.gmra.mrb[2].mxu0 %vm1019_vm0, %v5997_v5 }
 0x184   : > { %v5999_v37 = vpop.eup %5998  ;;  %6008 = vtanh.f32 %v888_v6  ;;  %5601 = vmatpush3.bf16.msra.mxu0 %v5598_v31 }
 0x185   : > { %6010 = vtanh.f32 %v893_v46  ;;  %5248 = vmatprep.mubr.msk.f32.mxu0 %vm1019_vm0, %v5999_v37  ;;  %5603 = vmatprep.subr.bf16.mxu0 %v5602_v63 }
 0x186   : > { %v6001_v15 = vpop.eup %6000  ;;  %v5208_v16 = vpop.f32.mrb[44].mxu1  ;;  %6012 = vtanh.f32 %v896_v12 }
 0x187   : > { %v6003_v19 = vpop.eup %6002  ;;  %v900_v20 = vpop.f32.mrb[45].mxu1  ;;  %5249 = vmatmul.mubr.msk.f32.gmra.mrb[4].mxu0 %vm1019_vm0, %v6001_v15  ;;  %v909_v26 = vadd.f32 %v5208_v16, %v7159_v4 }
 0x188   : > { %v901_v22 = vadd.f32 %v7159_v4, %v900_v20  ;;  %v5209_v24 = vpop.f32.mrb[46].mxu1  ;;  %5251 = vmatprep.mubr.msk.f32.mxu0 %vm1019_vm0, %v6003_v19  ;;  %5605 = vmatpush3.bf16.msra.mxu0 %v5602_v63  ;;  %v6005_v28 = vpop.eup %6004 }
 0x189   : > { %v903_v9 = vpop.f32.mrb[47].mxu1  ;;  %5607 = vmatprep.subr.bf16.mxu0 %v5606_v2  ;;  %v912_v34 = vadd.f32 %v5209_v24, %v7159_v4 }
 0x18a   : > { %6014 = vtanh.f32 %v901_v22  ;;  %v904_v31 = vadd.f32 %v7159_v4, %v903_v9 }
 0x18b   : > { %5252 = vmatmul.mubr.msk.f32.gmra.mrb[6].mxu0 %vm1019_vm0, %v6005_v28 }
 0x18c   : > { %v6007_v32 = vpop.eup %6006  ;;  %6016 = vtanh.f32 %v904_v31  ;;  %5609 = vmatpush3.bf16.msra.mxu0 %v5606_v2 }
 0x18d   : > { %6018 = vtanh.f32 %v909_v26  ;;  %5254 = vmatprep.mubr.msk.f32.mxu0 %vm1019_vm0, %v6007_v32  ;;  %5611 = vmatprep.subr.bf16.mxu0 %v7207_v27 }
 0x18e   : > { %v6009_v35 = vpop.eup %6008  ;;  %v5212_v36 = vpop.f32.mrb[48].mxu1  ;;  %6020 = vtanh.f32 %v912_v34 }
 0x18f   : > { %v6011_v38 = vpop.eup %6010  ;;  %v916_v41 = vpop.f32.mrb[49].mxu1  ;;  %5255 = vmatmul.mubr.msk.f32.gmra.mrb[8].mxu0 %vm1019_vm0, %v6009_v35  ;;  %v925_v46 = vadd.f32 %v5212_v36, %v7159_v4 }
 0x190   : > { %v917_v43 = vadd.f32 %v7159_v4, %v916_v41  ;;  %v5213_v45 = vpop.f32.mrb[50].mxu1  ;;  %5257 = vmatprep.mubr.msk.f32.mxu0 %vm1019_vm0, %v6011_v38  ;;  %v6013_v63 = vpop.eup %6012 }
 0x191   : > { %v919_v49 = vpop.f32.mrb[51].mxu1  ;;  %v928_v11 = vadd.f32 %v5213_v45, %v7159_v4 }
 0x192   : > { %6022 = vtanh.f32 %v917_v43  ;;  %v920_v5 = vadd.f32 %v7159_v4, %v919_v49 }
 0x193   : > { %5258 = vmatmul.mubr.msk.f32.gmra.mrb[10].mxu0 %vm1019_vm0, %v6013_v63 }
 0x194   : > { %v6015_v6 = vpop.eup %6014  ;;  %6024 = vtanh.f32 %v920_v5 }
 0x195   : > { %6026 = vtanh.f32 %v925_v46  ;;  %5260 = vmatprep.mubr.msk.f32.mxu0 %vm1019_vm0, %v6015_v6 }
 0x196   : > { %v6017_v1 = vpop.eup %6016  ;;  %v5216_v37 = vpop.f32.mrb[52].mxu1  ;;  %6028 = vtanh.f32 %v928_v11 }
 0x197   : > { %v6019_v12 = vpop.eup %6018  ;;  %v932_v2 = vpop.f32.mrb[53].mxu1  ;;  %5261 = vmatmul.mubr.msk.f32.gmra.mrb[12].mxu0 %vm1019_vm0, %v6017_v1  ;;  %v941_v7 = vadd.f32 %v5216_v37, %v7159_v4 }
 0x198   : > { %v933_v15 = vadd.f32 %v7159_v4, %v932_v2  ;;  %v5217_v16 = vpop.f32.mrb[54].mxu1  ;;  %5263 = vmatprep.mubr.msk.f32.mxu0 %vm1019_vm0, %v6019_v12  ;;  %v6021_v19 = vpop.eup %6020 }
 0x199   : > { %v935_v18 = vpop.f32.mrb[55].mxu1  ;;  %v944_v24 = vadd.f32 %v5217_v16, %v7159_v4 }
 0x19a   : > { %6030 = vtanh.f32 %v933_v15  ;;  %v936_v20 = vadd.f32 %v7159_v4, %v935_v18 }
 0x19b   : > { %5264 = vmatmul.mubr.msk.f32.gmra.mrb[14].mxu0 %vm1019_vm0, %v6021_v19 }
 0x19c   : > { %v6023_v22 = vpop.eup %6022  ;;  %6032 = vtanh.f32 %v936_v20 }
 0x19d   : > { %6034 = vtanh.f32 %v941_v7  ;;  %5266 = vmatprep.mubr.msk.f32.mxu0 %vm1019_vm0, %v6023_v22  ;;  %v524_v7 = vadd.f32 %v7159_v4, %v7080_v14  ;;  %v532_v14 = vadd.f32 %v7078_v13, %v7159_v4 }
 0x19e   : > { %v6025_v26 = vpop.eup %6024  ;;  %v5220_v9 = vpop.f32.mrb[56].mxu1  ;;  %6036 = vtanh.f32 %v944_v24  ;;  %v527_v24 = vadd.f32 %v7159_v4, %v7084_v17  ;;  %v540_v17 = vadd.f32 %v7159_v4, %v7092_v8  ;;  %v548_v8 = vadd.f32 %v7090_v21, %v7159_v4 }
 0x19f   : > { %v6027_v28 = vpop.eup %6026  ;;  %v948_v31 = vpop.f32.mrb[57].mxu1  ;;  %5267 = vmatmul.mubr.msk.f32.gmra.mrb[16].mxu0 %vm1019_vm0, %v6025_v26  ;;  %v957_v35 = vadd.f32 %v5220_v9, %v7159_v4  ;;  %v556_v21 = vadd.f32 %v7159_v4, %v7104_v30  ;;  %v559_v30 = vadd.f32 %v7159_v4, %v7108_v33  ;;  %v1990_v33 = vld [vmem:[%s8685_s3 + $0xb8] sm:$0xff] }
 0x1a0   : > { %v949_v32 = vadd.f32 %v7159_v4, %v948_v31  ;;  %v5221_v34 = vpop.f32.mrb[58].mxu1  ;;  %5269 = vmatprep.mubr.msk.f32.mxu0 %vm1019_vm0, %v6027_v28  ;;  %v6029_v38 = vpop.eup %6028 }
 0x1a1   : > { %v951_v36 = vpop.f32.mrb[59].mxu1  ;;  %v960_v45 = vadd.f32 %v5221_v34, %v7159_v4 }
 0x1a2   : > { %6038 = vtanh.f32 %v949_v32  ;;  %v952_v41 = vadd.f32 %v7159_v4, %v951_v36  ;;  %v535_v32 = vadd.f32 %v7082_v3, %v7159_v4 }
 0x1a3   : > { %5270 = vmatmul.mubr.msk.f32.gmra.mrb[18].mxu0 %vm1019_vm0, %v6029_v38  ;;  %v543_v38 = vadd.f32 %v7159_v4, %v7096_v25 }
 0x1a4   : > { %v6031_v43 = vpop.eup %6030  ;;  %6040 = vtanh.f32 %v952_v41 }
 0x1a5   : > { %6042 = vtanh.f32 %v957_v35  ;;  %5272 = vmatprep.mubr.msk.f32.mxu0 %vm1019_vm0, %v6031_v43 }
 0x1a6   : > { %v6033_v46 = vpop.eup %6032  ;;  %v5224_v49 = vpop.f32.mrb[60].mxu1  ;;  %6044 = vtanh.f32 %v960_v45  ;;  %v1985_v45 = vld [vmem:[%s8685_s3 + $0x90] sm:$0xff] }
 0x1a7   : > { %v6035_v63 = vpop.eup %6034  ;;  %v964_v5 = vpop.f32.mrb[61].mxu1  ;;  %5273 = vmatmul.mubr.msk.f32.gmra.mrb[20].mxu0 %vm1019_vm0, %v6033_v46  ;;  %v973_v1 = vadd.f32 %v5224_v49, %v7159_v4  ;;  %v1986_v46 = vld [vmem:[%s8685_s3 + $0x98] sm:$0xff]  ;;  %v551_v49 = vadd.f32 %v7094_v23, %v7159_v4 }
 0x1a8   : > { %v965_v6 = vadd.f32 %v7159_v4, %v964_v5  ;;  %v5225_v11 = vpop.f32.mrb[62].mxu1  ;;  %5275 = vmatprep.mubr.msk.f32.mxu0 %vm1019_vm0, %v6035_v63  ;;  %v6037_v12 = vpop.eup %6036  ;;  %v5614_v63 = vpack.c.bf16 %v1986_v46, %v1985_v45 }
 0x1a9   : > { %v967_v37 = vpop.f32.mrb[63].mxu1  ;;  %v976_v16 = vadd.f32 %v5225_v11, %v7159_v4  ;;  %v1988_v11 = vld [vmem:[%s8685_s3 + $0xa8] sm:$0xff] }
 0x1aa   : > { %6046 = vtanh.f32 %v965_v6  ;;  %v968_v2 = vadd.f32 %v7159_v4, %v967_v37  ;;  %v1987_v6 = vld [vmem:[%s8685_s3 + $0xa0] sm:$0xff] }
 0x1ab   : > { %5276 = vmatmul.mubr.msk.f32.gmra.mrb[22].mxu0 %vm1019_vm0, %v6037_v12 }
 0x1ac   : > { %v6039_v15 = vpop.eup %6038  ;;  %6048 = vtanh.f32 %v968_v2  ;;  %v564_v2 = vadd.f32 %v7102_v29, %v7159_v4  ;;  %v567_v29 = vadd.f32 %v7106_v10, %v7159_v4 }
 0x1ad   : > { %6050 = vtanh.f32 %v973_v1  ;;  %5278 = vmatprep.mubr.msk.f32.mxu0 %vm1019_vm0, %v6039_v15  ;;  %v5618_v15 = vpack.c.bf16 %v1988_v11, %v1987_v6 }
 0x1ae   : > { %v6041_v18 = vpop.eup %6040  ;;  %v7248_v19 = vpop.f32.mrb[64].mxu1  ;;  %6052 = vtanh.f32 %v976_v16 }
 0x1af   : > { %v6043_v20 = vpop.eup %6042  ;;  %5279 = vmatmul.mubr.msk.f32.gmra.mrb[24].mxu0 %vm1019_vm0, %v6041_v18  ;;  %v7251_v22 = vpop.f32.mrb[65].mxu1  ;;  %6054 = vtanh.f32 %v524_v7  ;;  %v1989_v18 = vld [vmem:[%s8685_s3 + $0xb0] sm:$0xff] }
 0x1b0   : > { %5281 = vmatprep.mubr.msk.f32.mxu0 %vm1019_vm0, %v6043_v20  ;;  %v7256_v26 = vpop.f32.mrb[66].mxu1  ;;  %v6045_v28 = vpop.eup %6044  ;;  %6056 = vtanh.f32 %v527_v24  ;;  %v572_v20 = vadd.f32 %v7159_v4, %v7116_v40  ;;  %v5622_v24 = vpack.c.bf16 %v1990_v33, %v1989_v18  ;;  %v575_v40 = vadd.f32 %v7159_v4, %v7120_v44 }
 0x1b1   : > { %v7260_v9 = vpop.f32.mrb[67].mxu1  ;;  %6058 = vtanh.f32 %v532_v14  ;;  %v583_v44 = vadd.f32 %v7118_v42, %v7159_v4  ;;  %v591_v42 = vadd.f32 %v7159_v4, %v7130_v51  ;;  %v604_v51 = vadd.f32 %v7159_v4, %v7134_v53 }
 0x1b2   : > { %6060 = vtanh.f32 %v535_v32  ;;  %v612_v18 = vadd.f32 %v7132_v52, %v7159_v4 }
 0x1b3   : > { %5282 = vmatmul.mubr.msk.f32.gmra.mrb[26].mxu0 %vm1019_vm0, %v6045_v28  ;;  %6062 = vtanh.f32 %v540_v17  ;;  %v2665_v28 = vld [vmem:[%s8685_s3 + $0xc0] sm:$0xff] }
 0x1b4   : > { %v6047_v31 = vpop.eup %6046  ;;  %6064 = vtanh.f32 %v543_v38 }
 0x1b5   : > { %5284 = vmatprep.mubr.msk.f32.mxu0 %vm1019_vm0, %v6047_v31  ;;  %6066 = vtanh.f32 %v548_v8  ;;  %v2666_v31 = vld [vmem:[%s8685_s3 + $0xc8] sm:$0xff] }
 0x1b6   : > { %v6049_v34 = vpop.eup %6048  ;;  %v7268_v35 = vpop.f32.mrb[68].mxu1  ;;  %6068 = vtanh.f32 %v551_v49  ;;  %v7345_v38 = vpack.c.bf16 %v2666_v31, %v2665_v28  ;;  %v623_v28 = vadd.f32 %v7159_v4, %v7146_v59  ;;  %v628_v31 = vadd.f32 %v7140_v56, %v7159_v4 }
 0x1b7   : > { %v6051_v13 = vpop.eup %6050  ;;  %5285 = vmatmul.mubr.msk.f32.gmra.mrb[28].mxu0 %vm1019_vm0, %v6049_v34  ;;  %v7271_v36 = vpop.f32.mrb[69].mxu1  ;;  %6070 = vtanh.f32 %v556_v21  ;;  %v636_v59 = vadd.f32 %v7159_v4, %v7150_v61 }
 0x1b8   : > { %5287 = vmatprep.mubr.msk.f32.mxu0 %vm1019_vm0, %v6051_v13  ;;  %v7276_v3 = vpop.f32.mrb[70].mxu1  ;;  %v6053_v43 = vpop.eup %6052  ;;  %6072 = vtanh.f32 %v559_v30  ;;  %v580_v13 = vadd.f32 %v7114_v39, %v7159_v4  ;;  %v588_v39 = vadd.f32 %v7159_v4, %v7126_v48  ;;  %v596_v48 = vadd.f32 %v7124_v47, %v7159_v4 }
 0x1b9   : > { %v7280_v41 = vpop.f32.mrb[71].mxu1  ;;  %v6055_v25 = vpop.eup %6054  ;;  %6074 = vtanh.f32 %v564_v2 }
 0x1ba   : > { %v6057_v5 = vpop.eup %6056  ;;  %6076 = vtanh.f32 %v567_v29  ;;  %v615_v29 = vadd.f32 %v7136_v54, %v7159_v4 }
 0x1bb   : > { %5288 = vmatmul.mubr.msk.f32.gmra.mrb[30].mxu0 %vm1019_vm0, %v6053_v43  ;;  %v6059_v23 = vpop.eup %6058  ;;  %6078 = vtanh.f32 %v572_v20 }
 0x1bc   : > { %5306 = vmatprep.mubr.msk.f32.mxu0 %vm1019_vm0, %v6055_v25  ;;  %v6061_v7 = vpop.eup %6060  ;;  %6080 = vtanh.f32 %v575_v40 }
 0x1bd   : > { %6082 = vtanh.f32 %v580_v13  ;;  %v631_v13 = vadd.f32 %v7144_v58, %v7159_v4 }
 0x1be   : > { %v7300_v1 = vpop.f32.mrb[72].mxu1  ;;  %6084 = vtanh.f32 %v583_v44 }
 0x1bf   : > { %5307 = vmatmul.mubr.msk.f32.vlgmr.msra.gmra.mrb[0].mxu0 %vm1019_vm0, %v6057_v5  ;;  %v7303_v37 = vpop.f32.mrb[73].mxu1  ;;  %6086 = vtanh.f32 %v588_v39  ;;  %v639_v39 = vadd.f32 %v7159_v4, %v7154_v0  ;;  %v647_v0 = vadd.f32 %v7152_v62, %v7159_v4 }
 0x1c0   : > { %5309 = vmatprep.mubr.msk.f32.mxu0 %vm1019_vm0, %v6059_v23  ;;  %5613 = vmatpush3.bf16.msra.mxu0 %v7207_v27  ;;  %v7309_v12 = vpop.f32.mrb[74].mxu1  ;;  %v6063_v27 = vpop.eup %6062  ;;  %v599_v23 = vadd.f32 %v7128_v50, %v7159_v4  ;;  %6088 = vtanh.f32 %v591_v42 }
 0x1c1   : > { %5615 = vmatprep.subr.bf16.mxu0 %v5614_v63  ;;  %v7313_v16 = vpop.f32.mrb[75].mxu1  ;;  %v6065_v14 = vpop.eup %6064  ;;  %6090 = vtanh.f32 %v596_v48  ;;  %v1825_v48 = vadd.f32 %v7159_v4, %v7251_v22  ;;  %v1828_v22 = vadd.f32 %v7159_v4, %v7260_v9 }
 0x1c2   : > { %v6067_v32 = vpop.eup %6066  ;;  %6092 = vtanh.f32 %v599_v23 }
 0x1c3   : > { %5310 = vmatmul.mubr.msk.f32.gmra.mrb[2].mxu0 %vm1019_vm0, %v6061_v7  ;;  %v6069_v43 = vpop.eup %6068  ;;  %v607_v7 = vadd.f32 %v7159_v4, %v7138_v55  ;;  %6094 = vtanh.f32 %v604_v51  ;;  %v620_v55 = vadd.f32 %v7159_v4, %v7142_v57  ;;  %v1833_v51 = vadd.f32 %v7248_v19, %v7159_v4 }
 0x1c4   : > { %5312 = vmatprep.mubr.msk.f32.mxu0 %vm1019_vm0, %v6063_v27  ;;  %5617 = vmatpush3.bf16.msra.mxu0 %v5614_v63  ;;  %v6071_v45 = vpop.eup %6070 }
 0x1c5   : > { %5619 = vmatprep.subr.bf16.mxu0 %v5618_v15  ;;  %v6073_v46 = vpop.eup %6072  ;;  %6096 = vtanh.f32 %v607_v7 }
 0x1c6   : > { %v7333_v10 = vpop.f32.mrb[76].mxu1  ;;  %v6075_v49 = vpop.eup %6074  ;;  %6098 = vtanh.f32 %v612_v18  ;;  %v1841_v18 = vadd.f32 %v7159_v4, %v7271_v36  ;;  %v1844_v36 = vadd.f32 %v7159_v4, %v7280_v41  ;;  %v1857_v41 = vadd.f32 %v7159_v4, %v7303_v37 }
 0x1c7   : > { %5313 = vmatmul.mubr.msk.f32.gmra.mrb[4].mxu0 %vm1019_vm0, %v6065_v14  ;;  %v7336_v17 = vpop.f32.mrb[77].mxu1  ;;  %v6077_v6 = vpop.eup %6076  ;;  %6100 = vtanh.f32 %v615_v29 }
 0x1c8   : > { %5315 = vmatprep.mubr.msk.f32.mxu0 %vm1019_vm0, %v6067_v32  ;;  %5621 = vmatpush3.bf16.msra.mxu0 %v5618_v15  ;;  %v7341_v34 = vpop.f32.mrb[78].mxu1  ;;  %v6079_v11 = vpop.eup %6078  ;;  %6102 = vtanh.f32 %v620_v55 }
 0x1c9   : > { %5623 = vmatprep.subr.bf16.mxu0 %v5622_v24  ;;  %v7347_v8 = vpop.f32.mrb[79].mxu1  ;;  %v6081_v30 = vpop.eup %6080  ;;  %6104 = vtanh.f32 %v623_v28 }
 0x1ca   : > { %v6083_v47 = vpop.eup %6082  ;;  %6106 = vtanh.f32 %v628_v31  ;;  %v2667_v31 = vld [vmem:[%s8685_s3 + $0xd0] sm:$0xff] }
 0x1cb   : > { %5316 = vmatmul.mubr.msk.f32.gmra.mrb[6].mxu0 %vm1019_vm0, %v6069_v43  ;;  %v6085_v33 = vpop.eup %6084  ;;  %6108 = vtanh.f32 %v631_v13 }
 0x1cc   : > { %5318 = vmatprep.mubr.msk.f32.mxu0 %vm1019_vm0, %v6071_v45  ;;  %5625 = vmatpush3.bf16.msra.mxu0 %v5622_v24  ;;  %v6087_v27 = vpop.eup %6086  ;;  %6110 = vtanh.f32 %v636_v59  ;;  %v2669_v59 = vld [vmem:[%s8685_s3 + $0xe0] sm:$0xff] }
 0x1cd   : > { %5627 = vmatprep.subr.bf16.mxu0 %v7345_v38  ;;  %v6089_v20 = vpop.eup %6088  ;;  %6112 = vtanh.f32 %v639_v39  ;;  %v1860_v39 = vadd.f32 %v7159_v4, %v7313_v16  ;;  %v2672_v16 = vld [vmem:[%s8685_s3 + $0xf8] sm:$0xff] }
 0x1ce   : > { %v7356_v25 = vpop.f32.mrb[80].mxu1  ;;  %v6091_v52 = vpop.eup %6090 }
 0x1cf   : > { %5319 = vmatmul.mubr.msk.f32.gmra.mrb[8].mxu0 %vm1019_vm0, %v6073_v46  ;;  %v7359_v21 = vpop.f32.mrb[81].mxu1  ;;  %v6093_v32 = vpop.eup %6092  ;;  %v644_v46 = vadd.f32 %v7148_v60, %v7159_v4 }
 0x1d0   : > { %5321 = vmatprep.mubr.msk.f32.mxu0 %vm1019_vm0, %v6075_v49  ;;  %v7364_v63 = vpop.f32.mrb[82].mxu1  ;;  %v6095_v40 = vpop.eup %6094 }
 0x1d1   : > { %v7368_v5 = vpop.f32.mrb[83].mxu1  ;;  %v6097_v43 = vpop.eup %6096  ;;  %6114 = vtanh.f32 %v644_v46 }
 0x1d2   : > { %v6099_v56 = vpop.eup %6098  ;;  %6116 = vtanh.f32 %v1825_v48 }
 0x1d3   : > { %5322 = vmatmul.mubr.msk.f32.gmra.mrb[10].mxu0 %vm1019_vm0, %v6077_v6  ;;  %v6101_v49 = vpop.eup %6100  ;;  %6118 = vtanh.f32 %v647_v0 }
 0x1d4   : > { %5324 = vmatprep.mubr.msk.f32.mxu0 %vm1019_vm0, %v6079_v11  ;;  %v6103_v42 = vpop.eup %6102  ;;  %6120 = vtanh.f32 %v1828_v22 }
 0x1d5   : > { %v6105_v6 = vpop.eup %6104  ;;  %6122 = vtanh.f32 %v1833_v51 }
 0x1d6   : > { %v7376_v2 = vpop.f32.mrb[84].mxu1  ;;  %v6107_v60 = vpop.eup %6106  ;;  %6124 = vtanh.f32 %v1841_v18 }
 0x1d7   : > { %5325 = vmatmul.mubr.msk.f32.gmra.mrb[12].mxu0 %vm1019_vm0, %v6081_v30  ;;  %v7379_v15 = vpop.f32.mrb[85].mxu1 }
 0x1d8   : > { %5327 = vmatprep.mubr.msk.f32.mxu0 %vm1019_vm0, %v6083_v47  ;;  %v7384_v50 = vpop.f32.mrb[86].mxu1  ;;  %v6109_v47 = vpop.eup %6108 }
 0x1d9   : > { %v7388_v53 = vpop.f32.mrb[87].mxu1  ;;  %v6111_v7 = vpop.eup %6110 }
 0x1da   : > { %v6113_v9 = vpop.eup %6112 }
 0x1db   : > { %5328 = vmatmul.mubr.msk.f32.gmra.mrb[14].mxu0 %vm1019_vm0, %v6085_v33  ;;  %v1836_v33 = vadd.f32 %v7256_v26, %v7159_v4  ;;  %v6115_v19 = vpop.eup %6114 }
 0x1dc   : > { %5330 = vmatprep.mubr.msk.f32.mxu0 %vm1019_vm0, %v6087_v27  ;;  %v6117_v55 = vpop.eup %6116 }
 0x1dd   : > { %6126 = vtanh.f32 %v1836_v33  ;;  %v6119_v28 = vpop.eup %6118 }
 0x1de   : > { %v7396_v24 = vpop.f32.mrb[88].mxu1  ;;  %6128 = vtanh.f32 %v1844_v36  ;;  %v6121_v13 = vpop.eup %6120 }
 0x1df   : > { %5331 = vmatmul.mubr.msk.f32.gmra.mrb[16].mxu0 %vm1019_vm0, %v6089_v20  ;;  %v7399_v14 = vpop.f32.mrb[89].mxu1  ;;  %v1849_v20 = vadd.f32 %v7268_v35, %v7159_v4  ;;  %v6123_v37 = vpop.eup %6122 }
 0x1e0   : > { %5333 = vmatprep.mubr.msk.f32.mxu0 %vm1019_vm0, %v6091_v52  ;;  %v7404_v54 = vpop.f32.mrb[90].mxu1 }
 0x1e1   : > { %v7408_v57 = vpop.f32.mrb[91].mxu1  ;;  %6130 = vtanh.f32 %v1849_v20 }
 0x1e2   : > { %6132 = vtanh.f32 %v1857_v41  ;;  %v1897_v41 = vadd.f32 %v7356_v25, %v7159_v4 }
 0x1e3   : > { %5334 = vmatmul.mubr.msk.f32.gmra.mrb[18].mxu0 %vm1019_vm0, %v6093_v32  ;;  %v2668_v32 = vld [vmem:[%s8685_s3 + $0xd8] sm:$0xff] }
 0x1e4   : > { %5336 = vmatprep.mubr.msk.f32.mxu0 %vm1019_vm0, %v6095_v40  ;;  %v1852_v40 = vadd.f32 %v7276_v3, %v7159_v4  ;;  %v5630_v35 = vpack.c.bf16 %v2668_v32, %v2667_v31 }
 0x1e6   : > { %v7416_v45 = vpop.f32.mrb[92].mxu1  ;;  %6134 = vtanh.f32 %v1852_v40 }
 0x1e7   : > { %5337 = vmatmul.mubr.msk.f32.gmra.mrb[20].mxu0 %vm1019_vm0, %v6097_v43  ;;  %v7419_v44 = vpop.f32.mrb[93].mxu1  ;;  %v2670_v43 = vld [vmem:[%s8685_s3 + $0xe8] sm:$0xff]  ;;  %6136 = vtanh.f32 %v1860_v39 }
 0x1e8   : > { %5339 = vmatprep.mubr.msk.f32.mxu0 %vm1019_vm0, %v6099_v56  ;;  %v7424_v58 = vpop.f32.mrb[94].mxu1  ;;  %v5634_v48 = vpack.c.bf16 %v2670_v43, %v2669_v59  ;;  %v1900_v59 = vadd.f32 %v7364_v63, %v7159_v4 }
 0x1e9   : > { %v7428_v61 = vpop.f32.mrb[95].mxu1 }
 0x1eb   : > { %5340 = vmatmul.mubr.msk.f32.gmra.mrb[22].mxu0 %vm1019_vm0, %v6101_v49  ;;  %v6125_v49 = vpop.eup %6124 }
 0x1ec   : > { %5342 = vmatprep.mubr.msk.f32.mxu0 %vm1019_vm0, %v6103_v42  ;;  %v1865_v42 = vadd.f32 %v7300_v1, %v7159_v4  ;;  %v1868_v1 = vadd.f32 %v7309_v12, %v7159_v4  ;;  %v1876_v12 = vadd.f32 %v7159_v4, %v7347_v8  ;;  %v1884_v8 = vadd.f32 %v7341_v34, %v7159_v4 }
 0x1ee   : > { %v7436_v11 = vpop.f32.mrb[96].mxu1  ;;  %6138 = vtanh.f32 %v1865_v42 }
 0x1ef   : > { %5343 = vmatmul.mubr.msk.f32.gmra.mrb[24].mxu0 %vm1019_vm0, %v6105_v6  ;;  %v7439_v23 = vpop.f32.mrb[97].mxu1  ;;  %v6127_v6 = vpop.eup %6126 }
 0x1f0   : > { %5345 = vmatprep.mubr.msk.f32.mxu0 %vm1019_vm0, %v6107_v60  ;;  %v7444_v62 = vpop.f32.mrb[98].mxu1  ;;  %v2671_v60 = vld [vmem:[%s8685_s3 + $0xf0] sm:$0xff]  ;;  %v6129_v51 = vpop.eup %6128 }
 0x1f1   : > { %v7448_v30 = vpop.f32.mrb[99].mxu1  ;;  %v5638_v22 = vpack.c.bf16 %v2672_v16, %v2671_v60  ;;  %v1916_v60 = vadd.f32 %v7384_v50, %v7159_v4 }
 0x1f3   : > { %5346 = vmatmul.mubr.msk.f32.gmra.mrb[26].mxu0 %vm1019_vm0, %v6109_v47 }
 0x1f4   : > { %5348 = vmatprep.mubr.msk.f32.mxu0 %vm1019_vm0, %v6111_v7  ;;  %v6131_v7 = vpop.eup %6130 }
 0x1f5   : > { %v6133_v33 = vpop.eup %6132 }
 0x1f6   : > { %v7456_v27 = vpop.f32.mrb[100].mxu1  ;;  %v6135_v36 = vpop.eup %6134 }
 0x1f7   : > { %5349 = vmatmul.mubr.msk.f32.gmra.mrb[28].mxu0 %vm1019_vm0, %v6113_v9  ;;  %v7459_v29 = vpop.f32.mrb[101].mxu1  ;;  %v1881_v9 = vadd.f32 %v7333_v10, %v7159_v4  ;;  %v6137_v20 = vpop.eup %6136 }
 0x1f8   : > { %5351 = vmatprep.mubr.msk.f32.mxu0 %vm1019_vm0, %v6115_v19  ;;  %v7464_v26 = vpop.f32.mrb[102].mxu1  ;;  %v6139_v10 = vpop.eup %6138 }
 0x1f9   : > { %v7468_v52 = vpop.f32.mrb[103].mxu1 }
 0x1fb   : > { %5352 = vmatmul.mubr.msk.f32.gmra.mrb[30].mxu0 %vm1019_vm0, %v6119_v28 }
 0x1fc   : > { %5418 = vmatprep.mubr.msk.f32.mxu0 %vm1019_vm0, %v6117_v55  ;;  %v1889_v55 = vadd.f32 %v7159_v4, %v7359_v21  ;;  %v1892_v21 = vadd.f32 %v7159_v4, %v7368_v5 }
 0x1fe   : > { %v7488_v56 = vpop.f32.mrb[104].mxu1 }
 0x1ff   : > { %5419 = vmatmul.mubr.msk.f32.vlgmr.msra.gmra.mrb[0].mxu0 %vm1019_vm0, %v6121_v13  ;;  %v7491_v3 = vpop.f32.mrb[105].mxu1  ;;  %v1905_v13 = vadd.f32 %v7159_v4, %v7379_v15  ;;  %v1908_v15 = vadd.f32 %v7159_v4, %v7388_v53 }
 0x200   : > { %5421 = vmatprep.mubr.msk.f32.mxu0 %vm1019_vm0, %v6123_v37  ;;  %5629 = vmatpush3.bf16.msra.mxu0 %v7345_v38  ;;  %v7497_v46 = vpop.f32.mrb[106].mxu1  ;;  %v1873_v38 = vadd.f32 %v7159_v4, %v7336_v17 }
 0x201   : > { %5631 = vmatprep.subr.bf16.mxu0 %v5630_v35  ;;  %v7501_v0 = vpop.f32.mrb[107].mxu1 }
 0x202   : > { %6140 = vtanh.f32 %v1873_v38 }
 0x203   : > { %5422 = vmatmul.mubr.msk.f32.gmra.mrb[2].mxu0 %vm1019_vm0, %v6127_v6  ;;  %6142 = vtanh.f32 %v1868_v1  ;;  %v1921_v6 = vadd.f32 %v7159_v4, %v7399_v14  ;;  %v1924_v14 = vadd.f32 %v7159_v4, %v7408_v57 }
 0x204   : > { %5424 = vmatprep.mubr.msk.f32.mxu0 %vm1019_vm0, %v6125_v49  ;;  %5633 = vmatpush3.bf16.msra.mxu0 %v5630_v35  ;;  %6144 = vtanh.f32 %v1876_v12  ;;  %v1913_v49 = vadd.f32 %v7376_v2, %v7159_v4  ;;  %v1937_v12 = vadd.f32 %v7159_v4, %v7419_v44  ;;  %v1940_v44 = vadd.f32 %v7159_v4, %v7428_v61 }
 0x205   : > { %5635 = vmatprep.subr.bf16.mxu0 %v5634_v48  ;;  %6146 = vtanh.f32 %v1881_v9 }
 0x206   : > { %v7515_v47 = vpop.f32.mrb[108].mxu1  ;;  %6148 = vtanh.f32 %v1889_v55 }
 0x207   : > { %5425 = vmatmul.mubr.msk.f32.gmra.mrb[4].mxu0 %vm1019_vm0, %v6129_v51  ;;  %v7518_v18 = vpop.f32.mrb[109].mxu1  ;;  %6150 = vtanh.f32 %v1884_v8  ;;  %v7608_v8 = vld [vmem:[%s8684_s2] ss:$0 sm:$0xff] }
 0x208   : > { %5427 = vmatprep.mubr.msk.f32.mxu0 %vm1019_vm0, %v6131_v7  ;;  %5637 = vmatpush3.bf16.msra.mxu0 %v5634_v48  ;;  %v7523_v17 = vpop.f32.mrb[110].mxu1  ;;  %6152 = vtanh.f32 %v1892_v21  ;;  %v1948_v61 = vadd.f32 %v7608_v8, %v7424_v58 }
 0x209   : > { %5639 = vmatprep.subr.bf16.mxu0 %v5638_v22  ;;  %v7527_v19 = vpop.f32.mrb[111].mxu1  ;;  %6154 = vtanh.f32 %v1897_v41 }
 0x20a   : > { %6156 = vtanh.f32 %v1905_v13  ;;  %v2523_v13 = vadd.f32 %v7608_v8, %v7459_v29 }
 0x20b   : > { %5428 = vmatmul.mubr.msk.f32.gmra.mrb[6].mxu0 %vm1019_vm0, %v6135_v36  ;;  %6158 = vtanh.f32 %v1900_v59  ;;  %v2518_v59 = vadd.f32 %v7608_v8, %v7444_v62 }
 0x20c   : > { %5430 = vmatprep.mubr.msk.f32.mxu0 %vm1019_vm0, %v6133_v33  ;;  %5641 = vmatpush3.bf16.msra.mxu0 %v5638_v22  ;;  %v6141_v32 = vpop.eup %6140  ;;  %6160 = vtanh.f32 %v1908_v15  ;;  %v1929_v22 = vadd.f32 %v7396_v24, %v7159_v4  ;;  %v1932_v33 = vadd.f32 %v7404_v54, %v7159_v4  ;;  %v2507_v4 = vadd.f32 %v7608_v8, %v7439_v23 }
 0x20d   : > { %v6143_v35 = vpop.eup %6142  ;;  %6162 = vtanh.f32 %v1913_v49  ;;  %v2515_v23 = vadd.f32 %v7608_v8, %v7436_v11  ;;  %v2531_v11 = vadd.f32 %v7608_v8, %v7456_v27  ;;  %v2534_v15 = vadd.f32 %v7608_v8, %v7464_v26 }
 0x20e   : > { %v7535_v28 = vpop.f32.mrb[112].mxu1  ;;  %v6145_v5 = vpop.eup %6144  ;;  %6164 = vtanh.f32 %v1921_v6 }
 0x20f   : > { %5431 = vmatmul.mubr.msk.f32.gmra.mrb[8].mxu0 %vm1019_vm0, %v6137_v20  ;;  %v7538_v31 = vpop.f32.mrb[113].mxu1  ;;  %v6147_v37 = vpop.eup %6146  ;;  %6166 = vtanh.f32 %v1916_v60  ;;  %v1945_v20 = vadd.f32 %v7608_v8, %v7416_v45  ;;  %v2510_v45 = vadd.f32 %v7608_v8, %v7448_v30 }
 0x210   : > { %5433 = vmatprep.mubr.msk.f32.mxu0 %vm1019_vm0, %v6139_v10  ;;  %v7543_v34 = vpop.f32.mrb[114].mxu1  ;;  %v6149_v39 = vpop.eup %6148  ;;  %6168 = vtanh.f32 %v1924_v14 }
 0x211   : > { %v7547_v40 = vpop.f32.mrb[115].mxu1  ;;  %v6151_v48 = vpop.eup %6150  ;;  %6170 = vtanh.f32 %v1929_v22 }
 0x212   : > { %v6153_v53 = vpop.eup %6152  ;;  %6172 = vtanh.f32 %v1937_v12  ;;  %v2574_v22 = vadd.f32 %v7608_v8, %v7547_v40 }
 0x213   : > { %5434 = vmatmul.mubr.msk.f32.gmra.mrb[10].mxu0 %vm1019_vm0, %v6143_v35  ;;  %v6155_v38 = vpop.eup %6154  ;;  %6174 = vtanh.f32 %v1932_v33 }
 0x214   : > { %5436 = vmatprep.mubr.msk.f32.mxu0 %vm1019_vm0, %v6141_v32  ;;  %v6157_v1 = vpop.eup %6156  ;;  %6176 = vtanh.f32 %v1940_v44 }
 0x215   : > { %v6159_v7 = vpop.eup %6158  ;;  %6178 = vtanh.f32 %v1945_v20 }
 0x216   : > { %v7555_v43 = vpop.f32.mrb[116].mxu1  ;;  %v6161_v57 = vpop.eup %6160  ;;  %6180 = vtanh.f32 %v2507_v4 }
 0x217   : > { %5437 = vmatmul.mubr.msk.f32.gmra.mrb[12].mxu0 %vm1019_vm0, %v6145_v5  ;;  %v7558_v25 = vpop.f32.mrb[117].mxu1  ;;  %v6163_v36 = vpop.eup %6162  ;;  %6182 = vtanh.f32 %v1948_v61  ;;  %v2526_v5 = vadd.f32 %v7608_v8, %v7468_v52  ;;  %v2539_v52 = vadd.f32 %v7608_v8, %v7491_v3  ;;  %v2550_v3 = vadd.f32 %v7608_v8, %v7497_v46 }
 0x218   : > { %5439 = vmatprep.mubr.msk.f32.mxu0 %vm1019_vm0, %v6147_v37  ;;  %v7563_v63 = vpop.f32.mrb[118].mxu1  ;;  %v6165_v55 = vpop.eup %6164  ;;  %6184 = vtanh.f32 %v2510_v45  ;;  %v2587_v40 = vadd.f32 %v7608_v8, %v7558_v25 }
 0x219   : > { %v7567_v42 = vpop.f32.mrb[119].mxu1  ;;  %v6167_v21 = vpop.eup %6166  ;;  %6186 = vtanh.f32 %v2515_v23  ;;  %v2598_v25 = vadd.f32 %v7608_v8, %v7563_v63 }
 0x21a   : > { %v6169_v32 = vpop.eup %6168  ;;  %6188 = vtanh.f32 %v2523_v13  ;;  %v7721_v13 = vstv %s312_s17  ;;  %s6601_s17 = sshll.u32 %s6672_s30, 4  ;;  %s6602_s17 = int_to_ptr.vmem [resolvable:$false] %s6601_s17 }
 0x21b   : > { %5440 = vmatmul.mubr.msk.f32.gmra.mrb[14].mxu0 %vm1019_vm0, %v6151_v48  ;;  %v6171_v41 = vpop.eup %6170  ;;  %6190 = vtanh.f32 %v2518_v59  ;;  %v2547_v48 = vadd.f32 %v7608_v8, %v7488_v56  ;;  %s6603_s19 = scalar_lea.vmem %s6602_s17, 8192  ;;  %p6604_p10 = scmp.lt.s32.totalorder %s8637_s16, %s6602_s17 }
 0x21c   : > { %5442 = vmatprep.mubr.msk.f32.mxu0 %vm1019_vm0, %v6149_v39  ;;  %v6173_v35 = vpop.eup %6172  ;;  %6192 = vtanh.f32 %v2526_v5  ;;  %v2542_v39 = vadd.f32 %v7608_v8, %v7501_v0  ;;  %v2555_v0 = vadd.f32 %v7608_v8, %v7518_v18  ;;  %v2566_v18 = vadd.f32 %v7608_v8, %v7523_v17  ;;  %p6605_p0 = scmp.lt.s32.totalorder %s6603_s19, %s6597_s4 }
 0x21d   : > { %v6175_v58 = vpop.eup %6174  ;;  %6194 = vtanh.f32 %v2531_v11 }
 0x21e   : > { %v7575_v16 = vpop.f32.mrb[120].mxu1  ;;  %v6177_v30 = vpop.eup %6176  ;;  %6196 = vtanh.f32 %v2534_v15  ;;  %p6606_p2 = por %p6605_p0, %p6604_p10 }
 0x21f   : > { %5443 = vmatmul.mubr.msk.f32.gmra.mrb[16].mxu0 %vm1019_vm0, %v6153_v53  ;;  %v7578_v2 = vpop.f32.mrb[121].mxu1  ;;  %v6179_v37 = vpop.eup %6178  ;;  %6198 = vtanh.f32 %v2539_v52  ;;  %v2558_v53 = vadd.f32 %v7608_v8, %v7527_v19  ;;  %v2571_v19 = vadd.f32 %v7608_v8, %v7538_v31  ;;  %v2582_v31 = vadd.f32 %v7608_v8, %v7543_v34 }
 0x220   : > { %5445 = vmatprep.mubr.msk.f32.mxu0 %vm1019_vm0, %v6155_v38  ;;  %v7583_v50 = vpop.f32.mrb[122].mxu1  ;;  %v6181_v29 = vpop.eup %6180  ;;  %6200 = vtanh.f32 %v2542_v39  ;;  %v2563_v38 = vadd.f32 %v7608_v8, %v7515_v47  ;;  %p6607_p4 = pnand %p6606_p2, %p6600_p8 }
 0x221   : > { %v7587_v51 = vpop.f32.mrb[123].mxu1  ;;  %v6183_v62 = vpop.eup %6182  ;;  %6202 = vtanh.f32 %v2547_v48 }
 0x222   : > { %v6185_v27 = vpop.eup %6184  ;;  %6204 = vtanh.f32 %v2550_v3  ;;  %v2606_v20 = vadd.f32 %v7608_v8, %v7587_v51 }
 0x223   : > { %5446 = vmatmul.mubr.msk.f32.gmra.mrb[18].mxu0 %vm1019_vm0, %v6159_v7  ;;  %v6187_v49 = vpop.eup %6186  ;;  %6206 = vtanh.f32 %v2555_v0  ;;  %v2579_v7 = vadd.f32 %v7608_v8, %v7535_v28 }
 0x224   : > { %5448 = vmatprep.mubr.msk.f32.mxu0 %vm1019_vm0, %v6157_v1  ;;  %v6189_v26 = vpop.eup %6188  ;;  %6208 = vtanh.f32 %v2558_v53 }
 0x225   : > { %v6191_v6 = vpop.eup %6190  ;;  %6210 = vtanh.f32 %v2563_v38 }
 0x226   : > { %v7595_v9 = vpop.f32.mrb[124].mxu1  ;;  %v6193_v60 = vpop.eup %6192  ;;  %6212 = vtanh.f32 %v2566_v18 }
 0x227   : > { %5449 = vmatmul.mubr.msk.f32.gmra.mrb[20].mxu0 %vm1019_vm0, %v6161_v57  ;;  %v7598_v24 = vpop.f32.mrb[125].mxu1  ;;  %v6195_v56 = vpop.eup %6194  ;;  %6214 = vtanh.f32 %v2571_v19  ;;  %v2590_v57 = vadd.f32 %v7608_v8, %v7567_v42  ;;  %v2603_v42 = vadd.f32 %v7608_v8, %v7578_v2  ;;  %v2614_v2 = vadd.f32 %v7608_v8, %v7583_v50 }
 0x228   : > { %5451 = vmatprep.mubr.msk.f32.mxu0 %vm1019_vm0, %v6163_v36  ;;  %v7603_v54 = vpop.f32.mrb[126].mxu1  ;;  %v6197_v46 = vpop.eup %6196  ;;  %6216 = vtanh.f32 %v2574_v22  ;;  %v2595_v36 = vadd.f32 %v7608_v8, %v7555_v43  ;;  %v2619_v51 = vadd.f32 %v7608_v8, %v7598_v24 }
 0x229   : > { %v7612_v10 = vpop.f32.mrb[127].mxu1  ;;  %v6199_v14 = vpop.eup %6198  ;;  %6218 = vtanh.f32 %v2579_v7  ;;  %v2630_v24 = vadd.f32 %v7608_v8, %v7603_v54 }
 0x22a   : > { %v6201_v1 = vpop.eup %6200  ;;  %6220 = vtanh.f32 %v2582_v31 }
 0x22b   : > { %5452 = vmatmul.mubr.msk.f32.gmra.mrb[22].mxu0 %vm1019_vm0, %v6167_v21  ;;  %v6203_v47 = vpop.eup %6202  ;;  %6222 = vtanh.f32 %v2587_v40  ;;  %v2611_v21 = vadd.f32 %v7608_v8, %v7575_v16 }
 0x22c   : > { %5454 = vmatprep.mubr.msk.f32.mxu0 %vm1019_vm0, %v6165_v55  ;;  %v6205_v17 = vpop.eup %6204  ;;  %6224 = vtanh.f32 %v2590_v57 }
 0x22d   : > { %v6207_v12 = vpop.eup %6206  ;;  %6226 = vtanh.f32 %v2595_v36 }
 0x22e   : > { %v6209_v33 = vpop.eup %6208  ;;  %6228 = vtanh.f32 %v2598_v25 }
 0x22f   : > { %5455 = vmatmul.mubr.msk.f32.gmra.mrb[24].mxu0 %vm1019_vm0, %v6169_v32  ;;  %v6211_v28 = vpop.eup %6210  ;;  %6230 = vtanh.f32 %v2603_v42  ;;  %v2622_v32 = vadd.f32 %v7608_v8, %v7612_v10 }
 0x230   : > { %5457 = vmatprep.mubr.msk.f32.mxu0 %vm1019_vm0, %v6171_v41  ;;  %v6213_v34 = vpop.eup %6212  ;;  %6232 = vtanh.f32 %v2606_v20  ;;  %v2627_v41 = vadd.f32 %v7608_v8, %v7595_v9 }
 0x231   : > { %v6215_v44 = vpop.eup %6214  ;;  %6234 = vtanh.f32 %v2611_v21 }
 0x232   : > { %v6217_v55 = vpop.eup %6216  ;;  %6236 = vtanh.f32 %v2614_v2 }
 0x233   : > { %5458 = vmatmul.mubr.msk.f32.gmra.mrb[26].mxu0 %vm1019_vm0, %v6175_v58  ;;  %v6219_v43 = vpop.eup %6218  ;;  %6238 = vtanh.f32 %v2619_v51 }
 0x234   : > { %5460 = vmatprep.mubr.msk.f32.mxu0 %vm1019_vm0, %v6173_v35  ;;  %v6221_v63 = vpop.eup %6220  ;;  %6240 = vtanh.f32 %v2622_v32 }
 0x235   : > { %v6223_v4 = vpop.eup %6222  ;;  %6242 = vtanh.f32 %v2627_v41 }
 0x236   : > { %v6225_v61 = vpop.eup %6224  ;;  %6244 = vtanh.f32 %v2630_v24 }
 0x237   : > { %5461 = vmatmul.mubr.msk.f32.gmra.mrb[28].mxu0 %vm1019_vm0, %v6177_v30  ;;  %v6227_v16 = vpop.eup %6226 }
 0x238   : > { %5463 = vmatprep.mubr.msk.f32.mxu0 %vm1019_vm0, %v6179_v37  ;;  %v6229_v50 = vpop.eup %6228 }
 0x239   : > { %v6231_v45 = vpop.eup %6230 }
 0x23a   : > { %v6233_v35 = vpop.eup %6232 }
 0x23b   : > { %5464 = vmatmul.mubr.msk.f32.gmra.mrb[30].mxu0 %vm1019_vm0, %v6183_v62  ;;  %v6235_v10 = vpop.eup %6234 }
 0x23c   : > { %5530 = vmatprep.mubr.msk.f32.mxu0 %vm1019_vm0, %v6181_v29  ;;  %v6237_v9 = vpop.eup %6236 }
 0x23d   : > { %v6239_v23 = vpop.eup %6238 }
 0x23e   : > { %v6241_v58 = vpop.eup %6240 }
 0x23f   : > { %5531 = vmatmul.mubr.msk.f32.vlgmr.msra.gmra.mrb[0].mxu0 %vm1019_vm0, %v6185_v27  ;;  %v6243_v54 = vpop.eup %6242 }
 0x240   : > { %5533 = vmatprep.mubr.msk.f32.mxu0 %vm1019_vm0, %v6187_v49  ;;  %v6245_v8 = vpop.eup %6244 }
 0x243   : > { %5534 = vmatmul.mubr.msk.f32.gmra.mrb[2].mxu0 %vm1019_vm0, %v6191_v6 }
 0x244   : > { %5536 = vmatprep.mubr.msk.f32.mxu0 %vm1019_vm0, %v6189_v26 }
 0x247   : > { %5537 = vmatmul.mubr.msk.f32.gmra.mrb[4].mxu0 %vm1019_vm0, %v6193_v60 }
 0x248   : > { %5539 = vmatprep.mubr.msk.f32.mxu0 %vm1019_vm0, %v6195_v56 }
 0x24b   : > { %5540 = vmatmul.mubr.msk.f32.gmra.mrb[6].mxu0 %vm1019_vm0, %v6197_v46 }
 0x24c   : > { %5542 = vmatprep.mubr.msk.f32.mxu0 %vm1019_vm0, %v6199_v14 }
 0x24f   : > { %5543 = vmatmul.mubr.msk.f32.gmra.mrb[8].mxu0 %vm1019_vm0, %v6201_v1 }
 0x250   : > { %5545 = vmatprep.mubr.msk.f32.mxu0 %vm1019_vm0, %v6203_v47 }
 0x253   : > { %5546 = vmatmul.mubr.msk.f32.gmra.mrb[10].mxu0 %vm1019_vm0, %v6205_v17 }
 0x254   : > { %5548 = vmatprep.mubr.msk.f32.mxu0 %vm1019_vm0, %v6207_v12 }
 0x257   : > { %5549 = vmatmul.mubr.msk.f32.gmra.mrb[12].mxu0 %vm1019_vm0, %v6209_v33 }
 0x258   : > { %5551 = vmatprep.mubr.msk.f32.mxu0 %vm1019_vm0, %v6211_v28 }
 0x25b   : > { %5552 = vmatmul.mubr.msk.f32.gmra.mrb[14].mxu0 %vm1019_vm0, %v6213_v34 }
 0x25c   : > { %5554 = vmatprep.mubr.msk.f32.mxu0 %vm1019_vm0, %v6215_v44 }
 0x25f   : > { %5555 = vmatmul.mubr.msk.f32.gmra.mrb[16].mxu0 %vm1019_vm0, %v6217_v55 }
 0x260   : > { %5557 = vmatprep.mubr.msk.f32.mxu0 %vm1019_vm0, %v6219_v43 }
 0x263   : > { %5558 = vmatmul.mubr.msk.f32.gmra.mrb[18].mxu0 %vm1019_vm0, %v6221_v63 }
 0x264   : > { %5560 = vmatprep.mubr.msk.f32.mxu0 %vm1019_vm0, %v6223_v4 }
 0x267   : > { %5561 = vmatmul.mubr.msk.f32.gmra.mrb[20].mxu0 %vm1019_vm0, %v6225_v61 }
 0x268   : > { %5563 = vmatprep.mubr.msk.f32.mxu0 %vm1019_vm0, %v6227_v16 }
 0x26b   : > { %5564 = vmatmul.mubr.msk.f32.gmra.mrb[22].mxu0 %vm1019_vm0, %v6229_v50 }
 0x26c   : > { %5566 = vmatprep.mubr.msk.f32.mxu0 %vm1019_vm0, %v6231_v45 }
 0x26f   : > { %5567 = vmatmul.mubr.msk.f32.gmra.mrb[24].mxu0 %vm1019_vm0, %v6233_v35 }
 0x270   : > { %5569 = vmatprep.mubr.msk.f32.mxu0 %vm1019_vm0, %v6235_v10 }
 0x273   : > { %5570 = vmatmul.mubr.msk.f32.gmra.mrb[26].mxu0 %vm1019_vm0, %v6237_v9 }
 0x274   : > { %5572 = vmatprep.mubr.msk.f32.mxu0 %vm1019_vm0, %v6239_v23 }
 0x277   : > { %5573 = vmatmul.mubr.msk.f32.gmra.mrb[28].mxu0 %vm1019_vm0, %v6241_v58 }
 0x278   : > { %5575 = vmatprep.mubr.msk.f32.mxu0 %vm1019_vm0, %v6243_v54 }
 0x27b   : > { %5576 = vmatmul.mubr.msk.f32.gmra.mrb[30].mxu0 %vm1019_vm0, %v6245_v8 }
 0x312   : > { %v5532_v59 = vpop.f32.mrb[0].mxu0 }
 0x313   : > { %v3028_v30 = vadd.f32 %v5532_v59, %v7721_v13  ;;  %v2835_v5 = vpop.f32.mrb[1].mxu0 }
 0x314   : > { %v3027_v37 = vadd.f32 %v7721_v13, %v2835_v5 }
 0x315   : > { %v4835_v11 = vmul.f32 -1.442695, %v3028_v30 }
 0x316   : > { %v4834_v29 = vmul.f32 -1.442695, %v3027_v37  ;;  %v5535_v62 = vpop.f32.mrb[2].mxu0 }
 0x317   : > { %6246 = vpow2.f32 %v4835_v11  ;;  %v3030_v15 = vadd.f32 %v5535_v62, %v7721_v13  ;;  %v2845_v52 = vpop.f32.mrb[3].mxu0 }
 0x318   : > { %6248 = vpow2.f32 %v4834_v29  ;;  %v3029_v27 = vadd.f32 %v7721_v13, %v2845_v52 }
 0x319   : > { %v4837_v39 = vmul.f32 -1.442695, %v3030_v15 }
 0x31a   : > { %v4836_v49 = vmul.f32 -1.442695, %v3029_v27  ;;  %v5538_v48 = vpop.f32.mrb[4].mxu0 }
 0x31b   : > { %6250 = vpow2.f32 %v4837_v39  ;;  %v3032_v26 = vadd.f32 %v5538_v48, %v7721_v13  ;;  %v2855_v6 = vpop.f32.mrb[5].mxu0 }
 0x31c   : > { %6252 = vpow2.f32 %v4836_v49  ;;  %v3031_v3 = vadd.f32 %v7721_v13, %v2855_v6 }
 0x31d   : > { %v4839_v0 = vmul.f32 -1.442695, %v3032_v26 }
 0x31e   : > { %v4838_v60 = vmul.f32 -1.442695, %v3031_v3  ;;  %v5541_v56 = vpop.f32.mrb[6].mxu0 }
 0x31f   : > { %6254 = vpow2.f32 %v4839_v0  ;;  %v3034_v53 = vadd.f32 %v5541_v56, %v7721_v13  ;;  %v2865_v38 = vpop.f32.mrb[7].mxu0 }
 0x320   : > { %6256 = vpow2.f32 %v4838_v60  ;;  %v3033_v46 = vadd.f32 %v7721_v13, %v2865_v38 }
 0x321   : > { %v6247_v14 = vpop.eup %6246  ;;  %v4841_v18 = vmul.f32 -1.442695, %v3034_v53 }
 0x322   : > { %v6249_v19 = vpop.eup %6248  ;;  %v3156_v1 = vadd.f32 1.0, %v6247_v14  ;;  %v4840_v47 = vmul.f32 -1.442695, %v3033_v46  ;;  %v5544_v22 = vpop.f32.mrb[8].mxu0 }
 0x323   : > { %v3155_v7 = vadd.f32 1.0, %v6249_v19  ;;  %6258 = vpow2.f32 %v4841_v18  ;;  %v3036_v17 = vadd.f32 %v5544_v22, %v7721_v13  ;;  %v2875_v12 = vpop.f32.mrb[9].mxu0 }
 0x324   : > { %6260 = vrcp.f32 %v3156_v1  ;;  %v3035_v31 = vadd.f32 %v7721_v13, %v2875_v12 }
 0x325   : > { %v6251_v40 = vpop.eup %6250  ;;  %6262 = vrcp.f32 %v3155_v7  ;;  %v4843_v33 = vmul.f32 -1.442695, %v3036_v17 }
 0x326   : > { %v6253_v28 = vpop.eup %6252  ;;  %v3158_v57 = vadd.f32 1.0, %v6251_v40  ;;  %6264 = vpow2.f32 %v4840_v47  ;;  %v4842_v36 = vmul.f32 -1.442695, %v3035_v31  ;;  %v5547_v34 = vpop.f32.mrb[10].mxu0 }
 0x327   : > { %v3157_v44 = vadd.f32 1.0, %v6253_v28  ;;  %6266 = vpow2.f32 %v4843_v33  ;;  %v3038_v25 = vadd.f32 %v5547_v34, %v7721_v13  ;;  %v2885_v42 = vpop.f32.mrb[11].mxu0 }
 0x328   : > { %6268 = vrcp.f32 %v3158_v57  ;;  %v3037_v55 = vadd.f32 %v7721_v13, %v2885_v42 }
 0x329   : > { %v6255_v43 = vpop.eup %6254  ;;  %6270 = vrcp.f32 %v3157_v44  ;;  %v4845_v20 = vmul.f32 -1.442695, %v3038_v25 }
 0x32a   : > { %v6257_v21 = vpop.eup %6256  ;;  %v3160_v63 = vadd.f32 1.0, %v6255_v43  ;;  %6272 = vpow2.f32 %v4842_v36  ;;  %v4844_v4 = vmul.f32 -1.442695, %v3037_v55  ;;  %v5550_v2 = vpop.f32.mrb[12].mxu0 }
 0x32b   : > { %v3159_v51 = vadd.f32 1.0, %v6257_v21  ;;  %6274 = vpow2.f32 %v4845_v20  ;;  %v3040_v61 = vadd.f32 %v5550_v2, %v7721_v13  ;;  %v2895_v16 = vpop.f32.mrb[13].mxu0 }
 0x32c   : > { %6276 = vrcp.f32 %v3160_v63  ;;  %v3039_v32 = vadd.f32 %v7721_v13, %v2895_v16 }
 0x32d   : > { %v6259_v41 = vpop.eup %6258  ;;  %6278 = vrcp.f32 %v3159_v51  ;;  %v4847_v50 = vmul.f32 -1.442695, %v3040_v61 }
 0x32e   : > { %v7743_v45 = vpop.eup %6260  ;;  %v3162_v24 = vadd.f32 1.0, %v6259_v41  ;;  %6280 = vpow2.f32 %v4844_v4  ;;  %v4846_v35 = vmul.f32 -1.442695, %v3039_v32  ;;  %v5553_v10 = vpop.f32.mrb[14].mxu0 }
 0x32f   : > { %v7745_v9 = vpop.eup %6262  ;;  %3253 = vst.msk [vmem:[%s7740_s13 + $0x8] sm:$0xff] %vm3251_vm1, %v7743_v45  ;;  %6282 = vpow2.f32 %v4847_v50  ;;  %v3042_v23 = vadd.f32 %v5553_v10, %v7721_v13  ;;  %v2905_v58 = vpop.f32.mrb[15].mxu0  ;;  %v3287_v54 = vsel %vm3251_vm1, %v7743_v45, 0.0 }
 0x330   : > { %v6265_v8 = vpop.eup %6264  ;;  %3252 = vst.msk [vmem:[%s7740_s13] sm:$0xff] %vm3251_vm1, %v7745_v9  ;;  %6284 = vrcp.f32 %v3162_v24  ;;  %v3041_v59 = vadd.f32 %v7721_v13, %v2905_v58  ;;  %3288 = vadd.xlane.f32.xlu0 %v3287_v54  ;;  %v3284_v49 = vsel %vm3251_vm1, %v7745_v9, 0.0 }
 0x331   : > { %v6267_v30 = vpop.eup %6266  ;;  %v3161_v5 = vadd.f32 1.0, %v6265_v8  ;;  %6286 = vpow2.f32 %v4846_v35  ;;  %v4849_v37 = vmul.f32 -1.442695, %v3042_v23 }
 0x332   : > { %v7757_v11 = vpop.eup %6268  ;;  %v3164_v29 = vadd.f32 1.0, %v6267_v30  ;;  %v4848_v62 = vmul.f32 -1.442695, %v3041_v59  ;;  %v5556_v15 = vpop.f32.mrb[16].mxu0 }
 0x333   : > { %v7759_v52 = vpop.eup %6270  ;;  %3255 = vst.msk [vmem:[%s7740_s13 + $0x18] sm:$0xff] %vm3251_vm1, %v7757_v11  ;;  %6288 = vrcp.f32 %v3161_v5  ;;  %v3044_v27 = vadd.f32 %v5556_v15, %v7721_v13  ;;  %v2915_v39 = vpop.f32.mrb[17].mxu0  ;;  %v3293_v48 = vsel %vm3251_vm1, %v7757_v11, 0.0 }
 0x334   : > { %v6273_v26 = vpop.eup %6272  ;;  %3254 = vst.msk [vmem:[%s7740_s13 + $0x10] sm:$0xff] %vm3251_vm1, %v7759_v52  ;;  %6290 = vrcp.f32 %v3164_v29  ;;  %v3043_v6 = vadd.f32 %v7721_v13, %v2915_v39  ;;  %3285 = vadd.xlane.f32.xlu0 %v3284_v49  ;;  %3294 = vadd.xlane.f32.xlu1 %v3293_v48  ;;  %v3290_v1 = vsel %vm3251_vm1, %v7759_v52, 0.0 }
 0x335   : > { %v6275_v3 = vpop.eup %6274  ;;  %v3163_v0 = vadd.f32 1.0, %v6273_v26  ;;  %6292 = vpow2.f32 %v4849_v37  ;;  %v4851_v60 = vmul.f32 -1.442695, %v3044_v27 }
 0x336   : > { %v7773_v56 = vpop.eup %6276  ;;  %v3166_v53 = vadd.f32 1.0, %v6275_v3  ;;  %6294 = vpow2.f32 %v4848_v62  ;;  %v4850_v38 = vmul.f32 -1.442695, %v3043_v6  ;;  %v5559_v46 = vpop.f32.mrb[18].mxu0 }
 0x337   : > { %v7775_v14 = vpop.eup %6278  ;;  %3257 = vst.msk [vmem:[%s7740_s13 + $0x28] sm:$0xff] %vm3251_vm1, %v7773_v56  ;;  %6296 = vrcp.f32 %v3163_v0  ;;  %v3046_v18 = vadd.f32 %v5559_v46, %v7721_v13  ;;  %v2925_v19 = vpop.f32.mrb[19].mxu0  ;;  %v3299_v25 = vsel %vm3251_vm1, %v7773_v56, 0.0 }
 0x338   : > { %v6281_v47 = vpop.eup %6280  ;;  %3256 = vst.msk [vmem:[%s7740_s13 + $0x20] sm:$0xff] %vm3251_vm1, %v7775_v14  ;;  %6298 = vrcp.f32 %v3166_v53  ;;  %v3045_v22 = vadd.f32 %v7721_v13, %v2925_v19  ;;  %3291 = vadd.xlane.f32.xlu1 %v3290_v1  ;;  %v3296_v7 = vsel %vm3251_vm1, %v7775_v14, 0.0 }
 0x339   : > { %v6283_v17 = vpop.eup %6282  ;;  %v3165_v12 = vadd.f32 1.0, %v6281_v47  ;;  %6300 = vpow2.f32 %v4851_v60  ;;  %v4853_v31 = vmul.f32 -1.442695, %v3046_v18  ;;  %3297 = vadd.xlane.f32.xlu0 %v3296_v7 }
 0x33a   : > { %v7789_v40 = vpop.eup %6284  ;;  %v3168_v33 = vadd.f32 1.0, %v6283_v17  ;;  %6302 = vpow2.f32 %v4850_v38  ;;  %v5562_v28 = vpop.f32.mrb[20].mxu0  ;;  %v4852_v36 = vmul.f32 -1.442695, %v3045_v22 }
 0x33b   : > { %v6287_v57 = vpop.eup %6286  ;;  %3259 = vst.msk [vmem:[%s7740_s13 + $0x38] sm:$0xff] %vm3251_vm1, %v7789_v40  ;;  %6304 = vrcp.f32 %v3165_v12  ;;  %v3048_v34 = vadd.f32 %v5562_v28, %v7721_v13  ;;  %v2935_v44 = vpop.f32.mrb[21].mxu0  ;;  %v3305_v32 = vsel %vm3251_vm1, %v7789_v40, 0.0 }
 0x33c   : > { %6306 = vrcp.f32 %v3168_v33  ;;  %v3167_v42 = vadd.f32 1.0, %v6287_v57  ;;  %v3047_v55 = vadd.f32 %v7721_v13, %v2935_v44  ;;  %3300 = vadd.xlane.f32.xlu1 %v3299_v25 }
 0x33d   : > { %v7798_v43 = vpop.eup %6288  ;;  %6308 = vpow2.f32 %v4853_v31  ;;  %v4855_v20 = vmul.f32 -1.442695, %v3048_v34 }
 0x33e   : > { %v7800_v21 = vpop.eup %6290  ;;  %3258 = vst.msk [vmem:[%s7740_s13 + $0x30] sm:$0xff] %vm3251_vm1, %v7798_v43  ;;  %6310 = vrcp.f32 %v3167_v42  ;;  %v4854_v63 = vmul.f32 -1.442695, %v3047_v55  ;;  %v3302_v4 = vsel %vm3251_vm1, %v7798_v43, 0.0  ;;  %v5565_v2 = vpop.f32.mrb[22].mxu0 }
 0x33f   : > { %v6293_v51 = vpop.eup %6292  ;;  %3261 = vst.msk [vmem:[%s7740_s13 + $0x48] sm:$0xff] %vm3251_vm1, %v7800_v21  ;;  %6312 = vpow2.f32 %v4852_v36  ;;  %3303 = vadd.xlane.f32.xlu0 %v3302_v4  ;;  %v3050_v61 = vadd.f32 %v5565_v2, %v7721_v13  ;;  %v2945_v16 = vpop.f32.mrb[23].mxu0  ;;  %v3311_v29 = vsel %vm3251_vm1, %v7800_v21, 0.0 }
 0x340   : > { %v6295_v41 = vpop.eup %6294  ;;  %v3170_v50 = vadd.f32 1.0, %v6293_v51  ;;  %6314 = vpow2.f32 %v4855_v20  ;;  %v3049_v24 = vadd.f32 %v7721_v13, %v2945_v16  ;;  %3306 = vadd.xlane.f32.xlu1 %v3305_v32 }
 0x341   : > { %v7814_v35 = vpop.eup %6296  ;;  %v3169_v10 = vadd.f32 1.0, %v6295_v41  ;;  %6316 = vpow2.f32 %v4854_v63  ;;  %v4857_v23 = vmul.f32 -1.442695, %v3050_v61 }
 0x342   : > { %v7816_v58 = vpop.eup %6298  ;;  %3260 = vst.msk [vmem:[%s7740_s13 + $0x40] sm:$0xff] %vm3251_vm1, %v7814_v35  ;;  %6318 = vrcp.f32 %v3170_v50  ;;  %v4856_v54 = vmul.f32 -1.442695, %v3049_v24  ;;  %v3308_v8 = vsel %vm3251_vm1, %v7814_v35, 0.0  ;;  %v5568_v59 = vpop.f32.mrb[24].mxu0 }
 0x343   : > { %v6301_v30 = vpop.eup %6300  ;;  %3263 = vst.msk [vmem:[%s7740_s13 + $0x58] sm:$0xff] %vm3251_vm1, %v7816_v58  ;;  %6320 = vrcp.f32 %v3169_v10  ;;  %3309 = vadd.xlane.f32.xlu0 %v3308_v8  ;;  %v3052_v5 = vadd.f32 %v5568_v59, %v7721_v13  ;;  %v2955_v37 = vpop.f32.mrb[25].mxu0  ;;  %v3317_v46 = vsel %vm3251_vm1, %v7816_v58, 0.0 }
 0x344   : > { %v6303_v62 = vpop.eup %6302  ;;  %v3172_v15 = vadd.f32 1.0, %v6301_v30  ;;  %6322 = vpow2.f32 %v4857_v23  ;;  %v3051_v27 = vadd.f32 %v7721_v13, %v2955_v37  ;;  %3312 = vadd.xlane.f32.xlu1 %v3311_v29 }
 0x345   : > { %v7830_v39 = vpop.eup %6304  ;;  %v3171_v49 = vadd.f32 1.0, %v6303_v62  ;;  %6324 = vpow2.f32 %v4856_v54  ;;  %v4859_v48 = vmul.f32 -1.442695, %v3052_v5 }
 0x346   : > { %v7832_v26 = vpop.eup %6306  ;;  %3262 = vst.msk [vmem:[%s7740_s13 + $0x50] sm:$0xff] %vm3251_vm1, %v7830_v39  ;;  %6326 = vrcp.f32 %v3172_v15  ;;  %v4858_v6 = vmul.f32 -1.442695, %v3051_v27  ;;  %v3314_v3 = vsel %vm3251_vm1, %v7830_v39, 0.0  ;;  %v5571_v0 = vpop.f32.mrb[26].mxu0 }
 0x347   : > { %v6309_v60 = vpop.eup %6308  ;;  %3265 = vst.msk [vmem:[%s7740_s13 + $0x68] sm:$0xff] %vm3251_vm1, %v7832_v26  ;;  %6328 = vrcp.f32 %v3171_v49  ;;  %3315 = vadd.xlane.f32.xlu0 %v3314_v3  ;;  %v3054_v53 = vadd.f32 %v5571_v0, %v7721_v13  ;;  %v2965_v38 = vpop.f32.mrb[27].mxu0  ;;  %v3323_v33 = vsel %vm3251_vm1, %v7832_v26, 0.0  ;;  %v6668_v49 = vmov 1  }
 0x348   : > { %v7845_v18 = vpop.eup %6310  ;;  %v3174_v19 = vadd.f32 1.0, %v6309_v60  ;;  %6330 = vpow2.f32 %v4859_v48  ;;  %v3053_v1 = vadd.f32 %v7721_v13, %v2965_v38  ;;  %3318 = vadd.xlane.f32.xlu1 %v3317_v46  ;;  %5793 = vset.pattern.permute.xlu0 %v6668_v49 }
 0x349   : > { %v6313_v47 = vpop.eup %6312  ;;  %3264 = vst.msk [vmem:[%s7740_s13 + $0x60] sm:$0xff] %vm3251_vm1, %v7845_v18  ;;  %6332 = vpow2.f32 %v4858_v6  ;;  %v4861_v22 = vmul.f32 -1.442695, %v3054_v53  ;;  %v3320_v7 = vsel %vm3251_vm1, %v7845_v18, 0.0  ;;  %v6669_v6 = vmov 0  }
 0x34a   : > { %v6315_v17 = vpop.eup %6314  ;;  %6334 = vrcp.f32 %v3174_v19  ;;  %v3173_v12 = vadd.f32 1.0, %v6313_v47  ;;  %v5574_v31 = vpop.f32.mrb[28].mxu0  ;;  %v4860_v36 = vmul.f32 -1.442695, %v3053_v1  ;;  %5792 = vset.pattern.permute.xlu1 %v6669_v6 }
 0x34b   : > { %v6317_v28 = vpop.eup %6316  ;;  %v3176_v57 = vadd.f32 1.0, %v6315_v17  ;;  %6336 = vpow2.f32 %v4861_v22  ;;  %3321 = vadd.xlane.f32.xlu0 %v3320_v7  ;;  %v3056_v34 = vadd.f32 %v5574_v31, %v7721_v13  ;;  %v2975_v44 = vpop.f32.mrb[29].mxu0 }
 0x34c   : > { %v7856_v25 = vpop.eup %6318  ;;  %6338 = vrcp.f32 %v3173_v12  ;;  %v3175_v42 = vadd.f32 1.0, %v6317_v28  ;;  %v3055_v55 = vadd.f32 %v7721_v13, %v2975_v44  ;;  %3324 = vadd.xlane.f32.xlu1 %v3323_v33 }
 0x34d   : > { %v7859_v20 = vpop.eup %6320  ;;  %3267 = vst.msk [vmem:[%s7740_s13 + $0x78] sm:$0xff] %vm3251_vm1, %v7856_v25  ;;  %6340 = vrcp.f32 %v3176_v57  ;;  %v4863_v63 = vmul.f32 -1.442695, %v3056_v34  ;;  %v3329_v61 = vsel %vm3251_vm1, %v7856_v25, 0.0 }
 0x34e   : > { %v6323_v4 = vpop.eup %6322  ;;  %3266 = vst.msk [vmem:[%s7740_s13 + $0x70] sm:$0xff] %vm3251_vm1, %v7859_v20  ;;  %6342 = vrcp.f32 %v3175_v42  ;;  %v3326_v2 = vsel %vm3251_vm1, %v7859_v20, 0.0  ;;  %v5577_v51 = vpop.f32.mrb[30].mxu0  ;;  %v4862_v41 = vmul.f32 -1.442695, %v3055_v55 }
 0x34f   : > { %v6325_v16 = vpop.eup %6324  ;;  %v3178_v32 = vadd.f32 1.0, %v6323_v4  ;;  %6344 = vpow2.f32 %v4860_v36  ;;  %3327 = vadd.xlane.f32.xlu0 %v3326_v2  ;;  %v3058_v50 = vadd.f32 %v5577_v51, %v7721_v13  ;;  %v2985_v24 = vpop.f32.mrb[31].mxu0 }
 0x350   : > { %v7872_v10 = vpop.eup %6326  ;;  %v3177_v23 = vadd.f32 1.0, %v6325_v16  ;;  %6346 = vpow2.f32 %v4863_v63  ;;  %v3057_v54 = vadd.f32 %v7721_v13, %v2985_v24  ;;  %3330 = vadd.xlane.f32.xlu1 %v3329_v61 }
 0x351   : > { %v7875_v8 = vpop.eup %6328  ;;  %3269 = vst.msk [vmem:[%s7740_s13 + $0x88] sm:$0xff] %vm3251_vm1, %v7872_v10  ;;  %6348 = vrcp.f32 %v3178_v32  ;;  %v4865_v59 = vmul.f32 -1.442695, %v3058_v50  ;;  %v3335_v13 = vsel %vm3251_vm1, %v7872_v10, 0.0 }
 0x352   : > { %v6331_v30 = vpop.eup %6330  ;;  %3268 = vst.msk [vmem:[%s7740_s13 + $0x80] sm:$0xff] %vm3251_vm1, %v7875_v8  ;;  %6350 = vrcp.f32 %v3177_v23  ;;  %v3332_v5 = vsel %vm3251_vm1, %v7875_v8, 0.0  ;;  %v4864_v62 = vmul.f32 -1.442695, %v3057_v54 }
 0x353   : > { %v6333_v37 = vpop.eup %6332  ;;  %v3180_v29 = vadd.f32 1.0, %v6331_v30  ;;  %6352 = vpow2.f32 %v4862_v41  ;;  %3333 = vadd.xlane.f32.xlu0 %v3332_v5 }
 0x354   : > { %v7887_v15 = vpop.eup %6334  ;;  %v3179_v27 = vadd.f32 1.0, %v6333_v37  ;;  %6354 = vpow2.f32 %v4865_v59  ;;  %3336 = vadd.xlane.f32.xlu1 %v3335_v13 }
 0x355   : > { %v6337_v48 = vpop.eup %6336  ;;  %3271 = vst.msk [vmem:[%s7740_s13 + $0x98] sm:$0xff] %vm3251_vm1, %v7887_v15  ;;  %6356 = vrcp.f32 %v3180_v29  ;;  %v3341_v38 = vsel %vm3251_vm1, %v7887_v15, 0.0 }
 0x356   : > { %v7894_v3 = vpop.eup %6338  ;;  %6358 = vrcp.f32 %v3179_v27  ;;  %v3182_v0 = vadd.f32 1.0, %v6337_v48 }
 0x357   : > { %v7896_v60 = vpop.eup %6340  ;;  %3270 = vst.msk [vmem:[%s7740_s13 + $0x90] sm:$0xff] %vm3251_vm1, %v7894_v3  ;;  %6360 = vpow2.f32 %v4864_v62  ;;  %v3338_v53 = vsel %vm3251_vm1, %v7894_v3, 0.0 }
 0x358   : > { %v7905_v46 = vpop.eup %6342  ;;  %3273 = vst.msk [vmem:[%s7740_s13 + $0xa8] sm:$0xff] %vm3251_vm1, %v7896_v60  ;;  %6362 = vrcp.f32 %v3182_v0  ;;  %3339 = vadd.xlane.f32.xlu0 %v3338_v53  ;;  %3342 = vadd.xlane.f32.xlu1 %v3341_v38  ;;  %v3347_v12 = vsel %vm3251_vm1, %v7896_v60, 0.0 }
 0x359   : > { %v6345_v19 = vpop.eup %6344  ;;  %3272 = vst.msk [vmem:[%s7740_s13 + $0xa0] sm:$0xff] %vm3251_vm1, %v7905_v46  ;;  %v3344_v1 = vsel %vm3251_vm1, %v7905_v46, 0.0 }
 0x35a   : > { %v6347_v47 = vpop.eup %6346  ;;  %v3181_v22 = vadd.f32 1.0, %v6345_v19 }
 0x35b   : > { %v7915_v7 = vpop.eup %6348  ;;  %v3184_v17 = vadd.f32 1.0, %v6347_v47 }
 0x35c   : > { %v7919_v31 = vpop.eup %6350  ;;  %3275 = vst.msk [vmem:[%s7740_s13 + $0xb8] sm:$0xff] %vm3251_vm1, %v7915_v7  ;;  %6364 = vrcp.f32 %v3181_v22  ;;  %3345 = vadd.xlane.f32.xlu0 %v3344_v1  ;;  %3348 = vadd.xlane.f32.xlu1 %v3347_v12  ;;  %v3353_v42 = vsel %vm3251_vm1, %v7915_v7, 0.0 }
 0x35d   : > { %v6353_v33 = vpop.eup %6352  ;;  %3274 = vst.msk [vmem:[%s7740_s13 + $0xb0] sm:$0xff] %vm3251_vm1, %v7919_v31  ;;  %6366 = vrcp.f32 %v3184_v17  ;;  %v3350_v28 = vsel %vm3251_vm1, %v7919_v31, 0.0 }
 0x35e   : > { %v6355_v57 = vpop.eup %6354  ;;  %v3183_v36 = vadd.f32 1.0, %v6353_v33 }
 0x35f   : > { %v7929_v34 = vpop.eup %6356  ;;  %v3186_v44 = vadd.f32 1.0, %v6355_v57  ;;  %v6670_v57 = vmov 2  }
 0x360   : > { %v7933_v55 = vpop.eup %6358  ;;  %3277 = vst.msk [vmem:[%s7740_s13 + $0xc8] sm:$0xff] %vm3251_vm1, %v7929_v34  ;;  %6368 = vrcp.f32 %v3183_v36  ;;  %3351 = vadd.xlane.f32.xlu0 %v3350_v28  ;;  %3354 = vadd.xlane.f32.xlu1 %v3353_v42  ;;  %v3359_v61 = vsel %vm3251_vm1, %v7929_v34, 0.0  ;;  %v6671_v36 = vmov 3  }
 0x361   : > { %v6361_v63 = vpop.eup %6360  ;;  %3276 = vst.msk [vmem:[%s7740_s13 + $0xc0] sm:$0xff] %vm3251_vm1, %v7933_v55  ;;  %6370 = vrcp.f32 %v3186_v44  ;;  %v3356_v4 = vsel %vm3251_vm1, %v7933_v55, 0.0 }
 0x362   : > { %v7943_v2 = vpop.eup %6362  ;;  %v3185_v51 = vadd.f32 1.0, %v6361_v63 }
 0x363   : > { %3279 = vst.msk [vmem:[%s7740_s13 + $0xd8] sm:$0xff] %vm3251_vm1, %v7943_v2  ;;  %v3365_v50 = vsel %vm3251_vm1, %v7943_v2, 0.0 }
 0x364   : > { %6372 = vrcp.f32 %v3185_v51  ;;  %3357 = vadd.xlane.f32.xlu0 %v3356_v4  ;;  %3360 = vadd.xlane.f32.xlu1 %v3359_v61 }
 0x366   : > { %v7950_v16 = vpop.eup %6364 }
 0x367   : > { %v7952_v32 = vpop.eup %6366  ;;  %3278 = vst.msk [vmem:[%s7740_s13 + $0xd0] sm:$0xff] %vm3251_vm1, %v7950_v16  ;;  %v3362_v41 = vsel %vm3251_vm1, %v7950_v16, 0.0 }
 0x368   : > { %3281 = vst.msk [vmem:[%s7740_s13 + $0xe8] sm:$0xff] %vm3251_vm1, %v7952_v32  ;;  %3363 = vadd.xlane.f32.xlu0 %v3362_v41  ;;  %3366 = vadd.xlane.f32.xlu1 %v3365_v50  ;;  %v3371_v59 = vsel %vm3251_vm1, %v7952_v32, 0.0 }
 0x36a   : > { %v7964_v24 = vpop.eup %6368 }
 0x36b   : > { %v7966_v23 = vpop.eup %6370  ;;  %3280 = vst.msk [vmem:[%s7740_s13 + $0xe0] sm:$0xff] %vm3251_vm1, %v7964_v24  ;;  %v3368_v54 = vsel %vm3251_vm1, %v7964_v24, 0.0 }
 0x36c   : > { %3283 = vst.msk [vmem:[%s7740_s13 + $0xf8] sm:$0xff] %vm3251_vm1, %v7966_v23  ;;  %3369 = vadd.xlane.f32.xlu0 %v3368_v54  ;;  %3372 = vadd.xlane.f32.xlu1 %v3371_v59  ;;  %v3377_v13 = vsel %vm3251_vm1, %v7966_v23, 0.0 }
 0x36e   : > { %v7978_v30 = vpop.eup %6372 }
 0x36f   : > { %3282 = vst.msk [vmem:[%s7740_s13 + $0xf0] sm:$0xff] %vm3251_vm1, %v7978_v30  ;;  %v3374_v5 = vsel %vm3251_vm1, %v7978_v30, 0.0 }
 0x370   : > { %3375 = vadd.xlane.f32.xlu0 %v3374_v5  ;;  %3378 = vadd.xlane.f32.xlu1 %v3377_v13 }
 0x3bd   : > { %v3289_v37 = vpop.xlane.xlu0 %3288 }
 0x3be   : > { %6374 = vrcp.f32 %v3289_v37 }
 0x3c1   : > { %v3286_v29 = vpop.xlane.xlu0 %3285  ;;  %v3295_v62 = vpop.xlane.xlu1 %3294 }
 0x3c2   : > { %6376 = vrcp.f32 %v3286_v29 }
 0x3c3   : > { %6378 = vrcp.f32 %v3295_v62 }
 0x3c5   : > { %v3292_v27 = vpop.xlane.xlu1 %3291 }
 0x3c6   : > { %v3298_v22 = vpop.xlane.xlu0 %3297 }
 0x3c8   : > { %v6375_v48 = vpop.eup %6374 }
 0x3c9   : > { %v3413_v0 = vmul.f32 %v6375_v48, %v3289_v37  ;;  %v3301_v53 = vpop.xlane.xlu1 %3300 }
 0x3ca   : > { %6380 = vrcp.f32 %v3301_v53 }
 0x3cb   : > { %v3445_v38 = vsub.f32 2.0, %v3413_v0  ;;  %6382 = vrcp.f32 %v3298_v22 }
 0x3cc   : > { %v6377_v19 = vpop.eup %6376  ;;  %6384 = vrcp.f32 %v3292_v27  ;;  %v3304_v54 = vpop.xlane.xlu0 %3303 }
 0x3cd   : > { %v3477_v1 = vmul.f32 %v6375_v48, %v3445_v38  ;;  %v3412_v47 = vmul.f32 %v6377_v19, %v3286_v29  ;;  %v6379_v33 = vpop.eup %6378  ;;  %v3307_v63 = vpop.xlane.xlu1 %3306 }
 0x3ce   : > { %v3415_v44 = vmul.f32 %v6379_v33, %v3295_v62  ;;  %6386 = vrcp.f32 %v3307_v63 }
 0x3cf   : > { %v3509_v17 = vmul.f32 %v7743_v45, %v3477_v1  ;;  %v3444_v12 = vsub.f32 2.0, %v3412_v47  ;;  %6388 = vrcp.f32 %v3304_v54 }
 0x3d0   : > { %v3447_v4 = vsub.f32 2.0, %v3415_v44 }
 0x3d1   : > { %3579 = vperm.xlu1 %5792, %v3509_v17   ;;  %3833 = vperm.xlu0 %5793, %v3509_v17   ;;  %v3476_v28 = vmul.f32 %v6377_v19, %v3444_v12  ;;  %v3310_v12 = vpop.xlane.xlu0 %3309 }
 0x3d2   : > { %v3479_v41 = vmul.f32 %v6379_v33, %v3447_v4 }
 0x3d3   : > { %v3508_v45 = vmul.f32 %v7745_v9, %v3476_v28 }
 0x3d4   : > { %v6381_v42 = vpop.eup %6380  ;;  %v3511_v5 = vmul.f32 %v7757_v11, %v3479_v41 }
 0x3d5   : > { %5794 = vset.pattern.permute.xlu1 %v6670_v57  ;;  %5795 = vset.pattern.permute.xlu0 %v6671_v36  ;;  %v3417_v51 = vmul.f32 %v6381_v42, %v3301_v53  ;;  %v6383_v61 = vpop.eup %6382  ;;  %v3313_v53 = vpop.xlane.xlu1 %3312 }
 0x3d6   : > { %4057 = vperm.xlu1 %5794, %v3509_v17   ;;  %4281 = vperm.xlu0 %5795, %v3509_v17   ;;  %v3416_v59 = vmul.f32 %v6383_v61, %v3298_v22  ;;  %v6385_v13 = vpop.eup %6384  ;;  %6390 = vrcp.f32 %v3313_v53  ;;  %v3316_v41 = vpop.xlane.xlu0 %3315 }
 0x3d7   : > { %v3449_v50 = vsub.f32 2.0, %v3417_v51  ;;  %v3414_v62 = vmul.f32 %v6385_v13, %v3292_v27  ;;  %6392 = vrcp.f32 %v3310_v12 }
 0x3d8   : > { %v3448_v37 = vsub.f32 2.0, %v3416_v59  ;;  %v6387_v29 = vpop.eup %6386 }
 0x3d9   : > { %v3481_v9 = vmul.f32 %v6381_v42, %v3449_v50  ;;  %v3419_v38 = vmul.f32 %v6387_v29, %v3307_v63  ;;  %v3446_v19 = vsub.f32 2.0, %v3414_v62  ;;  %v6389_v11 = vpop.eup %6388 }
 0x3da   : > { %5797 = vset.pattern.permute.xlu1 %v6668_v49  ;;  %5796 = vset.pattern.permute.xlu0 %v6669_v6  ;;  %v3480_v0 = vmul.f32 %v6383_v61, %v3448_v37  ;;  %v3418_v47 = vmul.f32 %v6389_v11, %v3304_v54 }
 0x3db   : > { %3829 = vperm.xlu1 %5797, %v3508_v45   ;;  %3574 = vperm.xlu0 %5796, %v3508_v45   ;;  %v7998_v48 = vmul.f32 %v7773_v56, %v3481_v9  ;;  %v3451_v27 = vsub.f32 2.0, %v3419_v38  ;;  %v3478_v56 = vmul.f32 %v6385_v13, %v3446_v19 }
 0x3dc   : > { %v8003_v1 = vmul.f32 %v7775_v14, %v3480_v0  ;;  %v3450_v17 = vsub.f32 2.0, %v3418_v47 }
 0x3dd   : > { %v3483_v22 = vmul.f32 %v6387_v29, %v3451_v27  ;;  %v3510_v14 = vmul.f32 %v7759_v52, %v3478_v56 }
 0x3de   : > { %v3482_v44 = vmul.f32 %v6389_v11, %v3450_v17 }
 0x3df   : > { %5799 = vset.pattern.permute.xlu1 %v6671_v36  ;;  %5798 = vset.pattern.permute.xlu0 %v6670_v57  ;;  %v8013_v28 = vmul.f32 %v7789_v40, %v3483_v22 }
 0x3e0   : > { %4277 = vperm.xlu1 %5799, %v3508_v45   ;;  %4053 = vperm.xlu0 %5798, %v3508_v45   ;;  %v6391_v33 = vpop.eup %6390  ;;  %v8019_v63 = vmul.f32 %v7798_v43, %v3482_v44  ;;  %v3319_v45 = vpop.xlane.xlu1 %3318 }
 0x3e1   : > { %v3421_v42 = vmul.f32 %v6391_v33, %v3313_v53  ;;  %v6393_v40 = vpop.eup %6392  ;;  %6394 = vrcp.f32 %v3319_v45 }
 0x3e2   : > { %v3420_v51 = vmul.f32 %v6393_v40, %v3310_v12  ;;  %6396 = vrcp.f32 %v3316_v41 }
 0x3e3   : > { %v3453_v52 = vsub.f32 2.0, %v3421_v42 }
 0x3e4   : > { %5800 = vset.pattern.permute.xlu1 %v6669_v6  ;;  %4065 = vperm.xlu0 %5798, %v3511_v5   ;;  %v3452_v61 = vsub.f32 2.0, %v3420_v51 }
 0x3e5   : > { %3589 = vperm.xlu1 %5800, %v3511_v5   ;;  %v3485_v4 = vmul.f32 %v6391_v33, %v3453_v52 }
 0x3e6   : > { %v3484_v54 = vmul.f32 %v6393_v40, %v3452_v61 }
 0x3e7   : > { %v8028_v43 = vmul.f32 %v7800_v21, %v3485_v4 }
 0x3e8   : > { %4073 = vperm.xlu0 %5798, %v7998_v48   ;;  %v8039_v21 = vmul.f32 %v7814_v35, %v3484_v54  ;;  %v3322_v35 = vpop.xlane.xlu0 %3321 }
 0x3e9   : > { %5801 = vset.pattern.permute.xlu1 %v6668_v49 }
 0x3ea   : > { %3841 = vperm.xlu1 %5801, %v3511_v5  }
 0x3eb   : > { %v6395_v50 = vpop.eup %6394 }
 0x3ec   : > { %5811 = vset.pattern.permute.xlu0 %v6668_v49  ;;  %v3423_v59 = vmul.f32 %v6395_v50, %v3319_v45  ;;  %v6397_v13 = vpop.eup %6396 }
 0x3ed   : > { %3845 = vperm.xlu0 %5811, %v8003_v1   ;;  %v3422_v29 = vmul.f32 %v6397_v13, %v3316_v41 }
 0x3ee   : > { %5802 = vset.pattern.permute.xlu1 %v6671_v36  ;;  %v3455_v9 = vsub.f32 2.0, %v3423_v59 }
 0x3ef   : > { %4289 = vperm.xlu1 %5802, %v3511_v5   ;;  %v3325_v5 = vpop.xlane.xlu1 %3324  ;;  %v3454_v0 = vsub.f32 2.0, %v3422_v29 }
 0x3f0   : > { %6398 = vrcp.f32 %v3325_v5  ;;  %v3487_v37 = vmul.f32 %v6395_v50, %v3455_v9 }
 0x3f1   : > { %5813 = vset.pattern.permute.xlu0 %v6671_v36  ;;  %6400 = vrcp.f32 %v3322_v35  ;;  %v3486_v19 = vmul.f32 %v6397_v13, %v3454_v0 }
 0x3f2   : > { %4293 = vperm.xlu0 %5813, %v8003_v1   ;;  %v8050_v62 = vmul.f32 %v7816_v58, %v3487_v37 }
 0x3f3   : > { %5803 = vset.pattern.permute.xlu1 %v6669_v6  ;;  %v3331_v53 = vpop.xlane.xlu1 %3330  ;;  %v8065_v56 = vmul.f32 %v7830_v39, %v3486_v19 }
 0x3f4   : > { %3584 = vperm.xlu1 %5803, %v3510_v14   ;;  %6402 = vrcp.f32 %v3331_v53 }
 0x3f6   : > { %5816 = vset.pattern.permute.xlu0 %v6670_v57 }
 0x3f7   : > { %4081 = vperm.xlu0 %5816, %v8013_v28   ;;  %v8062_v27 = vpop.xlane.xlu1 %3336 }
 0x3f8   : > { %5804 = vset.pattern.permute.xlu1 %v6668_v49 }
 0x3f9   : > { %3837 = vperm.xlu1 %5804, %v3510_v14  }
 0x3fa   : > { %v6399_v38 = vpop.eup %6398 }
 0x3fb   : > { %5819 = vset.pattern.permute.xlu0 %v6668_v49  ;;  %v3425_v58 = vmul.f32 %v6399_v38, %v3325_v5  ;;  %v6401_v47 = vpop.eup %6400  ;;  %v8073_v12 = vpop.xlane.xlu1 %3342 }
 0x3fc   : > { %3853 = vperm.xlu0 %5819, %v8019_v63   ;;  %v3424_v39 = vmul.f32 %v6401_v47, %v3322_v35 }
 0x3fd   : > { %5805 = vset.pattern.permute.xlu1 %v6670_v57 }
 0x3fe   : > { %4061 = vperm.xlu1 %5805, %v3510_v14   ;;  %v3456_v33 = vsub.f32 2.0, %v3424_v39  ;;  %v6403_v52 = vpop.eup %6402 }
 0x3ff   : > { %v8085_v42 = vpop.xlane.xlu1 %3348 }
 0x400   : > { %5821 = vset.pattern.permute.xlu0 %v6671_v36  ;;  %v3488_v45 = vmul.f32 %v6401_v47, %v3456_v33 }
 0x401   : > { %4301 = vperm.xlu0 %5821, %v8019_v63  }
 0x402   : > { %5806 = vset.pattern.permute.xlu1 %v6671_v36  ;;  %v8099_v4 = vmul.f32 %v7845_v18, %v3488_v45 }
 0x403   : > { %4285 = vperm.xlu1 %5806, %v3510_v14   ;;  %v8094_v40 = vpop.xlane.xlu1 %3354 }
 0x405   : > { %5822 = vset.pattern.permute.xlu0 %v6669_v6 }
 0x406   : > { %3619 = vperm.xlu0 %5822, %v8028_v43  }
 0x407   : > { %5807 = vset.pattern.permute.xlu1 %v6669_v6  ;;  %v8106_v41 = vpop.xlane.xlu1 %3360 }
 0x408   : > { %3599 = vperm.xlu1 %5807, %v7998_v48  }
 0x40a   : > { %5824 = vset.pattern.permute.xlu0 %v6670_v57 }
 0x40b   : > { %4089 = vperm.xlu0 %5824, %v8028_v43   ;;  %v8116_v59 = vpop.xlane.xlu1 %3366 }
 0x40c   : > { %5808 = vset.pattern.permute.xlu1 %v6668_v49 }
 0x40d   : > { %3849 = vperm.xlu1 %5808, %v7998_v48  }
 0x40f   : > { %5827 = vset.pattern.permute.xlu0 %v6668_v49  ;;  %v8128_v29 = vpop.xlane.xlu1 %3372 }
 0x410   : > { %3861 = vperm.xlu0 %5827, %v8039_v21  }
 0x411   : > { %5809 = vset.pattern.permute.xlu1 %v6671_v36 }
 0x412   : > { %4297 = vperm.xlu1 %5809, %v7998_v48   ;;  %v3328_v48 = vpop.xlane.xlu0 %3327 }
 0x413   : > { %6404 = vrcp.f32 %v3328_v48 }
 0x414   : > { %5829 = vset.pattern.permute.xlu0 %v6671_v36  ;;  %6406 = vrcp.f32 %v8062_v27 }
 0x415   : > { %4309 = vperm.xlu0 %5829, %v8039_v21  }
 0x416   : > { %5810 = vset.pattern.permute.xlu1 %v6669_v6  ;;  %v8060_v11 = vpop.xlane.xlu0 %3333 }
 0x417   : > { %3594 = vperm.xlu1 %5810, %v8003_v1   ;;  %6408 = vrcp.f32 %v8060_v11 }
 0x418   : > { %6410 = vrcp.f32 %v8073_v12 }
 0x419   : > { %5830 = vset.pattern.permute.xlu0 %v6669_v6 }
 0x41a   : > { %3629 = vperm.xlu0 %5830, %v8050_v62   ;;  %v8071_v17 = vpop.xlane.xlu0 %3339 }
 0x41b   : > { %5812 = vset.pattern.permute.xlu1 %v6670_v57  ;;  %6412 = vrcp.f32 %v8071_v17 }
 0x41c   : > { %4069 = vperm.xlu1 %5812, %v8003_v1   ;;  %v3457_v1 = vsub.f32 2.0, %v3425_v58  ;;  %6414 = vrcp.f32 %v8085_v42 }
 0x41d   : > { %v6405_v50 = vpop.eup %6404 }
 0x41e   : > { %5832 = vset.pattern.permute.xlu0 %v6670_v57  ;;  %v3489_v22 = vmul.f32 %v6399_v38, %v3457_v1  ;;  %v8083_v44 = vpop.xlane.xlu0 %3345  ;;  %v3426_v18 = vmul.f32 %v6405_v50, %v3328_v48  ;;  %v6407_v13 = vpop.eup %6406  ;;  %v6439_v38 = vld [vmem:[%s6821_s8 + $0x10] sm:$0xf] }
 0x41f   : > { %4097 = vperm.xlu0 %5832, %v8050_v62   ;;  %v3541_v19 = vunpack.c.l.bf16 %v6439_v38  ;;  %6416 = vrcp.f32 %v8083_v44 }
 0x420   : > { %5814 = vset.pattern.permute.xlu1 %v6669_v6  ;;  %v8080_v14 = vmul.f32 %v7832_v26, %v3489_v22  ;;  %v3427_v26 = vmul.f32 %v6403_v52, %v3331_v53  ;;  %v3458_v5 = vsub.f32 2.0, %v3426_v18  ;;  %v8141_v53 = vpop.xlane.xlu1 %3378  ;;  %6418 = vrcp.f32 %v8094_v40 }
 0x421   : > { %3609 = vperm.xlu1 %5814, %v8013_v28   ;;  %v6409_v58 = vpop.eup %6408 }
 0x422   : > { %v3459_v51 = vsub.f32 2.0, %v3427_v26  ;;  %v3428_v22 = vmul.f32 %v6409_v58, %v8060_v11  ;;  %v6442_v26 = vld [vmem:[%s6821_s8 + $0x1c] sm:$0xf] }
 0x423   : > { %5835 = vset.pattern.permute.xlu0 %v6668_v49 }
 0x424   : > { %3869 = vperm.xlu0 %5835, %v8065_v56   ;;  %v3460_v18 = vsub.f32 2.0, %v3428_v22 }
 0x425   : > { %5815 = vset.pattern.permute.xlu1 %v6668_v49 }
 0x426   : > { %3857 = vperm.xlu1 %5815, %v8013_v28  }
 0x428   : > { %5837 = vset.pattern.permute.xlu0 %v6671_v36 }
 0x429   : > { %4317 = vperm.xlu0 %5837, %v8065_v56  }
 0x42a   : > { %5817 = vset.pattern.permute.xlu1 %v6671_v36 }
 0x42b   : > { %4305 = vperm.xlu1 %5817, %v8013_v28   ;;  %v8092_v28 = vpop.xlane.xlu0 %3351 }
 0x42c   : > { %6420 = vrcp.f32 %v8092_v28 }
 0x42d   : > { %5838 = vset.pattern.permute.xlu0 %v6669_v6  ;;  %6422 = vrcp.f32 %v8106_v41 }
 0x42e   : > { %3639 = vperm.xlu0 %5838, %v8080_v14  }
 0x42f   : > { %5818 = vset.pattern.permute.xlu1 %v6669_v6  ;;  %v8104_v61 = vpop.xlane.xlu0 %3357 }
 0x430   : > { %3604 = vperm.xlu1 %5818, %v8019_v63   ;;  %6424 = vrcp.f32 %v8104_v61 }
 0x431   : > { %6426 = vrcp.f32 %v8116_v59 }
 0x432   : > { %5840 = vset.pattern.permute.xlu0 %v6670_v57 }
 0x433   : > { %4105 = vperm.xlu0 %5840, %v8080_v14   ;;  %v8114_v54 = vpop.xlane.xlu0 %3363 }
 0x434   : > { %5820 = vset.pattern.permute.xlu1 %v6670_v57  ;;  %6428 = vrcp.f32 %v8114_v54 }
 0x435   : > { %4077 = vperm.xlu1 %5820, %v8019_v63   ;;  %v3491_v63 = vmul.f32 %v6403_v52, %v3459_v51  ;;  %v6441_v52 = vld [vmem:[%s6821_s8 + $0x18] sm:$0xf]  ;;  %v4245_v51 = vunpack.c.l.bf16 %v6442_v26  ;;  %6430 = vrcp.f32 %v8128_v29 }
 0x436   : > { %v4021_v45 = vunpack.c.l.bf16 %v6441_v52 }
 0x437   : > { %5843 = vset.pattern.permute.xlu0 %v6668_v49  ;;  %v8119_v9 = vmul.f32 %v7856_v25, %v3491_v63  ;;  %v8126_v37 = vpop.xlane.xlu0 %3369  ;;  %v3429_v25 = vmul.f32 %v6407_v13, %v8062_v27 }
 0x438   : > { %3877 = vperm.xlu0 %5843, %v8099_v4   ;;  %6432 = vrcp.f32 %v8126_v37 }
 0x439   : > { %5823 = vset.pattern.permute.xlu1 %v6668_v49  ;;  %v3461_v0 = vsub.f32 2.0, %v3429_v25  ;;  %6434 = vrcp.f32 %v8141_v53 }
 0x43a   : > { %3865 = vperm.xlu1 %5823, %v8028_v43  }
 0x43b   : > { %v8139_v48 = vpop.xlane.xlu0 %3375  ;;  %v3493_v27 = vmul.f32 %v6407_v13, %v3461_v0 }
 0x43c   : > { %5845 = vset.pattern.permute.xlu0 %v6671_v36  ;;  %6436 = vrcp.f32 %v8139_v48 }
 0x43d   : > { %4325 = vperm.xlu0 %5845, %v8099_v4  }
 0x43e   : > { %5825 = vset.pattern.permute.xlu1 %v6671_v36 }
 0x43f   : > { %4313 = vperm.xlu1 %5825, %v8028_v43   ;;  %v3490_v43 = vmul.f32 %v6405_v50, %v3458_v5  ;;  %v8157_v50 = vmul.f32 %v7872_v10, %v3493_v27  ;;  %v6444_v10 = vld [vmem:[%s6821_s8 + $0x4] sm:$0xf] }
 0x440   : > { %v3796_v38 = vunpack.c.l.bf16 %v6444_v10  ;;  %v6447_v10 = vld [vmem:[%s6821_s8 + $0x30] sm:$0xf] }
 0x441   : > { %5846 = vset.pattern.permute.xlu0 %v6669_v6  ;;  %v8136_v35 = vmul.f32 %v7859_v20, %v3490_v43  ;;  %v6443_v43 = vld [vmem:[%s6821_s8] sm:$0xf] }
 0x442   : > { %3649 = vperm.xlu0 %5846, %v8119_v9  }
 0x443   : > { %5826 = vset.pattern.permute.xlu1 %v6669_v6 }
 0x444   : > { %3614 = vperm.xlu1 %5826, %v8039_v21  }
 0x446   : > { %5848 = vset.pattern.permute.xlu0 %v6670_v57 }
 0x447   : > { %4113 = vperm.xlu0 %5848, %v8119_v9  }
 0x448   : > { %5828 = vset.pattern.permute.xlu1 %v6670_v57 }
 0x449   : > { %4085 = vperm.xlu1 %5828, %v8039_v21   ;;  %v6440_v21 = vld [vmem:[%s6821_s8 + $0x14] sm:$0xf] }
 0x44a   : > { %v3797_v20 = vunpack.c.l.bf16 %v6440_v21  ;;  %v3492_v21 = vmul.f32 %v6409_v58, %v3460_v18  ;;  %v6446_v58 = vld [vmem:[%s6821_s8 + $0xc] sm:$0xf] }
 0x44b   : > { %5851 = vset.pattern.permute.xlu0 %v6668_v49 }
 0x44c   : > { %3885 = vperm.xlu0 %5851, %v8136_v35   ;;  %v8178_v26 = vmul.f32 %v7875_v8, %v3492_v21  ;;  %v6448_v21 = vld [vmem:[%s6821_s8 + $0x34] sm:$0xf] }
 0x44d   : > { %5831 = vset.pattern.permute.xlu1 %v6668_v49 }
 0x44e   : > { %3873 = vperm.xlu1 %5831, %v8050_v62  }
 0x450   : > { %v3580_v1 = vpop.permute.xlu1 %3579  ;;  %5853 = vset.pattern.permute.xlu0 %v6671_v36  ;;  %v3834_v47 = vpop.permute.xlu0 %3833 }
 0x451   : > { %4333 = vperm.xlu0 %5853, %v8136_v35   ;;  %v3733_v39 = vmul.f32 %v3580_v1, %v3541_v19  ;;  %v3957_v33 = vmul.f32 %v3834_v47, %v3797_v20  ;;  %v6411_v19 = vpop.eup %6410 }
 0x452   : > { %5833 = vset.pattern.permute.xlu1 %v6671_v36  ;;  %v3431_v47 = vmul.f32 %v6411_v19, %v8073_v12  ;;  %v6413_v8 = vpop.eup %6412 }
 0x453   : > { %4321 = vperm.xlu1 %5833, %v8050_v62   ;;  %v3989_v5 = vadd.f32 %v3957_v33, %v3733_v39  ;;  %v3540_v62 = vunpack.c.l.bf16 %v6443_v43  ;;  %v6445_v33 = vld [vmem:[%s6821_s8 + $0x8] sm:$0xf] }
 0x454   : > { %v4020_v52 = vunpack.c.l.bf16 %v6445_v33 }
 0x455   : > { %v4058_v63 = vpop.permute.xlu1 %4057  ;;  %5854 = vset.pattern.permute.xlu0 %v6669_v6  ;;  %v4282_v11 = vpop.permute.xlu0 %4281 }
 0x456   : > { %v4181_v13 = vmul.f32 %v4058_v63, %v4021_v45  ;;  %3659 = vperm.xlu0 %5854, %v8157_v50   ;;  %v4405_v0 = vmul.f32 %v4282_v11, %v4245_v51  ;;  %v4244_v45 = vunpack.c.l.bf16 %v6446_v58  ;;  %v3463_v63 = vsub.f32 2.0, %v3431_v47 }
 0x457   : > { %5834 = vset.pattern.permute.xlu1 %v6669_v6 }
 0x458   : > { %v4213_v25 = vadd.f32 %v4181_v13, %v3989_v5  ;;  %3624 = vperm.xlu1 %5834, %v8065_v56   ;;  %v3495_v43 = vmul.f32 %v6411_v19, %v3463_v63  ;;  %v6449_v19 = vld [vmem:[%s6821_s8 + $0x38] sm:$0xf] }
 0x45a   : > { %v4437_v20 = vadd.f32 %v4405_v0, %v4213_v25  ;;  %v3830_v27 = vpop.permute.xlu1 %3829  ;;  %5856 = vset.pattern.permute.xlu0 %v6670_v57  ;;  %v3575_v1 = vpop.permute.xlu0 %3574  ;;  %v3430_v0 = vmul.f32 %v6413_v8, %v8071_v17  ;;  %v8197_v47 = vmul.f32 %v7887_v15, %v3495_v43 }
 0x45b   : > { %4121 = vperm.xlu0 %5856, %v8157_v50   ;;  %v3956_v22 = vmul.f32 %v3830_v27, %v3796_v38  ;;  %v3732_v39 = vmul.f32 %v3575_v1, %v3540_v62  ;;  %v3543_v38 = vunpack.c.l.bf16 %v6447_v10  ;;  %v4023_v1 = vunpack.c.l.bf16 %v6449_v19  ;;  %v6415_v15 = vpop.eup %6414 }
 0x45c   : > { %4469 = vst [vmem:[%s8170_s14 + $0x8] sm:$0xff] %v4437_v20  ;;  %5836 = vset.pattern.permute.xlu1 %v6670_v57  ;;  %v3799_v20 = vunpack.c.l.bf16 %v6448_v21  ;;  %v3462_v17 = vsub.f32 2.0, %v3430_v0  ;;  %v6451_v0 = vld [vmem:[%s6821_s8 + $0x24] sm:$0xf]  ;;  %v6452_v21 = vld [vmem:[%s6821_s8 + $0x20] sm:$0xf] }
 0x45d   : > { %4093 = vperm.xlu1 %5836, %v8065_v56   ;;  %v3988_v11 = vadd.f32 %v3956_v22, %v3732_v39  ;;  %v3798_v10 = vunpack.c.l.bf16 %v6451_v0  ;;  %v6456_v0 = vld [vmem:[%s6821_s8 + $0x54] sm:$0xf] }
 0x45f   : > { %v4278_v51 = vpop.permute.xlu1 %4277  ;;  %5859 = vset.pattern.permute.xlu0 %v6668_v49  ;;  %v4054_v12 = vpop.permute.xlu0 %4053 }
 0x460   : > { %v4180_v18 = vmul.f32 %v4054_v12, %v4020_v52  ;;  %3893 = vperm.xlu0 %5859, %v8178_v26   ;;  %v4404_v5 = vmul.f32 %v4278_v51, %v4244_v45  ;;  %v6450_v52 = vld [vmem:[%s6821_s8 + $0x3c] sm:$0xf]  ;;  %v3494_v12 = vmul.f32 %v6413_v8, %v3462_v17 }
 0x461   : > { %5839 = vset.pattern.permute.xlu1 %v6668_v49  ;;  %v4247_v58 = vunpack.c.l.bf16 %v6450_v52 }
 0x462   : > { %v4212_v56 = vadd.f32 %v4180_v18, %v3988_v11  ;;  %3881 = vperm.xlu1 %5839, %v8080_v14   ;;  %v8215_v43 = vmul.f32 %v7894_v3, %v3494_v12 }
 0x463   : > { %v4066_v13 = vpop.permute.xlu0 %4065 }
 0x464   : > { %v4436_v62 = vadd.f32 %v4404_v5, %v4212_v56  ;;  %v3590_v25 = vpop.permute.xlu1 %3589  ;;  %5861 = vset.pattern.permute.xlu0 %v6671_v36  ;;  %v3433_v5 = vmul.f32 %v6415_v15, %v8085_v42 }
 0x465   : > { %4341 = vperm.xlu0 %5861, %v8178_v26   ;;  %v3735_v39 = vmul.f32 %v3590_v25, %v3543_v38 }
 0x466   : > { %4468 = vst [vmem:[%s8170_s14] sm:$0xff] %v4436_v62  ;;  %5841 = vset.pattern.permute.xlu1 %v6671_v36  ;;  %v3465_v62 = vsub.f32 2.0, %v3433_v5 }
 0x467   : > { %4329 = vperm.xlu1 %5841, %v8080_v14   ;;  %v8193_v27 = vpop.permute.xlu0 %4073  ;;  %v4183_v14 = vmul.f32 %v4066_v13, %v4023_v1  ;;  %v6453_v1 = vld [vmem:[%s6821_s8 + $0x28] sm:$0xf] }
 0x468   : > { %v3497_v3 = vmul.f32 %v6415_v15, %v3465_v62 }
 0x469   : > { %v3842_v22 = vpop.permute.xlu1 %3841  ;;  %5862 = vset.pattern.permute.xlu0 %v6669_v6 }
 0x46a   : > { %v3959_v33 = vmul.f32 %v3842_v22, %v3799_v20  ;;  %3669 = vperm.xlu0 %5862, %v8197_v47   ;;  %v3542_v20 = vunpack.c.l.bf16 %v6452_v21  ;;  %v4022_v22 = vunpack.c.l.bf16 %v6453_v1  ;;  %v8236_v17 = vmul.f32 %v7896_v60, %v3497_v3 }
 0x46b   : > { %5842 = vset.pattern.permute.xlu1 %v6669_v6 }
 0x46c   : > { %v3991_v45 = vadd.f32 %v3959_v33, %v3735_v39  ;;  %3634 = vperm.xlu1 %5842, %v8099_v4   ;;  %v8204_v51 = vpop.permute.xlu0 %3845 }
 0x46e   : > { %v4290_v63 = vpop.permute.xlu1 %4289  ;;  %v4215_v11 = vadd.f32 %v4183_v14, %v3991_v45  ;;  %5864 = vset.pattern.permute.xlu0 %v6670_v57  ;;  %v6454_v14 = vld [vmem:[%s6821_s8 + $0x2c] sm:$0xf] }
 0x46f   : > { %v4407_v18 = vmul.f32 %v4290_v63, %v4247_v58  ;;  %4129 = vperm.xlu0 %5864, %v8197_v47  }
 0x470   : > { %5844 = vset.pattern.permute.xlu1 %v6670_v57 }
 0x471   : > { %v4439_v56 = vadd.f32 %v4407_v18, %v4215_v11  ;;  %4101 = vperm.xlu1 %5844, %v8099_v4   ;;  %v8212_v13 = vpop.permute.xlu0 %4293  ;;  %v6417_v4 = vpop.eup %6416 }
 0x472   : > { %v3432_v38 = vmul.f32 %v6417_v4, %v8083_v44  ;;  %v6419_v60 = vpop.eup %6418 }
 0x473   : > { %4471 = vst [vmem:[%s8170_s14 + $0x18] sm:$0xff] %v4439_v56  ;;  %v3585_v8 = vpop.permute.xlu1 %3584  ;;  %5867 = vset.pattern.permute.xlu0 %v6668_v49  ;;  %v3435_v5 = vmul.f32 %v6419_v60, %v8094_v40 }
 0x474   : > { %3901 = vperm.xlu0 %5867, %v8215_v43   ;;  %v3464_v52 = vsub.f32 2.0, %v3432_v38  ;;  %v3734_v44 = vmul.f32 %v3585_v8, %v3542_v20 }
 0x475   : > { %5847 = vset.pattern.permute.xlu1 %v6668_v49  ;;  %v3467_v3 = vsub.f32 2.0, %v3435_v5  ;;  %v6460_v5 = vld [vmem:[%s6821_s8 + $0x44] sm:$0xf] }
 0x476   : > { %3889 = vperm.xlu1 %5847, %v8119_v9   ;;  %v8222_v42 = vpop.permute.xlu0 %4081  ;;  %v3496_v12 = vmul.f32 %v6417_v4, %v3464_v52  ;;  %v6458_v52 = vld [vmem:[%s6821_s8 + $0x5c] sm:$0xf] }
 0x477   : > { %v3499_v20 = vmul.f32 %v6419_v60, %v3467_v3 }
 0x478   : > { %v3838_v25 = vpop.permute.xlu1 %3837  ;;  %5869 = vset.pattern.permute.xlu0 %v6671_v36  ;;  %v8254_v62 = vmul.f32 %v7905_v46, %v3496_v12  ;;  %v6457_v46 = vld [vmem:[%s6821_s8 + $0x58] sm:$0xf] }
 0x479   : > { %4349 = vperm.xlu0 %5869, %v8215_v43   ;;  %v3958_v39 = vmul.f32 %v3838_v25, %v3798_v10  ;;  %v6455_v25 = vld [vmem:[%s6821_s8 + $0x50] sm:$0xf]  ;;  %v6421_v10 = vpop.eup %6420  ;;  %v4025_v38 = vunpack.c.l.bf16 %v6457_v46  ;;  %v6462_v46 = vld [vmem:[%s6821_s8 + $0x4c] sm:$0xf] }
 0x47a   : > { %5849 = vset.pattern.permute.xlu1 %v6671_v36  ;;  %v3545_v40 = vunpack.c.l.bf16 %v6455_v25 }
 0x47b   : > { %4337 = vperm.xlu1 %5849, %v8119_v9   ;;  %v8232_v19 = vpop.permute.xlu0 %3853  ;;  %v4246_v9 = vunpack.c.l.bf16 %v6454_v14  ;;  %v3990_v15 = vadd.f32 %v3958_v39, %v3734_v44  ;;  %v4249_v44 = vunpack.c.l.bf16 %v6458_v52 }
 0x47d   : > { %v4062_v33 = vpop.permute.xlu1 %4061  ;;  %5870 = vset.pattern.permute.xlu0 %v6669_v6 }
 0x47e   : > { %3679 = vperm.xlu0 %5870, %v8236_v17   ;;  %v4182_v58 = vmul.f32 %v4062_v33, %v4022_v22  ;;  %v3434_v33 = vmul.f32 %v6421_v10, %v8092_v28 }
 0x47f   : > { %5850 = vset.pattern.permute.xlu1 %v6669_v6 }
 0x480   : > { %3644 = vperm.xlu1 %5850, %v8136_v35   ;;  %v8243_v45 = vpop.permute.xlu0 %4301  ;;  %v4214_v11 = vadd.f32 %v4182_v58, %v3990_v15  ;;  %v4185_v58 = vmul.f32 %v8193_v27, %v4025_v38  ;;  %v3466_v28 = vsub.f32 2.0, %v3434_v33  ;;  %v4248_v38 = vunpack.c.l.bf16 %v6462_v46 }
 0x482   : > { %v4286_v63 = vpop.permute.xlu1 %4285  ;;  %5872 = vset.pattern.permute.xlu0 %v6670_v57 }
 0x483   : > { %v4406_v18 = vmul.f32 %v4286_v63, %v4246_v9  ;;  %4137 = vperm.xlu0 %5872, %v8236_v17   ;;  %v8275_v9 = vmul.f32 %v7915_v7, %v3499_v20  ;;  %v6459_v7 = vld [vmem:[%s6821_s8 + $0x40] sm:$0xf] }
 0x484   : > { %5852 = vset.pattern.permute.xlu1 %v6670_v57 }
 0x485   : > { %v4438_v56 = vadd.f32 %v4406_v18, %v4214_v11  ;;  %4109 = vperm.xlu1 %5852, %v8136_v35   ;;  %v8251_v8 = vpop.permute.xlu0 %3619  ;;  %v3801_v35 = vunpack.c.l.bf16 %v6456_v0  ;;  %v6423_v11 = vpop.eup %6422  ;;  %v3498_v18 = vmul.f32 %v6421_v10, %v3466_v28  ;;  %v6461_v0 = vld [vmem:[%s6821_s8 + $0x48] sm:$0xf] }
 0x486   : > { %v3437_v25 = vmul.f32 %v6423_v11, %v8106_v41 }
 0x487   : > { %4470 = vst [vmem:[%s8170_s14 + $0x10] sm:$0xff] %v4438_v56  ;;  %v3600_v4 = vpop.permute.xlu1 %3599  ;;  %5875 = vset.pattern.permute.xlu0 %v6668_v49  ;;  %v3800_v56 = vunpack.c.l.bf16 %v6460_v5  ;;  %v8298_v20 = vmul.f32 %v7919_v31, %v3498_v18  ;;  %v6425_v31 = vpop.eup %6424 }
 0x488   : > { %3909 = vperm.xlu0 %5875, %v8254_v62   ;;  %v3737_v22 = vmul.f32 %v3600_v4, %v3545_v40 }
 0x489   : > { %5855 = vset.pattern.permute.xlu1 %v6668_v49  ;;  %v3960_v10 = vmul.f32 %v8204_v51, %v3800_v56  ;;  %v6466_v56 = vld [vmem:[%s6821_s8 + $0x7c] sm:$0xf] }
 0x48a   : > { %3897 = vperm.xlu1 %5855, %v8157_v50   ;;  %v8265_v21 = vpop.permute.xlu0 %4089 }
 0x48c   : > { %v3850_v1 = vpop.permute.xlu1 %3849  ;;  %5877 = vset.pattern.permute.xlu0 %v6671_v36 }
 0x48d   : > { %v3961_v39 = vmul.f32 %v3850_v1, %v3801_v35  ;;  %4357 = vperm.xlu0 %5877, %v8254_v62   ;;  %v4024_v35 = vunpack.c.l.bf16 %v6461_v0 }
 0x48e   : > { %5857 = vset.pattern.permute.xlu1 %v6671_v36 }
 0x48f   : > { %v3993_v14 = vadd.f32 %v3961_v39, %v3737_v22  ;;  %4345 = vperm.xlu1 %5857, %v8157_v50   ;;  %v8277_v60 = vpop.permute.xlu0 %3861  ;;  %v3544_v50 = vunpack.c.l.bf16 %v6459_v7  ;;  %v3469_v22 = vsub.f32 2.0, %v3437_v25 }
 0x491   : > { %v4298_v15 = vpop.permute.xlu1 %4297  ;;  %v4217_v12 = vadd.f32 %v4185_v58, %v3993_v14  ;;  %5878 = vset.pattern.permute.xlu0 %v6669_v6  ;;  %v3501_v52 = vmul.f32 %v6423_v11, %v3469_v22  ;;  %v3436_v14 = vmul.f32 %v6425_v31, %v8104_v61 }
 0x492   : > { %v4409_v63 = vmul.f32 %v4298_v15, %v4249_v44  ;;  %3689 = vperm.xlu0 %5878, %v8275_v9   ;;  %v6463_v15 = vld [vmem:[%s6821_s8 + $0x70] sm:$0xf] }
 0x493   : > { %5858 = vset.pattern.permute.xlu1 %v6669_v6  ;;  %v3468_v61 = vsub.f32 2.0, %v3436_v14  ;;  %v6470_v14 = vld [vmem:[%s6821_s8 + $0x6c] sm:$0xf] }
 0x494   : > { %v4441_v27 = vadd.f32 %v4409_v63, %v4217_v12  ;;  %3654 = vperm.xlu1 %5858, %v8178_v26   ;;  %v8288_v3 = vpop.permute.xlu0 %4309  ;;  %v3547_v12 = vunpack.c.l.bf16 %v6463_v15  ;;  %v4250_v15 = vunpack.c.l.bf16 %v6470_v14 }
 0x495   : > { %v3500_v0 = vmul.f32 %v6425_v31, %v3468_v61  ;;  %v6471_v61 = vld [vmem:[%s6821_s8 + $0x90] sm:$0xf] }
 0x496   : > { %4473 = vst [vmem:[%s8170_s14 + $0x28] sm:$0xff] %v4441_v27  ;;  %v3595_v4 = vpop.permute.xlu1 %3594  ;;  %5880 = vset.pattern.permute.xlu0 %v6670_v57  ;;  %v6465_v27 = vld [vmem:[%s6821_s8 + $0x78] sm:$0xf] }
 0x497   : > { %4145 = vperm.xlu0 %5880, %v8275_v9   ;;  %v3736_v40 = vmul.f32 %v3595_v4, %v3544_v50  ;;  %v4027_v7 = vunpack.c.l.bf16 %v6465_v27  ;;  %v8320_v50 = vmul.f32 %v7929_v34, %v3501_v52  ;;  %v4251_v4 = vunpack.c.l.bf16 %v6466_v56  ;;  %v6427_v34 = vpop.eup %6426 }
 0x498   : > { %5860 = vset.pattern.permute.xlu1 %v6670_v57  ;;  %v4410_v56 = vmul.f32 %v8243_v45, %v4250_v15 }
 0x499   : > { %4117 = vperm.xlu1 %5860, %v8178_v26   ;;  %v3992_v39 = vadd.f32 %v3960_v10, %v3736_v40  ;;  %v8302_v33 = vpop.permute.xlu0 %3629  ;;  %v4408_v26 = vmul.f32 %v8212_v13, %v4248_v38  ;;  %v6464_v13 = vld [vmem:[%s6821_s8 + $0x74] sm:$0xf]  ;;  %v4187_v25 = vmul.f32 %v8222_v42, %v4027_v7  ;;  %v3439_v42 = vmul.f32 %v6427_v34, %v8116_v59 }
 0x49a   : > { %v3803_v28 = vunpack.c.l.bf16 %v6464_v13 }
 0x49b   : > { %v4070_v1 = vpop.permute.xlu1 %4069  ;;  %5883 = vset.pattern.permute.xlu0 %v6668_v49  ;;  %v3471_v59 = vsub.f32 2.0, %v3439_v42 }
 0x49c   : > { %v4184_v41 = vmul.f32 %v4070_v1, %v4024_v35  ;;  %3917 = vperm.xlu0 %5883, %v8298_v20   ;;  %v6467_v1 = vld [vmem:[%s6821_s8 + $0x60] sm:$0xf] }
 0x49d   : > { %5863 = vset.pattern.permute.xlu1 %v6668_v49  ;;  %v3546_v22 = vunpack.c.l.bf16 %v6467_v1 }
 0x49e   : > { %v4216_v51 = vadd.f32 %v4184_v41, %v3992_v39  ;;  %3905 = vperm.xlu1 %5863, %v8197_v47   ;;  %v8315_v63 = vpop.permute.xlu0 %4097  ;;  %v8338_v39 = vmul.f32 %v7933_v55, %v3500_v0  ;;  %v6468_v41 = vld [vmem:[%s6821_s8 + $0x64] sm:$0xf]  ;;  %v6429_v55 = vpop.eup %6428 }
 0x49f   : > { %v6431_v1 = vpop.eup %6430 }
 0x4a0   : > { %v4440_v44 = vadd.f32 %v4408_v26, %v4216_v51  ;;  %v3610_v58 = vpop.permute.xlu1 %3609  ;;  %5885 = vset.pattern.permute.xlu0 %v6671_v36  ;;  %v3802_v26 = vunpack.c.l.bf16 %v6468_v41 }
 0x4a1   : > { %4365 = vperm.xlu0 %5885, %v8298_v20   ;;  %v3739_v18 = vmul.f32 %v3610_v58, %v3547_v12  ;;  %v3503_v12 = vmul.f32 %v6427_v34, %v3471_v59 }
 0x4a2   : > { %4472 = vst [vmem:[%s8170_s14 + $0x20] sm:$0xff] %v4440_v44  ;;  %5865 = vset.pattern.permute.xlu1 %v6671_v36  ;;  %v3962_v58 = vmul.f32 %v8232_v19, %v3802_v26  ;;  %v6472_v19 = vld [vmem:[%s6821_s8 + $0x94] sm:$0xf] }
 0x4a3   : > { %4353 = vperm.xlu1 %5865, %v8197_v47   ;;  %v8329_v40 = vpop.permute.xlu0 %3869  ;;  %v8364_v34 = vmul.f32 %v7943_v2, %v3503_v12  ;;  %v6477_v12 = vld [vmem:[%s6821_s8 + $0x88] sm:$0xf] }
 0x4a5   : > { %v3858_v11 = vpop.permute.xlu1 %3857  ;;  %5886 = vset.pattern.permute.xlu0 %v6669_v6 }
 0x4a6   : > { %v3963_v5 = vmul.f32 %v3858_v11, %v3803_v28  ;;  %3699 = vperm.xlu0 %5886, %v8320_v50   ;;  %v3438_v11 = vmul.f32 %v6429_v55, %v8114_v54 }
 0x4a7   : > { %5866 = vset.pattern.permute.xlu1 %v6669_v6 }
 0x4a8   : > { %v3995_v47 = vadd.f32 %v3963_v5, %v3739_v18  ;;  %3664 = vperm.xlu1 %5866, %v8215_v43   ;;  %v8341_v51 = vpop.permute.xlu0 %4317  ;;  %v3549_v18 = vunpack.c.l.bf16 %v6471_v61  ;;  %v3805_v5 = vunpack.c.l.bf16 %v6472_v19 }
 0x4aa   : > { %v4306_v35 = vpop.permute.xlu1 %4305  ;;  %v4219_v10 = vadd.f32 %v4187_v25, %v3995_v47  ;;  %5888 = vset.pattern.permute.xlu0 %v6670_v57  ;;  %v6473_v25 = vld [vmem:[%s6821_s8 + $0x98] sm:$0xf] }
 0x4ab   : > { %v4411_v46 = vmul.f32 %v4306_v35, %v4251_v4  ;;  %4153 = vperm.xlu0 %5888, %v8320_v50   ;;  %v4029_v47 = vunpack.c.l.bf16 %v6473_v25  ;;  %v3470_v35 = vsub.f32 2.0, %v3438_v11 }
 0x4ac   : > { %5868 = vset.pattern.permute.xlu1 %v6670_v57 }
 0x4ad   : > { %v4443_v38 = vadd.f32 %v4411_v46, %v4219_v10  ;;  %4125 = vperm.xlu1 %5868, %v8215_v43   ;;  %v6469_v43 = vld [vmem:[%s6821_s8 + $0x68] sm:$0xf]  ;;  %v8353_v28 = vpop.permute.xlu0 %3639  ;;  %v3741_v10 = vmul.f32 %v8251_v8, %v3549_v18  ;;  %v4189_v2 = vmul.f32 %v8265_v21, %v4029_v47  ;;  %v3502_v8 = vmul.f32 %v6429_v55, %v3470_v35  ;;  %v6476_v55 = vld [vmem:[%s6821_s8 + $0x84] sm:$0xf]  ;;  %v6481_v35 = vld [vmem:[%s6821_s8 + $0xb8] sm:$0xf] }
 0x4ae   : > { %v4026_v44 = vunpack.c.l.bf16 %v6469_v43 }
 0x4af   : > { %4475 = vst [vmem:[%s8170_s14 + $0x38] sm:$0xff] %v4443_v38  ;;  %v3605_v31 = vpop.permute.xlu1 %3604  ;;  %5891 = vset.pattern.permute.xlu0 %v6668_v49 }
 0x4b0   : > { %3925 = vperm.xlu0 %5891, %v8338_v39   ;;  %v3738_v52 = vmul.f32 %v3605_v31, %v3546_v22  ;;  %v3441_v31 = vmul.f32 %v6431_v1, %v8128_v29 }
 0x4b1   : > { %5871 = vset.pattern.permute.xlu1 %v6668_v49 }
 0x4b2   : > { %3913 = vperm.xlu1 %5871, %v8236_v17   ;;  %v3994_v27 = vadd.f32 %v3962_v58, %v3738_v52  ;;  %v8369_v45 = vpop.permute.xlu0 %4105  ;;  %v6475_v52 = vld [vmem:[%s6821_s8 + $0x80] sm:$0xf]  ;;  %v3804_v58 = vunpack.c.l.bf16 %v6476_v55  ;;  %v3473_v29 = vsub.f32 2.0, %v3441_v31 }
 0x4b3   : > { %v3548_v43 = vunpack.c.l.bf16 %v6475_v52 }
 0x4b4   : > { %v4078_v13 = vpop.permute.xlu1 %4077  ;;  %5893 = vset.pattern.permute.xlu0 %v6671_v36  ;;  %v3505_v61 = vmul.f32 %v6431_v1, %v3473_v29 }
 0x4b5   : > { %v4186_v7 = vmul.f32 %v4078_v13, %v4026_v44  ;;  %4373 = vperm.xlu0 %5893, %v8338_v39   ;;  %v8386_v44 = vmul.f32 %v7950_v16, %v3502_v8  ;;  %v6433_v16 = vpop.eup %6432  ;;  %v3964_v13 = vmul.f32 %v8277_v60, %v3804_v58  ;;  %v6480_v60 = vld [vmem:[%s6821_s8 + $0xb4] sm:$0xf] }
 0x4b6   : > { %5873 = vset.pattern.permute.xlu1 %v6671_v36  ;;  %v3807_v47 = vunpack.c.l.bf16 %v6480_v60  ;;  %v6488_v60 = vld [vmem:[%s6821_s8 + $0xd4] sm:$0xf] }
 0x4b7   : > { %v4218_v4 = vadd.f32 %v4186_v7, %v3994_v27  ;;  %4361 = vperm.xlu1 %5873, %v8236_v17   ;;  %v6474_v17 = vld [vmem:[%s6821_s8 + $0x9c] sm:$0xf]  ;;  %v8381_v21 = vpop.permute.xlu0 %3877  ;;  %v6478_v27 = vld [vmem:[%s6821_s8 + $0x8c] sm:$0xf] }
 0x4b8   : > { %v4253_v42 = vunpack.c.l.bf16 %v6474_v17  ;;  %v4252_v7 = vunpack.c.l.bf16 %v6478_v27  ;;  %v6486_v27 = vld [vmem:[%s6821_s8 + $0xac] sm:$0xf] }
 0x4b9   : > { %v4442_v0 = vadd.f32 %v4410_v56, %v4218_v4  ;;  %v3866_v54 = vpop.permute.xlu1 %3865  ;;  %5894 = vset.pattern.permute.xlu0 %v6669_v6  ;;  %v3440_v56 = vmul.f32 %v6433_v16, %v8126_v37  ;;  %v6479_v4 = vld [vmem:[%s6821_s8 + $0xb0] sm:$0xf] }
 0x4ba   : > { %v3965_v46 = vmul.f32 %v3866_v54, %v3805_v5  ;;  %3709 = vperm.xlu0 %5894, %v8364_v34   ;;  %v3551_v25 = vunpack.c.l.bf16 %v6479_v4  ;;  %v6487_v4 = vld [vmem:[%s6821_s8 + $0xd0] sm:$0xf] }
 0x4bb   : > { %4474 = vst [vmem:[%s8170_s14 + $0x30] sm:$0xff] %v4442_v0  ;;  %5874 = vset.pattern.permute.xlu1 %v6669_v6  ;;  %v4412_v0 = vmul.f32 %v8288_v3, %v4252_v7  ;;  %v4254_v7 = vunpack.c.l.bf16 %v6486_v27  ;;  %v6496_v27 = vld [vmem:[%s6821_s8 + $0xf4] sm:$0xf] }
 0x4bc   : > { %v3997_v38 = vadd.f32 %v3965_v46, %v3741_v10  ;;  %3674 = vperm.xlu1 %5874, %v8254_v62   ;;  %v8398_v11 = vpop.permute.xlu0 %4325  ;;  %v4031_v10 = vunpack.c.l.bf16 %v6481_v35  ;;  %v8410_v46 = vmul.f32 %v7952_v32, %v3505_v61  ;;  %v6489_v35 = vld [vmem:[%s6821_s8 + $0xd8] sm:$0xf] }
 0x4be   : > { %v4314_v22 = vpop.permute.xlu1 %4313  ;;  %v4221_v41 = vadd.f32 %v4189_v2, %v3997_v38  ;;  %5896 = vset.pattern.permute.xlu0 %v6670_v57  ;;  %v3472_v2 = vsub.f32 2.0, %v3440_v56  ;;  %v3743_v38 = vmul.f32 %v8302_v33, %v3551_v25  ;;  %v4191_v32 = vmul.f32 %v8315_v63, %v4031_v10 }
 0x4bf   : > { %v4413_v26 = vmul.f32 %v4314_v22, %v4253_v42  ;;  %4161 = vperm.xlu0 %5896, %v8364_v34   ;;  %v6435_v22 = vpop.eup %6434  ;;  %v3553_v25 = vunpack.c.l.bf16 %v6487_v4  ;;  %v4033_v10 = vunpack.c.l.bf16 %v6489_v35 }
 0x4c0   : > { %5876 = vset.pattern.permute.xlu1 %v6670_v57  ;;  %v3443_v63 = vmul.f32 %v6435_v22, %v8141_v53 }
 0x4c1   : > { %v4445_v59 = vadd.f32 %v4413_v26, %v4221_v41  ;;  %4133 = vperm.xlu1 %5876, %v8254_v62   ;;  %v4028_v62 = vunpack.c.l.bf16 %v6477_v12  ;;  %v8412_v17 = vpop.permute.xlu0 %3649  ;;  %v3504_v41 = vmul.f32 %v6433_v16, %v3472_v2 }
 0x4c2   : > { %v3475_v12 = vsub.f32 2.0, %v3443_v63 }
 0x4c3   : > { %4477 = vst [vmem:[%s8170_s14 + $0x48] sm:$0xff] %v4445_v59  ;;  %v3615_v14 = vpop.permute.xlu1 %3614  ;;  %5899 = vset.pattern.permute.xlu0 %v6668_v49  ;;  %v8432_v58 = vmul.f32 %v7964_v24, %v3504_v41  ;;  %v6437_v24 = vpop.eup %6436 }
 0x4c4   : > { %3933 = vperm.xlu0 %5899, %v8386_v44   ;;  %v3740_v15 = vmul.f32 %v3615_v14, %v3548_v43  ;;  %v6483_v43 = vld [vmem:[%s6821_s8 + $0xa0] sm:$0xf]  ;;  %v6484_v14 = vld [vmem:[%s6821_s8 + $0xa4] sm:$0xf]  ;;  %v3507_v61 = vmul.f32 %v6435_v22, %v3475_v12  ;;  %v3442_v56 = vmul.f32 %v6437_v24, %v8139_v48 }
 0x4c5   : > { %5879 = vset.pattern.permute.xlu1 %v6668_v49  ;;  %v3550_v55 = vunpack.c.l.bf16 %v6483_v43  ;;  %v3806_v29 = vunpack.c.l.bf16 %v6484_v14 }
 0x4c6   : > { %3921 = vperm.xlu1 %5879, %v8275_v9   ;;  %v3996_v19 = vadd.f32 %v3964_v13, %v3740_v15  ;;  %v8424_v31 = vpop.permute.xlu0 %4113  ;;  %v3474_v2 = vsub.f32 2.0, %v3442_v56 }
 0x4c7   : > { %v3966_v13 = vmul.f32 %v8329_v40, %v3806_v29  ;;  %v3809_v40 = vunpack.c.l.bf16 %v6488_v60  ;;  %v6494_v29 = vld [vmem:[%s6821_s8 + $0xcc] sm:$0xf] }
 0x4c8   : > { %v4086_v18 = vpop.permute.xlu1 %4085  ;;  %5901 = vset.pattern.permute.xlu0 %v6671_v36 }
 0x4c9   : > { %v4188_v5 = vmul.f32 %v4086_v18, %v4028_v62  ;;  %4381 = vperm.xlu0 %5901, %v8386_v44  }
 0x4ca   : > { %5881 = vset.pattern.permute.xlu1 %v6671_v36 }
 0x4cb   : > { %v4220_v54 = vadd.f32 %v4188_v5, %v3996_v19  ;;  %4369 = vperm.xlu1 %5881, %v8275_v9   ;;  %v6482_v9 = vld [vmem:[%s6821_s8 + $0xbc] sm:$0xf]  ;;  %v8438_v53 = vpop.permute.xlu0 %3885 }
 0x4cc   : > { %v4255_v3 = vunpack.c.l.bf16 %v6482_v9  ;;  %v4193_v9 = vmul.f32 %v8369_v45, %v4033_v10  ;;  %v6491_v45 = vld [vmem:[%s6821_s8 + $0xc0] sm:$0xf] }
 0x4cd   : > { %v4444_v37 = vadd.f32 %v4412_v0, %v4220_v54  ;;  %v3874_v42 = vpop.permute.xlu1 %3873  ;;  %5902 = vset.pattern.permute.xlu0 %v6669_v6 }
 0x4ce   : > { %v3967_v1 = vmul.f32 %v3874_v42, %v3807_v47  ;;  %3719 = vperm.xlu0 %5902, %v8410_v46   ;;  %v4414_v47 = vmul.f32 %v8341_v51, %v4254_v7 }
 0x4cf   : > { %4476 = vst [vmem:[%s8170_s14 + $0x40] sm:$0xff] %v4444_v37  ;;  %5882 = vset.pattern.permute.xlu1 %v6669_v6  ;;  %v8457_v37 = vmul.f32 %v7966_v23, %v3507_v61 }
 0x4d0   : > { %v3999_v8 = vadd.f32 %v3967_v1, %v3743_v38  ;;  %3684 = vperm.xlu1 %5882, %v8298_v20   ;;  %v8452_v0 = vpop.permute.xlu0 %4333  ;;  %v3745_v38 = vmul.f32 %v8353_v28, %v3553_v25 }
 0x4d2   : > { %v4322_v33 = vpop.permute.xlu1 %4321  ;;  %v4223_v26 = vadd.f32 %v4191_v32, %v3999_v8  ;;  %5904 = vset.pattern.permute.xlu0 %v6670_v57  ;;  %v3506_v32 = vmul.f32 %v6437_v24, %v3474_v2  ;;  %v6495_v24 = vld [vmem:[%s6821_s8 + $0xf0] sm:$0xf] }
 0x4d3   : > { %v4415_v59 = vmul.f32 %v4322_v33, %v4255_v3  ;;  %4169 = vperm.xlu0 %5904, %v8410_v46   ;;  %v3552_v33 = vunpack.c.l.bf16 %v6491_v45  ;;  %v6503_v45 = vld [vmem:[%s6821_s8 + $0x110] sm:$0xf] }
 0x4d4   : > { %5884 = vset.pattern.permute.xlu1 %v6670_v57 }
 0x4d5   : > { %v4447_v52 = vadd.f32 %v4415_v59, %v4223_v26  ;;  %4141 = vperm.xlu1 %5884, %v8298_v20   ;;  %v6485_v20 = vld [vmem:[%s6821_s8 + $0xa8] sm:$0xf]  ;;  %v8467_v3 = vpop.permute.xlu0 %3659  ;;  %v8475_v26 = vmul.f32 %v7978_v30, %v3506_v32  ;;  %v6492_v59 = vld [vmem:[%s6821_s8 + $0xc4] sm:$0xf]  ;;  %v6502_v32 = vld [vmem:[%s6821_s8 + $0xec] sm:$0xf] }
 0x4d6   : > { %v4030_v16 = vunpack.c.l.bf16 %v6485_v20  ;;  %v3808_v63 = vunpack.c.l.bf16 %v6492_v59  ;;  %v6504_v59 = vld [vmem:[%s6821_s8 + $0x114] sm:$0xf] }
 0x4d7   : > { %4479 = vst [vmem:[%s8170_s14 + $0x58] sm:$0xff] %v4447_v52  ;;  %v3625_v15 = vpop.permute.xlu1 %3624  ;;  %5907 = vset.pattern.permute.xlu0 %v6668_v49 }
 0x4d8   : > { %3941 = vperm.xlu0 %5907, %v8432_v58   ;;  %v3742_v62 = vmul.f32 %v3625_v15, %v3550_v55  ;;  %v3968_v30 = vmul.f32 %v8381_v21, %v3808_v63  ;;  %v4256_v15 = vunpack.c.l.bf16 %v6494_v29  ;;  %v3811_v21 = vunpack.c.l.bf16 %v6496_v27 }
 0x4d9   : > { %5887 = vset.pattern.permute.xlu1 %v6668_v49  ;;  %v3813_v63 = vunpack.c.l.bf16 %v6504_v59 }
 0x4da   : > { %3929 = vperm.xlu1 %5887, %v8320_v50   ;;  %v3998_v19 = vadd.f32 %v3966_v13, %v3742_v62  ;;  %v8478_v52 = vpop.permute.xlu0 %4121  ;;  %v3555_v13 = vunpack.c.l.bf16 %v6495_v24  ;;  %v4416_v7 = vmul.f32 %v8398_v11, %v4256_v15 }
 0x4dc   : > { %v4094_v18 = vpop.permute.xlu1 %4093  ;;  %5909 = vset.pattern.permute.xlu0 %v6671_v36  ;;  %v3747_v4 = vmul.f32 %v8412_v17, %v3555_v13 }
 0x4dd   : > { %v4190_v5 = vmul.f32 %v4094_v18, %v4030_v16  ;;  %4389 = vperm.xlu0 %5909, %v8432_v58   ;;  %v6497_v18 = vld [vmem:[%s6821_s8 + $0xf8] sm:$0xf] }
 0x4de   : > { %5889 = vset.pattern.permute.xlu1 %v6671_v36 }
 0x4df   : > { %v4222_v54 = vadd.f32 %v4190_v5, %v3998_v19  ;;  %4377 = vperm.xlu1 %5889, %v8320_v50   ;;  %v6490_v50 = vld [vmem:[%s6821_s8 + $0xdc] sm:$0xf]  ;;  %v8489_v62 = vpop.permute.xlu0 %3893  ;;  %v4035_v19 = vunpack.c.l.bf16 %v6497_v18  ;;  %v6508_v18 = vld [vmem:[%s6821_s8 + $0x104] sm:$0xf] }
 0x4e0   : > { %v4257_v51 = vunpack.c.l.bf16 %v6490_v50 }
 0x4e1   : > { %v4446_v48 = vadd.f32 %v4414_v47, %v4222_v54  ;;  %v3882_v42 = vpop.permute.xlu1 %3881  ;;  %5910 = vset.pattern.permute.xlu0 %v6669_v6  ;;  %v4195_v47 = vmul.f32 %v8424_v31, %v4035_v19 }
 0x4e2   : > { %v3969_v1 = vmul.f32 %v3882_v42, %v3809_v40  ;;  %3729 = vperm.xlu0 %5910, %v8457_v37   ;;  %v6498_v40 = vld [vmem:[%s6821_s8 + $0xfc] sm:$0xf]  ;;  %v6499_v42 = vld [vmem:[%s6821_s8 + $0xe0] sm:$0xf] }
 0x4e3   : > { %4478 = vst [vmem:[%s8170_s14 + $0x50] sm:$0xff] %v4446_v48  ;;  %5890 = vset.pattern.permute.xlu1 %v6669_v6  ;;  %v4259_v11 = vunpack.c.l.bf16 %v6498_v40  ;;  %v3554_v2 = vunpack.c.l.bf16 %v6499_v42  ;;  %v6510_v40 = vld [vmem:[%s6821_s8 + $0x10c] sm:$0xf] }
 0x4e4   : > { %v4001_v23 = vadd.f32 %v3969_v1, %v3745_v38  ;;  %3694 = vperm.xlu1 %5890, %v8338_v39   ;;  %v8499_v60 = vpop.permute.xlu0 %4341  ;;  %v6500_v38 = vld [vmem:[%s6821_s8 + $0xe4] sm:$0xf] }
 0x4e5   : > { %v3810_v31 = vunpack.c.l.bf16 %v6500_v38 }
 0x4e6   : > { %v4330_v28 = vpop.permute.xlu1 %4329  ;;  %v4225_v8 = vadd.f32 %v4193_v9, %v4001_v23  ;;  %5912 = vset.pattern.permute.xlu0 %v6670_v57 }
 0x4e7   : > { %v4417_v22 = vmul.f32 %v4330_v28, %v4257_v51  ;;  %4177 = vperm.xlu0 %5912, %v8457_v37   ;;  %v6501_v51 = vld [vmem:[%s6821_s8 + $0xe8] sm:$0xf]  ;;  %v3970_v23 = vmul.f32 %v8438_v53, %v3810_v31  ;;  %v6505_v53 = vld [vmem:[%s6821_s8 + $0x118] sm:$0xf] }
 0x4e8   : > { %5892 = vset.pattern.permute.xlu1 %v6670_v57  ;;  %v4034_v9 = vunpack.c.l.bf16 %v6501_v51 }
 0x4e9   : > { %v4449_v41 = vadd.f32 %v4417_v22, %v4225_v8  ;;  %4149 = vperm.xlu1 %5892, %v8338_v39   ;;  %v6493_v39 = vld [vmem:[%s6821_s8 + $0xc8] sm:$0xf]  ;;  %v8507_v10 = vpop.permute.xlu0 %3669 }
 0x4ea   : > { %v4032_v14 = vunpack.c.l.bf16 %v6493_v39  ;;  %v4037_v39 = vunpack.c.l.bf16 %v6505_v53 }
 0x4eb   : > { %4481 = vst [vmem:[%s8170_s14 + $0x68] sm:$0xff] %v4449_v41  ;;  %v3635_v43 = vpop.permute.xlu1 %3634  ;;  %5914 = vset.pattern.permute.xlu0 %v6668_v49 }
 0x4ec   : > { %3949 = vperm.xlu0 %5914, %v8475_v26   ;;  %v3744_v55 = vmul.f32 %v3635_v43, %v3552_v33  ;;  %v3557_v33 = vunpack.c.l.bf16 %v6503_v45 }
 0x4ed   : > { %5895 = vset.pattern.permute.xlu1 %v6668_v49 }
 0x4ee   : > { %3937 = vperm.xlu1 %5895, %v8364_v34   ;;  %v4000_v20 = vadd.f32 %v3968_v30, %v3744_v55  ;;  %v8518_v28 = vpop.permute.xlu0 %4129  ;;  %v3749_v15 = vmul.f32 %v8467_v3, %v3557_v33  ;;  %v6516_v33 = vld [vmem:[%s6821_s8 + $0x124] sm:$0xf] }
 0x4ef   : > { %v3814_v59 = vunpack.c.l.bf16 %v6516_v33  ;;  %v6530_v33 = vld [vmem:[%s6821_s8 + $0x17c] sm:$0xf] }
 0x4f0   : > { %v4102_v12 = vpop.permute.xlu1 %4101  ;;  %5916 = vset.pattern.permute.xlu0 %v6671_v36 }
 0x4f1   : > { %v4192_v16 = vmul.f32 %v4102_v12, %v4032_v14  ;;  %4397 = vperm.xlu0 %5916, %v8475_v26  }
 0x4f2   : > { %5897 = vset.pattern.permute.xlu1 %v6671_v36 }
 0x4f3   : > { %v4224_v61 = vadd.f32 %v4192_v16, %v4000_v20  ;;  %4385 = vperm.xlu1 %5897, %v8364_v34   ;;  %v8526_v14 = vpop.permute.xlu0 %3901  ;;  %v6506_v20 = vld [vmem:[%s6821_s8 + $0x11c] sm:$0xf]  ;;  %v4197_v16 = vmul.f32 %v8478_v52, %v4037_v39  ;;  %v3812_v52 = vunpack.c.l.bf16 %v6508_v18  ;;  %v6518_v39 = vld [vmem:[%s6821_s8 + $0x12c] sm:$0xf] }
 0x4f4   : > { %v3974_v53 = vmul.f32 %v8526_v14, %v3814_v59  ;;  %v4267_v59 = vunpack.c.l.bf16 %v6530_v33  ;;  %v6544_v33 = vld [vmem:[%s6821_s8 + $0x1b4] sm:$0xf] }
 0x4f5   : > { %v4448_v5 = vadd.f32 %v4416_v7, %v4224_v61  ;;  %v3890_v56 = vpop.permute.xlu1 %3889  ;;  %v6507_v7 = vld [vmem:[%s6821_s8 + $0x100] sm:$0xf] }
 0x4f6   : > { %v3971_v25 = vmul.f32 %v3890_v56, %v3811_v21  ;;  %v3556_v61 = vunpack.c.l.bf16 %v6507_v7 }
 0x4f7   : > { %4480 = vst [vmem:[%s8170_s14 + $0x60] sm:$0xff] %v4448_v5  ;;  %5898 = vset.pattern.permute.xlu1 %v6669_v6 }
 0x4f8   : > { %v4003_v34 = vadd.f32 %v3971_v25, %v3747_v4  ;;  %3704 = vperm.xlu1 %5898, %v8386_v44   ;;  %v8534_v27 = vpop.permute.xlu0 %4349  ;;  %v6509_v4 = vld [vmem:[%s6821_s8 + $0x108] sm:$0xf] }
 0x4f9   : > { %v4036_v25 = vunpack.c.l.bf16 %v6509_v4 }
 0x4fa   : > { %v4338_v54 = vpop.permute.xlu1 %4337  ;;  %v4227_v35 = vadd.f32 %v4195_v47, %v4003_v34 }
 0x4fb   : > { %v4419_v17 = vmul.f32 %v4338_v54, %v4259_v11  ;;  %v4260_v11 = vunpack.c.l.bf16 %v6510_v40 }
 0x4fc   : > { %5900 = vset.pattern.permute.xlu1 %v6670_v57 }
 0x4fd   : > { %v4451_v48 = vadd.f32 %v4419_v17, %v4227_v35  ;;  %4157 = vperm.xlu1 %5900, %v8386_v44   ;;  %v4258_v44 = vunpack.c.l.bf16 %v6502_v32  ;;  %v8541_v5 = vpop.permute.xlu0 %3679  ;;  %v6511_v35 = vld [vmem:[%s6821_s8 + $0x130] sm:$0xf]  ;;  %v4420_v42 = vmul.f32 %v8499_v60, %v4260_v11 }
 0x4fe   : > { %v3559_v17 = vunpack.c.l.bf16 %v6511_v35 }
 0x4ff   : > { %4483 = vst [vmem:[%s8170_s14 + $0x78] sm:$0xff] %v4451_v48  ;;  %v3645_v1 = vpop.permute.xlu1 %3644  ;;  %v4418_v43 = vmul.f32 %v8452_v0, %v4258_v44  ;;  %v4261_v0 = vunpack.c.l.bf16 %v6506_v20  ;;  %v6512_v48 = vld [vmem:[%s6821_s8 + $0x134] sm:$0xf] }
 0x500   : > { %v3746_v50 = vmul.f32 %v3645_v1, %v3554_v2  ;;  %v3751_v51 = vmul.f32 %v8507_v10, %v3559_v17 }
 0x501   : > { %5903 = vset.pattern.permute.xlu1 %v6668_v49 }
 0x502   : > { %3945 = vperm.xlu1 %5903, %v8410_v46   ;;  %v4002_v22 = vadd.f32 %v3970_v23, %v3746_v50  ;;  %v4138_v2 = vpop.permute.xlu0 %4137 }
 0x504   : > { %v4110_v8 = vpop.permute.xlu1 %4109 }
 0x505   : > { %v4194_v41 = vmul.f32 %v4110_v8, %v4034_v9 }
 0x506   : > { %5905 = vset.pattern.permute.xlu1 %v6671_v36 }
 0x507   : > { %v4226_v55 = vadd.f32 %v4194_v41, %v4002_v22  ;;  %4393 = vperm.xlu1 %5905, %v8410_v46   ;;  %v3910_v44 = vpop.permute.xlu0 %3909 }
 0x509   : > { %v4450_v30 = vadd.f32 %v4418_v43, %v4226_v55  ;;  %v3898_v29 = vpop.permute.xlu1 %3897  ;;  %v6517_v43 = vld [vmem:[%s6821_s8 + $0x128] sm:$0xf] }
 0x50a   : > { %v3973_v12 = vmul.f32 %v3898_v29, %v3813_v63  ;;  %v4038_v55 = vunpack.c.l.bf16 %v6517_v43 }
 0x50b   : > { %4482 = vst [vmem:[%s8170_s14 + $0x70] sm:$0xff] %v4450_v30  ;;  %5906 = vset.pattern.permute.xlu1 %v6669_v6 }
 0x50c   : > { %v4005_v46 = vadd.f32 %v3973_v12, %v3749_v15  ;;  %3714 = vperm.xlu1 %5906, %v8432_v58   ;;  %v6519_v12 = vld [vmem:[%s6821_s8 + $0x150] sm:$0xf] }
 0x50d   : > { %v3561_v20 = vunpack.c.l.bf16 %v6519_v12 }
 0x50e   : > { %v4346_v24 = vpop.permute.xlu1 %4345  ;;  %v4229_v13 = vadd.f32 %v4197_v16, %v4005_v46 }
 0x50f   : > { %v4421_v3 = vmul.f32 %v4346_v24, %v4261_v0  ;;  %v6520_v0 = vld [vmem:[%s6821_s8 + $0x154] sm:$0xf]  ;;  %v3753_v7 = vmul.f32 %v8541_v5, %v3561_v20 }
 0x510   : > { %5908 = vset.pattern.permute.xlu1 %v6670_v57  ;;  %v3817_v16 = vunpack.c.l.bf16 %v6520_v0  ;;  %v6533_v0 = vld [vmem:[%s6821_s8 + $0x168] sm:$0xf] }
 0x511   : > { %v4453_v21 = vadd.f32 %v4421_v3, %v4229_v13  ;;  %4165 = vperm.xlu1 %5908, %v8432_v58   ;;  %v3972_v58 = vmul.f32 %v8489_v62, %v3812_v52  ;;  %v6513_v62 = vld [vmem:[%s6821_s8 + $0x138] sm:$0xf]  ;;  %v6522_v52 = vld [vmem:[%s6821_s8 + $0x15c] sm:$0xf] }
 0x512   : > { %v4039_v31 = vunpack.c.l.bf16 %v6513_v62  ;;  %v6521_v13 = vld [vmem:[%s6821_s8 + $0x158] sm:$0xf] }
 0x513   : > { %4485 = vst [vmem:[%s8170_s14 + $0x88] sm:$0xff] %v4453_v21  ;;  %v3655_v19 = vpop.permute.xlu1 %3654  ;;  %v4041_v3 = vunpack.c.l.bf16 %v6521_v13 }
 0x514   : > { %v3748_v56 = vmul.f32 %v3655_v19, %v3556_v61  ;;  %v4199_v60 = vmul.f32 %v8518_v28, %v4039_v31  ;;  %v4358_v28 = vpop.permute.xlu0 %4357  ;;  %v4265_v19 = vunpack.c.l.bf16 %v6522_v52 }
 0x515   : > { %5911 = vset.pattern.permute.xlu1 %v6668_v49  ;;  %v3815_v49 = vunpack.c.l.bf16 %v6512_v48  ;;  %v6525_v48 = vld [vmem:[%s6821_s8 + $0x148] sm:$0xf] }
 0x516   : > { %3953 = vperm.xlu1 %5911, %v8457_v37   ;;  %v4004_v34 = vadd.f32 %v3972_v58, %v3748_v56  ;;  %v4201_v56 = vmul.f32 %v4138_v2, %v4041_v3  ;;  %v6526_v2 = vld [vmem:[%s6821_s8 + $0x14c] sm:$0xf] }
 0x518   : > { %v4118_v47 = vpop.permute.xlu1 %4117  ;;  %v3690_v29 = vpop.permute.xlu0 %3689 }
 0x519   : > { %v4196_v54 = vmul.f32 %v4118_v47, %v4036_v25  ;;  %v6523_v47 = vld [vmem:[%s6821_s8 + $0x140] sm:$0xf] }
 0x51a   : > { %5913 = vset.pattern.permute.xlu1 %v6669_v6  ;;  %v6514_v6 = vld [vmem:[%s6821_s8 + $0x13c] sm:$0xf] }
 0x51b   : > { %v4228_v38 = vadd.f32 %v4196_v54, %v4004_v34  ;;  %3724 = vperm.xlu1 %5913, %v8475_v26   ;;  %v4263_v23 = vunpack.c.l.bf16 %v6514_v6  ;;  %v3560_v34 = vunpack.c.l.bf16 %v6523_v47  ;;  %v6524_v54 = vld [vmem:[%s6821_s8 + $0x144] sm:$0xf]  ;;  %v6528_v6 = vld [vmem:[%s6821_s8 + $0x174] sm:$0xf] }
 0x51c   : > { %v4146_v18 = vpop.permute.xlu0 %4145  ;;  %v3816_v5 = vunpack.c.l.bf16 %v6524_v54 }
 0x51d   : > { %v4452_v1 = vadd.f32 %v4420_v42, %v4228_v38  ;;  %v3906_v50 = vpop.permute.xlu1 %3905  ;;  %v4264_v38 = vunpack.c.l.bf16 %v6526_v2 }
 0x51e   : > { %v3975_v9 = vmul.f32 %v3906_v50, %v3815_v49  ;;  %v4040_v49 = vunpack.c.l.bf16 %v6525_v48  ;;  %v3976_v42 = vmul.f32 %v3910_v44, %v3816_v5 }
 0x51f   : > { %4484 = vst [vmem:[%s8170_s14 + $0x80] sm:$0xff] %v4452_v1  ;;  %5915 = vset.pattern.permute.xlu1 %v6670_v57  ;;  %v6515_v57 = vld [vmem:[%s6821_s8 + $0x120] sm:$0xf] }
 0x520   : > { %v4007_v32 = vadd.f32 %v3975_v9, %v3751_v51  ;;  %4173 = vperm.xlu1 %5915, %v8475_v26   ;;  %v3558_v45 = vunpack.c.l.bf16 %v6515_v57  ;;  %v3918_v40 = vpop.permute.xlu0 %3917  ;;  %v6527_v51 = vld [vmem:[%s6821_s8 + $0x170] sm:$0xf] }
 0x521   : > { %v3563_v9 = vunpack.c.l.bf16 %v6527_v51 }
 0x522   : > { %v4354_v8 = vpop.permute.xlu1 %4353  ;;  %v4231_v22 = vadd.f32 %v4199_v60, %v4007_v32  ;;  %v4424_v60 = vmul.f32 %v4358_v28, %v4264_v38  ;;  %v6539_v38 = vld [vmem:[%s6821_s8 + $0x180] sm:$0xf] }
 0x523   : > { %v4423_v10 = vmul.f32 %v4354_v8, %v4263_v23  ;;  %v3819_v23 = vunpack.c.l.bf16 %v6528_v6  ;;  %v6529_v8 = vld [vmem:[%s6821_s8 + $0x178] sm:$0xf]  ;;  %v3755_v57 = vmul.f32 %v3690_v29, %v3563_v9  ;;  %v6541_v6 = vld [vmem:[%s6821_s8 + $0x188] sm:$0xf] }
 0x524   : > { %5917 = vset.pattern.permute.xlu1 %v6671_v36  ;;  %v4262_v36 = vunpack.c.l.bf16 %v6518_v39  ;;  %v4366_v62 = vpop.permute.xlu0 %4365 }
 0x525   : > { %v4455_v41 = vadd.f32 %v4423_v10, %v4231_v22  ;;  %4401 = vperm.xlu1 %5917, %v8457_v37   ;;  %v4043_v22 = vunpack.c.l.bf16 %v6529_v8 }
 0x526   : > { %v4422_v46 = vmul.f32 %v8534_v27, %v4262_v36  ;;  %v6531_v36 = vld [vmem:[%s6821_s8 + $0x160] sm:$0xf] }
 0x527   : > { %4487 = vst [vmem:[%s8170_s14 + $0x98] sm:$0xff] %v4455_v41  ;;  %v3665_v26 = vpop.permute.xlu1 %3664 }
 0x528   : > { %v3750_v63 = vmul.f32 %v3665_v26, %v3558_v45  ;;  %v3700_v10 = vpop.permute.xlu0 %3699  ;;  %v4203_v26 = vmul.f32 %v4146_v18, %v4043_v22  ;;  %v6536_v18 = vld [vmem:[%s6821_s8 + $0x194] sm:$0xf] }
 0x529   : > { %v3821_v52 = vunpack.c.l.bf16 %v6536_v18  ;;  %v6549_v18 = vld [vmem:[%s6821_s8 + $0x1a8] sm:$0xf] }
 0x52a   : > { %v4006_v37 = vadd.f32 %v3974_v53, %v3750_v63 }
 0x52c   : > { %v4126_v30 = vpop.permute.xlu1 %4125 }
 0x52d   : > { %v4198_v15 = vmul.f32 %v4126_v30, %v4038_v55  ;;  %v4154_v55 = vpop.permute.xlu0 %4153  ;;  %v3562_v30 = vunpack.c.l.bf16 %v6531_v36 }
 0x52f   : > { %v4230_v24 = vadd.f32 %v4198_v15, %v4006_v37  ;;  %v6532_v37 = vld [vmem:[%s6821_s8 + $0x164] sm:$0xf] }
 0x530   : > { %v3818_v29 = vunpack.c.l.bf16 %v6532_v37  ;;  %v6546_v37 = vld [vmem:[%s6821_s8 + $0x1bc] sm:$0xf] }
 0x531   : > { %v4454_v21 = vadd.f32 %v4422_v46, %v4230_v24  ;;  %v3914_v14 = vpop.permute.xlu1 %3913  ;;  %v3926_v12 = vpop.permute.xlu0 %3925  ;;  %v6534_v24 = vld [vmem:[%s6821_s8 + $0x16c] sm:$0xf] }
 0x532   : > { %v3977_v61 = vmul.f32 %v3914_v14, %v3817_v16  ;;  %v4042_v16 = vunpack.c.l.bf16 %v6533_v0  ;;  %v3978_v46 = vmul.f32 %v3918_v40, %v3818_v29  ;;  %v4266_v13 = vunpack.c.l.bf16 %v6534_v24 }
 0x533   : > { %4486 = vst [vmem:[%s8170_s14 + $0x90] sm:$0xff] %v4454_v21  ;;  %v4271_v29 = vunpack.c.l.bf16 %v6546_v37 }
 0x534   : > { %v4009_v4 = vadd.f32 %v3977_v61, %v3753_v7  ;;  %v6535_v7 = vld [vmem:[%s6821_s8 + $0x190] sm:$0xf] }
 0x535   : > { %v3565_v61 = vunpack.c.l.bf16 %v6535_v7 }
 0x536   : > { %v4362_v27 = vpop.permute.xlu1 %4361  ;;  %v4233_v25 = vadd.f32 %v4201_v56, %v4009_v4  ;;  %v4374_v56 = vpop.permute.xlu0 %4373 }
 0x537   : > { %v4425_v58 = vmul.f32 %v4362_v27, %v4265_v19  ;;  %v4426_v19 = vmul.f32 %v4366_v62, %v4266_v13  ;;  %v6537_v27 = vld [vmem:[%s6821_s8 + $0x198] sm:$0xf]  ;;  %v3564_v62 = vunpack.c.l.bf16 %v6539_v38  ;;  %v6547_v13 = vld [vmem:[%s6821_s8 + $0x1a0] sm:$0xf] }
 0x539   : > { %v4457_v11 = vadd.f32 %v4425_v58, %v4233_v25  ;;  %v4045_v25 = vunpack.c.l.bf16 %v6537_v27 }
 0x53b   : > { %4489 = vst [vmem:[%s8170_s14 + $0xa8] sm:$0xff] %v4457_v11  ;;  %v3675_v35 = vpop.permute.xlu1 %3674  ;;  %v3757_v11 = vmul.f32 %v3700_v10, %v3565_v61  ;;  %v4205_v5 = vmul.f32 %v4154_v55, %v4045_v25 }
 0x53c   : > { %v3752_v17 = vmul.f32 %v3675_v35, %v3560_v34  ;;  %v6538_v34 = vld [vmem:[%s6821_s8 + $0x19c] sm:$0xf] }
 0x53d   : > { %v4269_v54 = vunpack.c.l.bf16 %v6538_v34  ;;  %v6552_v34 = vld [vmem:[%s6821_s8 + $0x1d4] sm:$0xf] }
 0x53e   : > { %v4008_v1 = vadd.f32 %v3976_v42, %v3752_v17  ;;  %v3710_v17 = vpop.permute.xlu0 %3709 }
 0x540   : > { %v4134_v31 = vpop.permute.xlu1 %4133 }
 0x541   : > { %v4200_v50 = vmul.f32 %v4134_v31, %v4040_v49  ;;  %v6540_v31 = vld [vmem:[%s6821_s8 + $0x184] sm:$0xf] }
 0x543   : > { %v4232_v32 = vadd.f32 %v4200_v50, %v4008_v1  ;;  %v3820_v1 = vunpack.c.l.bf16 %v6540_v31  ;;  %v4162_v50 = vpop.permute.xlu0 %4161  ;;  %v6554_v31 = vld [vmem:[%s6821_s8 + $0x1dc] sm:$0xf] }
 0x545   : > { %v4456_v41 = vadd.f32 %v4424_v60, %v4232_v32  ;;  %v3922_v44 = vpop.permute.xlu1 %3921  ;;  %v3980_v60 = vmul.f32 %v3926_v12, %v3820_v1  ;;  %v6542_v32 = vld [vmem:[%s6821_s8 + $0x18c] sm:$0xf]  ;;  %v4273_v1 = vunpack.c.l.bf16 %v6554_v31 }
 0x546   : > { %v3979_v45 = vmul.f32 %v3922_v44, %v3819_v23  ;;  %v4044_v23 = vunpack.c.l.bf16 %v6541_v6  ;;  %v4268_v8 = vunpack.c.l.bf16 %v6542_v32 }
 0x547   : > { %4488 = vst [vmem:[%s8170_s14 + $0xa0] sm:$0xff] %v4456_v41  ;;  %v3934_v10 = vpop.permute.xlu0 %3933 }
 0x548   : > { %v4011_v63 = vadd.f32 %v3979_v45, %v3755_v57  ;;  %v6543_v57 = vld [vmem:[%s6821_s8 + $0x1b0] sm:$0xf] }
 0x549   : > { %v3567_v45 = vunpack.c.l.bf16 %v6543_v57 }
 0x54a   : > { %v4370_v43 = vpop.permute.xlu1 %4369  ;;  %v4235_v28 = vadd.f32 %v4203_v26, %v4011_v63  ;;  %v4428_v26 = vmul.f32 %v4374_v56, %v4268_v8  ;;  %v6550_v56 = vld [vmem:[%s6821_s8 + $0x1ac] sm:$0xf]  ;;  %v6555_v8 = vld [vmem:[%s6821_s8 + $0x1c0] sm:$0xf] }
 0x54b   : > { %v4427_v53 = vmul.f32 %v4370_v43, %v4267_v59  ;;  %v3823_v59 = vunpack.c.l.bf16 %v6544_v33  ;;  %v6545_v43 = vld [vmem:[%s6821_s8 + $0x1b8] sm:$0xf]  ;;  %v6557_v33 = vld [vmem:[%s6821_s8 + $0x1c8] sm:$0xf] }
 0x54d   : > { %v4459_v39 = vadd.f32 %v4427_v53, %v4235_v28  ;;  %v4047_v28 = vunpack.c.l.bf16 %v6545_v43 }
 0x54f   : > { %4491 = vst [vmem:[%s8170_s14 + $0xb8] sm:$0xff] %v4459_v39  ;;  %v3685_v15 = vpop.permute.xlu1 %3684  ;;  %v3759_v39 = vmul.f32 %v3710_v17, %v3567_v45  ;;  %v6553_v17 = vld [vmem:[%s6821_s8 + $0x1d8] sm:$0xf] }
 0x550   : > { %v3754_v20 = vmul.f32 %v3685_v15, %v3562_v30  ;;  %v4382_v30 = vpop.permute.xlu0 %4381  ;;  %v4207_v15 = vmul.f32 %v4162_v50, %v4047_v28 }
 0x552   : > { %v4010_v21 = vadd.f32 %v3978_v46, %v3754_v20 }
 0x554   : > { %v4142_v3 = vpop.permute.xlu1 %4141  ;;  %v3720_v46 = vpop.permute.xlu0 %3719 }
 0x555   : > { %v4202_v14 = vmul.f32 %v4142_v3, %v4042_v16  ;;  %v3566_v3 = vunpack.c.l.bf16 %v6547_v13 }
 0x557   : > { %v4234_v4 = vadd.f32 %v4202_v14, %v4010_v21  ;;  %v6548_v21 = vld [vmem:[%s6821_s8 + $0x1a4] sm:$0xf] }
 0x558   : > { %v3822_v14 = vunpack.c.l.bf16 %v6548_v21  ;;  %v4170_v27 = vpop.permute.xlu0 %4169 }
 0x559   : > { %v4458_v58 = vadd.f32 %v4426_v19, %v4234_v4  ;;  %v3930_v40 = vpop.permute.xlu1 %3929  ;;  %v4270_v4 = vunpack.c.l.bf16 %v6550_v56 }
 0x55a   : > { %v3981_v47 = vmul.f32 %v3930_v40, %v3821_v52  ;;  %v4046_v52 = vunpack.c.l.bf16 %v6549_v18  ;;  %v3982_v19 = vmul.f32 %v3934_v10, %v3822_v14  ;;  %v6556_v10 = vld [vmem:[%s6821_s8 + $0x1c4] sm:$0xf] }
 0x55b   : > { %4490 = vst [vmem:[%s8170_s14 + $0xb0] sm:$0xff] %v4458_v58 }
 0x55c   : > { %v4013_v35 = vadd.f32 %v3981_v47, %v3757_v11  ;;  %v6551_v11 = vld [vmem:[%s6821_s8 + $0x1d0] sm:$0xf] }
 0x55d   : > { %v3569_v47 = vunpack.c.l.bf16 %v6551_v11 }
 0x55e   : > { %v4378_v48 = vpop.permute.xlu1 %4377  ;;  %v4237_v49 = vadd.f32 %v4205_v5, %v4013_v35  ;;  %v4430_v5 = vmul.f32 %v4382_v30, %v4270_v4 }
 0x55f   : > { %v4429_v42 = vmul.f32 %v4378_v48, %v4269_v54  ;;  %v3825_v54 = vunpack.c.l.bf16 %v6552_v34  ;;  %v4049_v48 = vunpack.c.l.bf16 %v6553_v17  ;;  %v3761_v38 = vmul.f32 %v3720_v46, %v3569_v47  ;;  %v6561_v46 = vld [vmem:[%s6821_s8 + $0x1e4] sm:$0xf] }
 0x561   : > { %v4461_v2 = vadd.f32 %v4429_v42, %v4237_v49  ;;  %v3942_v49 = vpop.permute.xlu0 %3941  ;;  %v4209_v50 = vmul.f32 %v4170_v27, %v4049_v48  ;;  %v6565_v27 = vld [vmem:[%s6821_s8 + $0x1f8] sm:$0xf] }
 0x563   : > { %4493 = vst [vmem:[%s8170_s14 + $0xc8] sm:$0xff] %v4461_v2  ;;  %v3695_v51 = vpop.permute.xlu1 %3694 }
 0x564   : > { %v3756_v9 = vmul.f32 %v3695_v51, %v3564_v62 }
 0x566   : > { %v4012_v41 = vadd.f32 %v3980_v60, %v3756_v9 }
 0x568   : > { %v4150_v22 = vpop.permute.xlu1 %4149 }
 0x569   : > { %v4204_v44 = vmul.f32 %v4150_v22, %v4044_v23  ;;  %v4390_v23 = vpop.permute.xlu0 %4389  ;;  %v3568_v22 = vunpack.c.l.bf16 %v6555_v8 }
 0x56b   : > { %v4236_v63 = vadd.f32 %v4204_v44, %v4012_v41  ;;  %v3824_v41 = vunpack.c.l.bf16 %v6556_v10 }
 0x56d   : > { %v4460_v55 = vadd.f32 %v4428_v26, %v4236_v63  ;;  %v3938_v53 = vpop.permute.xlu1 %3937  ;;  %v3730_v57 = vpop.permute.xlu0 %3729  ;;  %v3984_v26 = vmul.f32 %v3942_v49, %v3824_v41  ;;  %v6558_v63 = vld [vmem:[%s6821_s8 + $0x1cc] sm:$0xf] }
 0x56e   : > { %v3983_v36 = vmul.f32 %v3938_v53, %v3823_v59  ;;  %v4048_v59 = vunpack.c.l.bf16 %v6557_v33  ;;  %v4272_v43 = vunpack.c.l.bf16 %v6558_v63 }
 0x56f   : > { %4492 = vst [vmem:[%s8170_s14 + $0xc0] sm:$0xff] %v4460_v55 }
 0x570   : > { %v4015_v12 = vadd.f32 %v3983_v36, %v3759_v39  ;;  %v4432_v39 = vmul.f32 %v4390_v23, %v4272_v43 }
 0x571   : > { %v4178_v36 = vpop.permute.xlu0 %4177 }
 0x572   : > { %v4386_v20 = vpop.permute.xlu1 %4385  ;;  %v4239_v0 = vadd.f32 %v4207_v15, %v4015_v12  ;;  %v6559_v15 = vld [vmem:[%s6821_s8 + $0x1e0] sm:$0xf] }
 0x573   : > { %v4431_v16 = vmul.f32 %v4386_v20, %v4271_v29  ;;  %v3570_v12 = vunpack.c.l.bf16 %v6559_v15 }
 0x575   : > { %v4463_v24 = vadd.f32 %v4431_v16, %v4239_v0  ;;  %v3950_v20 = vpop.permute.xlu0 %3949  ;;  %v6560_v0 = vld [vmem:[%s6821_s8 + $0x1f4] sm:$0xf] }
 0x576   : > { %v3827_v16 = vunpack.c.l.bf16 %v6560_v0 }
 0x577   : > { %4495 = vst [vmem:[%s8170_s14 + $0xd8] sm:$0xff] %v4463_v24  ;;  %v3705_v7 = vpop.permute.xlu1 %3704  ;;  %v3826_v24 = vunpack.c.l.bf16 %v6561_v46 }
 0x578   : > { %v3758_v61 = vmul.f32 %v3705_v7, %v3566_v3  ;;  %v6562_v3 = vld [vmem:[%s6821_s8 + $0x1f0] sm:$0xf]  ;;  %v6563_v7 = vld [vmem:[%s6821_s8 + $0x1e8] sm:$0xf] }
 0x579   : > { %v3571_v21 = vunpack.c.l.bf16 %v6562_v3 }
 0x57a   : > { %v4014_v58 = vadd.f32 %v3982_v19, %v3758_v61  ;;  %v4050_v61 = vunpack.c.l.bf16 %v6563_v7  ;;  %v6564_v19 = vld [vmem:[%s6821_s8 + $0x1ec] sm:$0xf] }
 0x57b   : > { %v4274_v56 = vunpack.c.l.bf16 %v6564_v19  ;;  %v3763_v4 = vmul.f32 %v3730_v57, %v3571_v21 }
 0x57c   : > { %v4158_v25 = vpop.permute.xlu1 %4157 }
 0x57d   : > { %v4206_v40 = vmul.f32 %v4158_v25, %v4046_v52  ;;  %v3986_v52 = vmul.f32 %v3950_v20, %v3826_v24  ;;  %v4051_v25 = vunpack.c.l.bf16 %v6565_v27 }
 0x57f   : > { %v4238_v35 = vadd.f32 %v4206_v40, %v4014_v58  ;;  %v4398_v58 = vpop.permute.xlu0 %4397  ;;  %v4211_v48 = vmul.f32 %v4178_v36, %v4051_v25 }
 0x581   : > { %v4462_v42 = vadd.f32 %v4430_v5, %v4238_v35  ;;  %v3946_v2 = vpop.permute.xlu1 %3945  ;;  %v4434_v35 = vmul.f32 %v4398_v58, %v4274_v56 }
 0x582   : > { %v3985_v62 = vmul.f32 %v3946_v2, %v3825_v54  ;;  %v6566_v54 = vld [vmem:[%s6821_s8 + $0x1fc] sm:$0xf]  ;;  %s4501_s8 = scalar_lea.sflag [#allocation5], %s6817_s27 }
 0x583   : > { %4494 = vst [vmem:[%s8170_s14 + $0xd0] sm:$0xff] %v4462_v42  ;;  %v4275_v5 = vunpack.c.l.bf16 %v6566_v54 }
 0x584   : > { %v4017_v51 = vadd.f32 %v3985_v62, %v3761_v38 }
 0x586   : > { %v4394_v9 = vpop.permute.xlu1 %4393  ;;  %v4241_v6 = vadd.f32 %v4209_v50, %v4017_v51 }
 0x587   : > { %v4433_v60 = vmul.f32 %v4394_v9, %v4273_v1 }
 0x589   : > { %v4465_v32 = vadd.f32 %v4433_v60, %v4241_v6 }
 0x58b   : > { %4497 = vst [vmem:[%s8170_s14 + $0xe8] sm:$0xff] %v4465_v32  ;;  %v3715_v44 = vpop.permute.xlu1 %3714 }
 0x58c   : > { %v3760_v45 = vmul.f32 %v3715_v44, %v3568_v22 }
 0x58e   : > { %v4016_v55 = vadd.f32 %v3984_v26, %v3760_v45 }
 0x590   : > { %v4166_v28 = vpop.permute.xlu1 %4165 }
 0x591   : > { %v4208_v53 = vmul.f32 %v4166_v28, %v4048_v59 }
 0x593   : > { %v4240_v30 = vadd.f32 %v4208_v53, %v4016_v55 }
 0x595   : > { %v4464_v37 = vadd.f32 %v4432_v39, %v4240_v30  ;;  %v3954_v29 = vpop.permute.xlu1 %3953 }
 0x596   : > { %v3987_v18 = vmul.f32 %v3954_v29, %v3827_v16 }
 0x597   : > { %4496 = vst [vmem:[%s8170_s14 + $0xe0] sm:$0xff] %v4464_v37 }
 0x598   : > { %v4019_v34 = vadd.f32 %v3987_v18, %v3763_v4 }
 0x59a   : > { %v3725_v13 = vpop.permute.xlu1 %3724  ;;  %v4243_v2 = vadd.f32 %v4211_v48, %v4019_v34 }
 0x59b   : > { %v3762_v14 = vmul.f32 %v3725_v13, %v3570_v12 }
 0x59d   : > { %v4018_v11 = vadd.f32 %v3986_v52, %v3762_v14 }
 0x59f   : > { %v4174_v40 = vpop.permute.xlu1 %4173 }
 0x5a0   : > { %v4210_v47 = vmul.f32 %v4174_v40, %v4050_v61 }
 0x5a2   : > { %v4242_v17 = vadd.f32 %v4210_v47, %v4018_v11 }
 0x5a4   : > { %v4466_v49 = vadd.f32 %v4434_v35, %v4242_v17  ;;  %v4402_v42 = vpop.permute.xlu1 %4401 }
 0x5a5   : > { %v4435_v38 = vmul.f32 %v4402_v42, %v4275_v5 }
 0x5a6   : > { %4498 = vst [vmem:[%s8170_s14 + $0xf0] sm:$0xff] %v4466_v49 }
 0x5a7   : > { %v4467_v62 = vadd.f32 %v4435_v38, %v4243_v2 }
 0x5a9   : > { %4499 = vst [vmem:[%s8170_s14 + $0xf8] sm:$0xff] %v4467_v62 }
 0x5aa   : > { %6610 = shalt.err (!%p6607_p4)
}
 0x5ab   : > { %s6611_s20 = scalar_lea.hbm %s8635_s29, 4096  ;;  %s6615_s13 = scalar_lea.hbm %s8687_s5, 8192 }
 0x5ac   : > { %p6612_p5 = scmp.ne.s32.totalorder %s8635_s29, %s6611_s20  ;;  %p6616_p1 = scmp.lt.u32.totalorder %s8635_s29, %s8687_s5 }
 0x5ad   : > { %p6617_p3 = scmp.lt.u32.totalorder %s6615_s13, %s6611_s20  ;;  %p6619_p11 = scmp.lt.u32.totalorder %s6611_s20, %s8635_s29 }
 0x5ae   : > { %p6613_p7 = pnand %p6612_p5, %p8695_p12 }
 0x5af   : > { %p6618_p6 = por %p6617_p3, %p6616_p1 }
 0x5b0   : > { %p6614_p9 = pneg %p6613_p7 }
 0x5b1   : > { %p6620_p13 = por %p6619_p11, %p6618_p6 }
 0x5b3   : > { %p6621_p8 = pnand %p6620_p13, %p6614_p9 }
 0x5b5   : > { %6624 = shalt.err (!%p6621_p8)
}
 0x5b6   : > { %s6673_s15 = smov 128   ;;  %s6674_s18 = smov 8  }
 0x5b7   : > { %5740 = dma.vmem_to_hbm [thread:$0]  (%p8695_p12), %s8637_s16, 4096, %s8635_s29, %s4501_s8, %s6673_s15, %s6673_s15, %s6674_s18  }
 0x5b8 PF: > { %s4538_s22 = sand.u32 1, %s6651_s23   ;;  %p8696_p10 = scmp.ne.s32.totalorder %s8693_s11, 0 }
 0x5b9   : > { %p8697_p0 = scmp.ge.s32.totalorder %s6663_s26, 2  ;;  %s4539_s4 = scalar_lea.sflag [#allocation5], %s4538_s22 }
 0x5bb   : > { %p5747_p2 = pnand %p8697_p0, %p8696_p10 }
 0x5bd   : > { %6646 = dma.done.wait (!%p5747_p2), %s4539_s4, 4096  }
 0x5be   : > { %6648 = vsyncadd (!%p5747_p2), %s4539_s4, 4294963200  ;;  %p21_p4 = scmp.ge.s32.totalorder %s6738_s28, 4   ;;  %s8698_s23 = smov %s6655_s24 }
 0x5bf   : > { %s8699_s24 = smov %s6659_s25  ;;  %s8700_s25 = smov %s6750_s7 }
 0x5c0   : > { %s8701_s26 = smov %s6738_s28  ;;  %23 = sbr.rel (!%p21_p4) target bundleno = 7 (0x7), region = 97 }
 0x5c7   :  { %4552 = vsyncpa [#allocation4], 1 }
 0x5c8   :  { %4554 = vsyncpa [#allocation4 + $0x1], 1 }
 0x5c9   :  { %4555 = vsyncpa [#allocation5], 1 }
 0x5ca   :  { %4557 = vsyncpa [#allocation5 + $0x1], 1 }

</bundles_post_ra>
